<compile_context>
chip_gen: v5e
topology: v5e:2x2
jax: 0.10.0
libtpu: 0.0.40
codegen_flags: <defaults>
</compile_context>

<pallas_src>
import functools

import jax
import jax.numpy as jnp
from jax.experimental import pallas as pl
from jax.experimental.pallas import tpu as pltpu

ALPHA = 50.0          # CriterionAll(alpha=50)
IGNORE_INDEX = 255    # CriterionAll(ignore_index=255)

_LANE = 128
_SUBLANE = 8
_VMEM_BUDGET = 36 * 1024 * 1024       # per-kernel working-set target (fits v5e/v6e/v7x)
_TARGET_TILE_PIXELS = 64 * 1024       # big tiles amortize the ~0.35us per-step overhead
_FUSE_COARSE_LIMIT = 20 * 1024 * 1024  # coarse logits must fit resident in VMEM to fuse


def _round_up(x, m):
    return -(-x // m) * m


# --------------------------------------------------------------------------- #
# Shared per-tile cross-entropy accumulation (classes streamed via load_cls)
# --------------------------------------------------------------------------- #
def _ce_tile_update(load_cls, lbl, row_mask, out_ref, is_first, *,
                    num_classes, alpha, ignore_index):
    """Accumulate [sum_ce, sum_weighted_ce, valid_count] into the resident out block.

    load_cls(c) -> (TR, W) f32 logits of class c for this pixel tile.
    lbl         -> (TR, W) int32 labels.
    row_mask    -> optional (TR, W) bool mask for ragged / dead tiles.
    out_ref     -> (8, 128) f32 resident accumulator (rows 0..2 carry the sums).
    """
    valid = lbl != ignore_index
    if row_mask is not None:
        valid = jnp.logical_and(valid, row_mask)

    # pass 1: per-pixel max over classes (numerical stabilizer)
    m = load_cls(0)
    for c in range(1, num_classes):
        m = jnp.maximum(m, load_cls(c))

    # pass 2: sum of exp and the picked (label) logit
    s = jnp.zeros_like(m)
    picked = jnp.zeros_like(m)
    for c in range(num_classes):
        xc = load_cls(c)
        s = s + jnp.exp(xc - m)
        picked = picked + jnp.where(lbl == c, xc, 0.0)

    lse = jnp.log(s) + m
    ce = jnp.where(valid, lse - picked, 0.0)        # torch gives 0 at ignored pixels
    wgt = jnp.where(lbl == 0, 1.0, 1.0 + alpha)     # edge-aware weight

    s_ce = jnp.sum(ce)
    s_wce = jnp.sum(ce * wgt)
    s_cnt = jnp.sum(valid.astype(jnp.float32))

    @pl.when(is_first)
    def _():
        out_ref[...] = jnp.zeros_like(out_ref)

    row = jax.lax.broadcasted_iota(jnp.int32, out_ref.shape, 0)
    out_ref[...] += (jnp.where(row == 0, s_ce, 0.0)
                     + jnp.where(row == 1, s_wce, 0.0)
                     + jnp.where(row == 2, s_cnt, 0.0))


def _row_mask_or_none(lbl_shape, need_mask, tile_rows, tiles_per_half, out_h):
    if not need_mask:
        return None
    g = pl.program_id(1) * tiles_per_half + pl.program_id(2)   # global row-tile id
    rows = g * tile_rows + jax.lax.broadcasted_iota(jnp.int32, lbl_shape, 0)
    return rows < out_h


# --------------------------------------------------------------------------- #
# Kernels
# --------------------------------------------------------------------------- #
def _direct_kernel(logits_ref, tgt_ref, out_ref, *,
                   num_classes, out_h, tile_rows, tiles_per_half, need_mask,
                   alpha, ignore_index):
    """CE stats for logits already at target resolution.  Blocks: (C, TR, W)."""
    lbl = tgt_ref[...]
    row_mask = _row_mask_or_none(lbl.shape, need_mask, tile_rows,
                                 tiles_per_half, out_h)
    _ce_tile_update(lambda c: logits_ref[c].astype(jnp.float32),
                    lbl, row_mask, out_ref, pl.program_id(2) == 0,
                    num_classes=num_classes, alpha=alpha,
                    ignore_index=ignore_index)


def _fused_kernel(my_ref, mxt_ref, coarse_ref, tgt_ref, out_ref, xbuf, *,
                  num_classes, out_h, tile_rows, tiles_per_half, need_mask,
                  alpha, ignore_index):
    """Bilinear upsample (MXU) fused with CE stats.

    my_ref     : (TR, h)   rows of the H-interpolation matrix for this tile
    mxt_ref    : (w, W)    transposed W-interpolation matrix
    coarse_ref : (C, h, w) coarse logits for this image (resident in VMEM)
    tgt_ref    : (TR, W)   int32 labels
    xbuf       : (C, TR, W) VMEM scratch holding the upsampled tile
    """
    my_t = my_ref[...].astype(jnp.float32)
    mxt = mxt_ref[...].astype(jnp.float32)

    # Per-class row-resize then column-resize on the MXU (which is otherwise idle).
    for c in range(num_classes):
        rows_c = jnp.dot(my_t, coarse_ref[c].astype(jnp.float32),
                         preferred_element_type=jnp.float32)          # (TR, w)
        xbuf[c] = jnp.dot(rows_c, mxt,
                          preferred_element_type=jnp.float32)         # (TR, W)

    lbl = tgt_ref[...]
    row_mask = _row_mask_or_none(lbl.shape, need_mask, tile_rows,
                                 tiles_per_half, out_h)
    _ce_tile_update(lambda c: xbuf[c],
                    lbl, row_mask, out_ref, pl.program_id(2) == 0,
                    num_classes=num_classes, alpha=alpha,
                    ignore_index=ignore_index)


# --------------------------------------------------------------------------- #
# Tiling plan (VMEM-aware; vmem_limit_bytes derived from the chosen tile)
# --------------------------------------------------------------------------- #
def _plan(H, W, C, coarse_hw, tile_rows_override):
    lane_w = _round_up(max(W, 1), _LANE)

    def est_bytes(tr):
        trp = _round_up(max(tr, 1), _SUBLANE)
        b = 2 * trp * lane_w * 4                     # target tile (double buffered)
        b += 2 * 8 * _LANE * 4                       # output block
        b += 12 * trp * lane_w * 4                   # f32 temporaries of the CE math
        if coarse_hw is None:
            b += 2 * C * trp * lane_w * 4            # logits tile (double buffered)
        else:
            h, w = coarse_hw
            b += 2 * C * _round_up(h, _SUBLANE) * _round_up(w, _LANE) * 4  # coarse
            b += 2 * trp * _round_up(h, _LANE) * 4                         # My rows
            b += 2 * _round_up(w, _SUBLANE) * lane_w * 4                   # Mx^T
            b += C * trp * lane_w * 4                                      # xbuf scratch
            b += 4 * trp * (_round_up(w, _LANE) + lane_w) * 4              # matmul temps
        return b

    if tile_rows_override is not None:
        tr = int(min(tile_rows_override, H))
        if tr < H:
            tr = max(_SUBLANE, (tr // _SUBLANE) * _SUBLANE)
    else:
        cap_rows = max(1, _TARGET_TILE_PIXELS // lane_w)
        if H <= cap_rows:
            tr = H
        else:
            tr = max(_SUBLANE, (cap_rows // _SUBLANE) * _SUBLANE)
            while tr > _SUBLANE and est_bytes(tr) > _VMEM_BUDGET:
                tr -= _SUBLANE
        if tr == H and est_bytes(tr) > _VMEM_BUDGET and H > _SUBLANE:
            tr = max(_SUBLANE, ((H // 2) // _SUBLANE) * _SUBLANE)
            while tr > _SUBLANE and est_bytes(tr) > _VMEM_BUDGET:
                tr -= _SUBLANE
        # Keep at least two pixel tiles so the second "parallel" axis can spread
        # work across both v7x TensorCores even at batch size 1.
        if pl.cdiv(H, tr) == 1 and H >= 2 * _SUBLANE:
            tr = _round_up(pl.cdiv(H, 2), _SUBLANE)

    num_tiles = pl.cdiv(H, tr)
    split = 2 if num_tiles >= 2 else 1
    tiles_per_half = pl.cdiv(num_tiles, split)
    need_mask = (H % tr != 0) or (split * tiles_per_half != num_tiles)
    vmem_limit = int(max(32 * 1024 * 1024,
                         min(2 * est_bytes(tr), 56 * 1024 * 1024)))
    return tr, num_tiles, split, tiles_per_half, need_mask, vmem_limit


def _compiler_params(vmem_limit):
    return pltpu.CompilerParams(
        dimension_semantics=("parallel", "parallel", "arbitrary"),
        vmem_limit_bytes=vmem_limit,
    )


def _reduce_out(out):
    sums = jnp.sum(out[:, :, :3, 0], axis=(0, 1))
    return sums[0], sums[1], sums[2]


# --------------------------------------------------------------------------- #
# pallas_call wrappers
# --------------------------------------------------------------------------- #
def _ce_stats_direct(logits, target, *, alpha, ignore_index, tile_rows=None):
    """logits: (N, C, H, W); target: (N, H, W) int32."""
    N, C, H, W = logits.shape
    tr, num_tiles, split, tiles_per_half, need_mask, vmem_limit = _plan(
        H, W, C, None, tile_rows)

    def rt(s, t):  # clamped global row-tile index (dead tiles get masked in-kernel)
        return jnp.minimum(s * tiles_per_half + t, num_tiles - 1)

    kernel = functools.partial(
        _direct_kernel, num_classes=C, out_h=H, tile_rows=tr,
        tiles_per_half=tiles_per_half, need_mask=need_mask,
        alpha=alpha, ignore_index=ignore_index)

    out = pl.pallas_call(
        kernel,
        out_shape=jax.ShapeDtypeStruct((N, split, 8, _LANE), jnp.float32),
        grid_spec=pltpu.PrefetchScalarGridSpec(
            num_scalar_prefetch=0,
            grid=(N, split, tiles_per_half),
            in_specs=[
                pl.BlockSpec((None, C, tr, W), lambda n, s, t: (n, 0, rt(s, t), 0)),
                pl.BlockSpec((None, tr, W), lambda n, s, t: (n, rt(s, t), 0)),
            ],
            out_specs=pl.BlockSpec((None, None, 8, _LANE),
                                   lambda n, s, t: (n, s, 0, 0)),
        ),
        compiler_params=_compiler_params(vmem_limit),
    )(logits, target)
    return _reduce_out(out)


def _ce_stats_fused(coarse, my_mat, mxt_mat, target, *, alpha, ignore_index,
                    tile_rows=None):
    """coarse: (N, C, h, w); my_mat: (H, h); mxt_mat: (w, W); target: (N, H, W)."""
    N, C, h, w = coarse.shape
    H = my_mat.shape[0]
    W = mxt_mat.shape[1]
    tr, num_tiles, split, tiles_per_half, need_mask, vmem_limit = _plan(
        H, W, C, (h, w), tile_rows)

    def rt(s, t):
        return jnp.minimum(s * tiles_per_half + t, num_tiles - 1)

    kernel = functools.partial(
        _fused_kernel, num_classes=C, out_h=H, tile_rows=tr,
        tiles_per_half=tiles_per_half, need_mask=need_mask,
        alpha=alpha, ignore_index=ignore_index)

    out = pl.pallas_call(
        kernel,
        out_shape=jax.ShapeDtypeStruct((N, split, 8, _LANE), jnp.float32),
        grid_spec=pltpu.PrefetchScalarGridSpec(
            num_scalar_prefetch=0,
            grid=(N, split, tiles_per_half),
            in_specs=[
                pl.BlockSpec((tr, h), lambda n, s, t: (rt(s, t), 0)),           # My rows
                pl.BlockSpec((w, W), lambda n, s, t: (0, 0)),                   # Mx^T
                pl.BlockSpec((None, C, h, w), lambda n, s, t: (n, 0, 0, 0)),    # coarse
                pl.BlockSpec((None, tr, W), lambda n, s, t: (n, rt(s, t), 0)),  # labels
            ],
            out_specs=pl.BlockSpec((None, None, 8, _LANE),
                                   lambda n, s, t: (n, s, 0, 0)),
            scratch_shapes=[pltpu.VMEM((C, tr, W), jnp.float32)],
        ),
        compiler_params=_compiler_params(vmem_limit),
    )(my_mat, mxt_mat, coarse, target)
    return _reduce_out(out)


# --------------------------------------------------------------------------- #
# Bilinear interpolation matrices + XLA fallback resize (only for huge coarse heads)
# --------------------------------------------------------------------------- #
def _interp_matrix(out_size, in_size, dtype=jnp.float32):
    if out_size == in_size:
        return jnp.eye(out_size, dtype=dtype)
    if in_size == 1:
        return jnp.ones((out_size, 1), dtype=dtype)
    if out_size == 1:
        return jnp.zeros((1, in_size), dtype=dtype).at[0, 0].set(1.0)
    pos = jnp.linspace(0.0, float(in_size - 1), out_size)
    lo = jnp.clip(jnp.floor(pos).astype(jnp.int32), 0, in_size - 1)
    hi = jnp.clip(lo + 1, 0, in_size - 1)
    frac = (pos - lo.astype(jnp.float32)).astype(dtype)
    eye = jnp.eye(in_size, dtype=dtype)
    return (1.0 - frac)[:, None] * eye[lo] + frac[:, None] * eye[hi]


def _resize_bilinear_align_corners(x, H, W):
    """Fallback only: F.interpolate(bilinear, align_corners=True) via XLA matmuls."""
    n, c, h, w = x.shape
    if (h, w) == (H, W):
        return x
    My = _interp_matrix(H, h)
    Mx = _interp_matrix(W, w)
    hp = jax.lax.Precision.HIGH   # bf16_3x: well within tolerance, ~2x faster than HIGHEST
    rows = jnp.einsum('nchw,Hh->ncHw', x.astype(jnp.float32), My, precision=hp)
    out = jnp.einsum('ncHw,Ww->ncHW', rows, Mx, precision=hp)
    return out.astype(jnp.float32)


def _head_stats(pred, tgt, H, W, *, alpha, ignore_index, tile_rows=None):
    N, C, h, w = pred.shape
    if (h, w) == (H, W):
        return _ce_stats_direct(pred, tgt, alpha=alpha, ignore_index=ignore_index,
                                tile_rows=tile_rows)
    coarse_resident = 2 * C * _round_up(h, _SUBLANE) * _round_up(w, _LANE) * 4
    if coarse_resident <= _FUSE_COARSE_LIMIT:
        my_mat = _interp_matrix(H, h)
        mxt_mat = _interp_matrix(W, w).T
        return _ce_stats_fused(pred, my_mat, mxt_mat, tgt, alpha=alpha,
                               ignore_index=ignore_index, tile_rows=tile_rows)
    # Coarse logits too large to keep resident in VMEM: resize in XLA, then direct CE.
    sp = _resize_bilinear_align_corners(pred, H, W)
    return _ce_stats_direct(sp, tgt, alpha=alpha, ignore_index=ignore_index,
                            tile_rows=tile_rows)


# --------------------------------------------------------------------------- #
# CriterionAll forward
# --------------------------------------------------------------------------- #
def criterion_all(preds, target, *, alpha=ALPHA, ignore_index=IGNORE_INDEX,
                  _tile_rows=None):
    """preds: NCHW tensor or list of them; target: (N, H, W) int labels."""
    N, H, W = target.shape
    tgt = target.astype(jnp.int32)
    is_list = isinstance(preds, (list, tuple))
    preds_list = list(preds) if is_list else [preds]

    loss = jnp.float32(0.0)
    for idx, p in enumerate(preds_list):
        s_ce, s_wce, cnt = _head_stats(p, tgt, H, W, alpha=alpha,
                                       ignore_index=ignore_index,
                                       tile_rows=_tile_rows)
        if is_list and idx == len(preds_list) - 1:
            # weighted CE (reduction='none') * edge weight, mean over ALL pixels
            loss = loss + s_wce / jnp.float32(N * H * W)
        else:
            # standard CE, mean over non-ignored pixels (NaN if none, as in torch)
            loss = loss + s_ce / cnt
    return loss


# --------------------------------------------------------------------------- #
# Pure-JAX reference (gather-based resize + logsumexp) for the self-check
# --------------------------------------------------------------------------- #
def _reference_resize(x, H, W):
    n, c, h, w = x.shape
    if (h, w) == (H, W):
        return x
    ys = jnp.linspace(0.0, float(h - 1), H) if H > 1 else jnp.zeros((1,), jnp.float32)
    xs = jnp.linspace(0.0, float(w - 1), W) if W > 1 else jnp.zeros((1,), jnp.float32)
    y0 = jnp.clip(jnp.floor(ys).astype(jnp.int32), 0, h - 1)
    y1 = jnp.clip(y0 + 1, 0, h - 1)
    wy = (ys - y0.astype(jnp.float32))[None, None, :, None]
    x0 = jnp.clip(jnp.floor(xs).astype(jnp.int32), 0, w - 1)
    x1 = jnp.clip(x0 + 1, 0, w - 1)
    wx = (xs - x0.astype(jnp.float32))[None, None, None, :]
    rows = x[:, :, y0, :] * (1.0 - wy) + x[:, :, y1, :] * wy
    return rows[:, :, :, x0] * (1.0 - wx) + rows[:, :, :, x1] * wx


def _reference_loss(preds, target, alpha=ALPHA, ignore_index=IGNORE_INDEX):
    N, H, W = target.shape
    P = N * H * W
    tgt = target.reshape(P)
    valid = tgt != ignore_index
    is_list = isinstance(preds, (list, tuple))
    preds_list = list(preds) if is_list else [preds]
    loss = jnp.float32(0.0)
    for idx, p in enumerate(preds_list):
        sp = _reference_resize(p, H, W)
        x = jnp.transpose(sp, (0, 2, 3, 1)).reshape(P, -1).astype(jnp.float32)
        lse = jax.scipy.special.logsumexp(x, axis=-1)
        picked = jnp.take_along_axis(x, jnp.where(valid, tgt, 0)[:, None], axis=1)[:, 0]
        ce = jnp.where(valid, lse - picked, 0.0)
        if is_list and idx == len(preds_list) - 1:
            w = jnp.where(tgt == 0, 1.0, 1.0 + alpha)
            loss = loss + jnp.mean(ce * w)
        else:
            loss = loss + jnp.sum(ce) / jnp.sum(valid)
    return loss


if __name__ == "__main__":
    key = jax.random.PRNGKey(0)
    N, C, H, W = 2, 20, 40, 40
    k1, k2, k3, k4 = jax.random.split(key, 4)

    # preds list: coarse prediction (half resolution) + full-resolution prediction
    p0 = jax.random.normal(k1, (N, C, H // 2, W // 2), jnp.float32)
    p1 = jax.random.normal(k2, (N, C, H, W), jnp.float32)
    target = jax.random.randint(k3, (N, H, W), 0, C).astype(jnp.int32)
    ignore_mask = jax.random.uniform(k4, (N, H, W)) < 0.1
    target = jnp.where(ignore_mask, IGNORE_INDEX, target)

    ref = _reference_loss([p0, p1], target)

    # 1) Default tiling (fused upsample kernel for p0, direct kernel for p1).
    loss = jax.block_until_ready(criterion_all([p0, p1], target))
    assert jnp.allclose(loss, ref, rtol=1e-3, atol=2e-3), (float(loss), float(ref))

    # 2) Forced small row tiles: exercises ragged last tiles, dead tiles of the
    #    two-way pixel split (v7x TensorCore balancing) and multi-step accumulation.
    loss_tiled = jax.block_until_ready(criterion_all([p0, p1], target, _tile_rows=16))
    assert jnp.allclose(loss_tiled, ref, rtol=1e-3, atol=2e-3), (
        float(loss_tiled), float(ref))

    # 3) Single (non-list) prediction path (coarse head only -> fused kernel).
    ref_single = _reference_loss(p0, target)
    loss_single = jax.block_until_ready(criterion_all(p0, target))
    assert jnp.allclose(loss_single, ref_single, rtol=1e-3, atol=2e-3), (
        float(loss_single), float(ref_single))

    print("KERNEL_OK")
</pallas_src>

<mosaic_0001>
module attributes {stable_mosaic.version = 11 : i64} {
  func.func @_fused_kernel(%arg0: i32, %arg1: i32, %arg2: i32, %arg3: memref<24x20xf32, #tpu.memory_space<vmem>>, %arg4: memref<20x40xf32, #tpu.memory_space<vmem>>, %arg5: memref<1x20x20x20xf32, #tpu.memory_space<vmem>>, %arg6: memref<1x24x40xi32, #tpu.memory_space<vmem>>, %arg7: memref<1x1x8x128xf32, #tpu.memory_space<vmem>>, %arg8: memref<20x24x40xf32, #tpu.memory_space<vmem>>) attributes {dimension_semantics = [#tpu.dimension_semantics<parallel>, #tpu.dimension_semantics<parallel>, #tpu.dimension_semantics<arbitrary>], iteration_bounds = array<i64: 2, 2, 1>, scalar_prefetch = 0 : i64, scratch_operands = 1 : i64, tpu.core_type = #tpu.core_type<tc>, window_params = [{transform_indices = @transform_0, window_bounds = array<i64: 24, 20>}, {pipeline_mode = #tpu.pipeline_mode<synchronous>, transform_indices = @transform_1, window_bounds = array<i64: 20, 40>}, {transform_indices = @transform_2, window_bounds = array<i64: 1, 20, 20, 20>}, {transform_indices = @transform_3, window_bounds = array<i64: 1, 24, 40>}, {transform_indices = @transform_4, window_bounds = array<i64: 1, 1, 8, 128>}]} {
    %c0 = arith.constant 0 : index
    %c0_0 = arith.constant 0 : index
    %0 = vector.load %arg3[%c0, %c0_0] : memref<24x20xf32, #tpu.memory_space<vmem>>, vector<24x20xf32>
    %c0_1 = arith.constant 0 : index
    %c0_2 = arith.constant 0 : index
    %1 = vector.load %arg4[%c0_1, %c0_2] : memref<20x40xf32, #tpu.memory_space<vmem>>, vector<20x40xf32>
    %c0_3 = arith.constant 0 : index
    %c0_4 = arith.constant 0 : index
    %c0_5 = arith.constant 0 : index
    %c0_6 = arith.constant 0 : index
    %2 = vector.load %arg5[%c0_3, %c0_4, %c0_5, %c0_6] : memref<1x20x20x20xf32, #tpu.memory_space<vmem>>, vector<1x1x20x20xf32>
    %3 = vector.shape_cast %2 : vector<1x1x20x20xf32> to vector<20x20xf32>
    %cst = arith.constant dense<0.000000e+00> : vector<24x20xf32>
    %4 = tpu.matmul %0, %3, %cst {dimension_numbers = #tpu.dot_dimension_numbers<[1], [0], [0], [1], [0, 0, 1, 1], [], []>} : vector<24x20xf32>, vector<20x20xf32>, vector<24x20xf32> -> vector<24x20xf32>
    %cst_7 = arith.constant dense<0.000000e+00> : vector<24x40xf32>
    %5 = tpu.matmul %4, %1, %cst_7 {dimension_numbers = #tpu.dot_dimension_numbers<[1], [0], [0], [1], [0, 0, 1, 1], [], []>} : vector<24x20xf32>, vector<20x40xf32>, vector<24x40xf32> -> vector<24x40xf32>
    %c0_8 = arith.constant 0 : index
    %c0_9 = arith.constant 0 : index
    %c0_10 = arith.constant 0 : index
    %6 = vector.load %arg8[%c0_8, %c0_9, %c0_10] : memref<20x24x40xf32, #tpu.memory_space<vmem>>, vector<1x24x40xf32>
    %7 = vector.shape_cast %6 : vector<1x24x40xf32> to vector<24x40xf32>
    %8 = vector.shape_cast %5 : vector<24x40xf32> to vector<1x24x40xf32>
    tpu.vector_store %arg8[%c0_8, %c0_9, %c0_10], %8 {strides = array<i32>} : memref<20x24x40xf32, #tpu.memory_space<vmem>>, vector<1x24x40xf32>,
    %c0_11 = arith.constant 0 : index
    %c1 = arith.constant 1 : index
    %c0_12 = arith.constant 0 : index
    %c0_13 = arith.constant 0 : index
    %9 = vector.load %arg5[%c0_11, %c1, %c0_12, %c0_13] : memref<1x20x20x20xf32, #tpu.memory_space<vmem>>, vector<1x1x20x20xf32>
    %10 = vector.shape_cast %9 : vector<1x1x20x20xf32> to vector<20x20xf32>
    %cst_14 = arith.constant dense<0.000000e+00> : vector<24x20xf32>
    %11 = tpu.matmul %0, %10, %cst_14 {dimension_numbers = #tpu.dot_dimension_numbers<[1], [0], [0], [1], [0, 0, 1, 1], [], []>} : vector<24x20xf32>, vector<20x20xf32>, vector<24x20xf32> -> vector<24x20xf32>
    %cst_15 = arith.constant dense<0.000000e+00> : vector<24x40xf32>
    %12 = tpu.matmul %11, %1, %cst_15 {dimension_numbers = #tpu.dot_dimension_numbers<[1], [0], [0], [1], [0, 0, 1, 1], [], []>} : vector<24x20xf32>, vector<20x40xf32>, vector<24x40xf32> -> vector<24x40xf32>
    %c1_16 = arith.constant 1 : index
    %c0_17 = arith.constant 0 : index
    %c0_18 = arith.constant 0 : index
    %13 = vector.load %arg8[%c1_16, %c0_17, %c0_18] : memref<20x24x40xf32, #tpu.memory_space<vmem>>, vector<1x24x40xf32>
    %14 = vector.shape_cast %13 : vector<1x24x40xf32> to vector<24x40xf32>
    %15 = vector.shape_cast %12 : vector<24x40xf32> to vector<1x24x40xf32>
    tpu.vector_store %arg8[%c1_16, %c0_17, %c0_18], %15 {strides = array<i32>} : memref<20x24x40xf32, #tpu.memory_space<vmem>>, vector<1x24x40xf32>,
    %c0_19 = arith.constant 0 : index
    %c2 = arith.constant 2 : index
    %c0_20 = arith.constant 0 : index
    %c0_21 = arith.constant 0 : index
    %16 = vector.load %arg5[%c0_19, %c2, %c0_20, %c0_21] : memref<1x20x20x20xf32, #tpu.memory_space<vmem>>, vector<1x1x20x20xf32>
    %17 = vector.shape_cast %16 : vector<1x1x20x20xf32> to vector<20x20xf32>
    %cst_22 = arith.constant dense<0.000000e+00> : vector<24x20xf32>
    %18 = tpu.matmul %0, %17, %cst_22 {dimension_numbers = #tpu.dot_dimension_numbers<[1], [0], [0], [1], [0, 0, 1, 1], [], []>} : vector<24x20xf32>, vector<20x20xf32>, vector<24x20xf32> -> vector<24x20xf32>
    %cst_23 = arith.constant dense<0.000000e+00> : vector<24x40xf32>
    %19 = tpu.matmul %18, %1, %cst_23 {dimension_numbers = #tpu.dot_dimension_numbers<[1], [0], [0], [1], [0, 0, 1, 1], [], []>} : vector<24x20xf32>, vector<20x40xf32>, vector<24x40xf32> -> vector<24x40xf32>
    %c2_24 = arith.constant 2 : index
    %c0_25 = arith.constant 0 : index
    %c0_26 = arith.constant 0 : index
    %20 = vector.load %arg8[%c2_24, %c0_25, %c0_26] : memref<20x24x40xf32, #tpu.memory_space<vmem>>, vector<1x24x40xf32>
    %21 = vector.shape_cast %20 : vector<1x24x40xf32> to vector<24x40xf32>
    %22 = vector.shape_cast %19 : vector<24x40xf32> to vector<1x24x40xf32>
    tpu.vector_store %arg8[%c2_24, %c0_25, %c0_26], %22 {strides = array<i32>} : memref<20x24x40xf32, #tpu.memory_space<vmem>>, vector<1x24x40xf32>,
    %c0_27 = arith.constant 0 : index
    %c3 = arith.constant 3 : index
    %c0_28 = arith.constant 0 : index
    %c0_29 = arith.constant 0 : index
    %23 = vector.load %arg5[%c0_27, %c3, %c0_28, %c0_29] : memref<1x20x20x20xf32, #tpu.memory_space<vmem>>, vector<1x1x20x20xf32>
    %24 = vector.shape_cast %23 : vector<1x1x20x20xf32> to vector<20x20xf32>
    %cst_30 = arith.constant dense<0.000000e+00> : vector<24x20xf32>
    %25 = tpu.matmul %0, %24, %cst_30 {dimension_numbers = #tpu.dot_dimension_numbers<[1], [0], [0], [1], [0, 0, 1, 1], [], []>} : vector<24x20xf32>, vector<20x20xf32>, vector<24x20xf32> -> vector<24x20xf32>
    %cst_31 = arith.constant dense<0.000000e+00> : vector<24x40xf32>
    %26 = tpu.matmul %25, %1, %cst_31 {dimension_numbers = #tpu.dot_dimension_numbers<[1], [0], [0], [1], [0, 0, 1, 1], [], []>} : vector<24x20xf32>, vector<20x40xf32>, vector<24x40xf32> -> vector<24x40xf32>
    %c3_32 = arith.constant 3 : index
    %c0_33 = arith.constant 0 : index
    %c0_34 = arith.constant 0 : index
    %27 = vector.load %arg8[%c3_32, %c0_33, %c0_34] : memref<20x24x40xf32, #tpu.memory_space<vmem>>, vector<1x24x40xf32>
    %28 = vector.shape_cast %27 : vector<1x24x40xf32> to vector<24x40xf32>
    %29 = vector.shape_cast %26 : vector<24x40xf32> to vector<1x24x40xf32>
    tpu.vector_store %arg8[%c3_32, %c0_33, %c0_34], %29 {strides = array<i32>} : memref<20x24x40xf32, #tpu.memory_space<vmem>>, vector<1x24x40xf32>,
    %c0_35 = arith.constant 0 : index
    %c4 = arith.constant 4 : index
    %c0_36 = arith.constant 0 : index
    %c0_37 = arith.constant 0 : index
    %30 = vector.load %arg5[%c0_35, %c4, %c0_36, %c0_37] : memref<1x20x20x20xf32, #tpu.memory_space<vmem>>, vector<1x1x20x20xf32>
    %31 = vector.shape_cast %30 : vector<1x1x20x20xf32> to vector<20x20xf32>
    %cst_38 = arith.constant dense<0.000000e+00> : vector<24x20xf32>
    %32 = tpu.matmul %0, %31, %cst_38 {dimension_numbers = #tpu.dot_dimension_numbers<[1], [0], [0], [1], [0, 0, 1, 1], [], []>} : vector<24x20xf32>, vector<20x20xf32>, vector<24x20xf32> -> vector<24x20xf32>
    %cst_39 = arith.constant dense<0.000000e+00> : vector<24x40xf32>
    %33 = tpu.matmul %32, %1, %cst_39 {dimension_numbers = #tpu.dot_dimension_numbers<[1], [0], [0], [1], [0, 0, 1, 1], [], []>} : vector<24x20xf32>, vector<20x40xf32>, vector<24x40xf32> -> vector<24x40xf32>
    %c4_40 = arith.constant 4 : index
    %c0_41 = arith.constant 0 : index
    %c0_42 = arith.constant 0 : index
    %34 = vector.load %arg8[%c4_40, %c0_41, %c0_42] : memref<20x24x40xf32, #tpu.memory_space<vmem>>, vector<1x24x40xf32>
    %35 = vector.shape_cast %34 : vector<1x24x40xf32> to vector<24x40xf32>
    %36 = vector.shape_cast %33 : vector<24x40xf32> to vector<1x24x40xf32>
    tpu.vector_store %arg8[%c4_40, %c0_41, %c0_42], %36 {strides = array<i32>} : memref<20x24x40xf32, #tpu.memory_space<vmem>>, vector<1x24x40xf32>,
    %c0_43 = arith.constant 0 : index
    %c5 = arith.constant 5 : index
    %c0_44 = arith.constant 0 : index
    %c0_45 = arith.constant 0 : index
    %37 = vector.load %arg5[%c0_43, %c5, %c0_44, %c0_45] : memref<1x20x20x20xf32, #tpu.memory_space<vmem>>, vector<1x1x20x20xf32>
    %38 = vector.shape_cast %37 : vector<1x1x20x20xf32> to vector<20x20xf32>
    %cst_46 = arith.constant dense<0.000000e+00> : vector<24x20xf32>
    %39 = tpu.matmul %0, %38, %cst_46 {dimension_numbers = #tpu.dot_dimension_numbers<[1], [0], [0], [1], [0, 0, 1, 1], [], []>} : vector<24x20xf32>, vector<20x20xf32>, vector<24x20xf32> -> vector<24x20xf32>
    %cst_47 = arith.constant dense<0.000000e+00> : vector<24x40xf32>
    %40 = tpu.matmul %39, %1, %cst_47 {dimension_numbers = #tpu.dot_dimension_numbers<[1], [0], [0], [1], [0, 0, 1, 1], [], []>} : vector<24x20xf32>, vector<20x40xf32>, vector<24x40xf32> -> vector<24x40xf32>
    %c5_48 = arith.constant 5 : index
    %c0_49 = arith.constant 0 : index
    %c0_50 = arith.constant 0 : index
    %41 = vector.load %arg8[%c5_48, %c0_49, %c0_50] : memref<20x24x40xf32, #tpu.memory_space<vmem>>, vector<1x24x40xf32>
    %42 = vector.shape_cast %41 : vector<1x24x40xf32> to vector<24x40xf32>
    %43 = vector.shape_cast %40 : vector<24x40xf32> to vector<1x24x40xf32>
    tpu.vector_store %arg8[%c5_48, %c0_49, %c0_50], %43 {strides = array<i32>} : memref<20x24x40xf32, #tpu.memory_space<vmem>>, vector<1x24x40xf32>,
    %c0_51 = arith.constant 0 : index
    %c6 = arith.constant 6 : index
    %c0_52 = arith.constant 0 : index
    %c0_53 = arith.constant 0 : index
    %44 = vector.load %arg5[%c0_51, %c6, %c0_52, %c0_53] : memref<1x20x20x20xf32, #tpu.memory_space<vmem>>, vector<1x1x20x20xf32>
    %45 = vector.shape_cast %44 : vector<1x1x20x20xf32> to vector<20x20xf32>
    %cst_54 = arith.constant dense<0.000000e+00> : vector<24x20xf32>
    %46 = tpu.matmul %0, %45, %cst_54 {dimension_numbers = #tpu.dot_dimension_numbers<[1], [0], [0], [1], [0, 0, 1, 1], [], []>} : vector<24x20xf32>, vector<20x20xf32>, vector<24x20xf32> -> vector<24x20xf32>
    %cst_55 = arith.constant dense<0.000000e+00> : vector<24x40xf32>
    %47 = tpu.matmul %46, %1, %cst_55 {dimension_numbers = #tpu.dot_dimension_numbers<[1], [0], [0], [1], [0, 0, 1, 1], [], []>} : vector<24x20xf32>, vector<20x40xf32>, vector<24x40xf32> -> vector<24x40xf32>
    %c6_56 = arith.constant 6 : index
    %c0_57 = arith.constant 0 : index
    %c0_58 = arith.constant 0 : index
    %48 = vector.load %arg8[%c6_56, %c0_57, %c0_58] : memref<20x24x40xf32, #tpu.memory_space<vmem>>, vector<1x24x40xf32>
    %49 = vector.shape_cast %48 : vector<1x24x40xf32> to vector<24x40xf32>
    %50 = vector.shape_cast %47 : vector<24x40xf32> to vector<1x24x40xf32>
    tpu.vector_store %arg8[%c6_56, %c0_57, %c0_58], %50 {strides = array<i32>} : memref<20x24x40xf32, #tpu.memory_space<vmem>>, vector<1x24x40xf32>,
    %c0_59 = arith.constant 0 : index
    %c7 = arith.constant 7 : index
    %c0_60 = arith.constant 0 : index
    %c0_61 = arith.constant 0 : index
    %51 = vector.load %arg5[%c0_59, %c7, %c0_60, %c0_61] : memref<1x20x20x20xf32, #tpu.memory_space<vmem>>, vector<1x1x20x20xf32>
    %52 = vector.shape_cast %51 : vector<1x1x20x20xf32> to vector<20x20xf32>
    %cst_62 = arith.constant dense<0.000000e+00> : vector<24x20xf32>
    %53 = tpu.matmul %0, %52, %cst_62 {dimension_numbers = #tpu.dot_dimension_numbers<[1], [0], [0], [1], [0, 0, 1, 1], [], []>} : vector<24x20xf32>, vector<20x20xf32>, vector<24x20xf32> -> vector<24x20xf32>
    %cst_63 = arith.constant dense<0.000000e+00> : vector<24x40xf32>
    %54 = tpu.matmul %53, %1, %cst_63 {dimension_numbers = #tpu.dot_dimension_numbers<[1], [0], [0], [1], [0, 0, 1, 1], [], []>} : vector<24x20xf32>, vector<20x40xf32>, vector<24x40xf32> -> vector<24x40xf32>
    %c7_64 = arith.constant 7 : index
    %c0_65 = arith.constant 0 : index
    %c0_66 = arith.constant 0 : index
    %55 = vector.load %arg8[%c7_64, %c0_65, %c0_66] : memref<20x24x40xf32, #tpu.memory_space<vmem>>, vector<1x24x40xf32>
    %56 = vector.shape_cast %55 : vector<1x24x40xf32> to vector<24x40xf32>
    %57 = vector.shape_cast %54 : vector<24x40xf32> to vector<1x24x40xf32>
    tpu.vector_store %arg8[%c7_64, %c0_65, %c0_66], %57 {strides = array<i32>} : memref<20x24x40xf32, #tpu.memory_space<vmem>>, vector<1x24x40xf32>,
    %c0_67 = arith.constant 0 : index
    %c8 = arith.constant 8 : index
    %c0_68 = arith.constant 0 : index
    %c0_69 = arith.constant 0 : index
    %58 = vector.load %arg5[%c0_67, %c8, %c0_68, %c0_69] : memref<1x20x20x20xf32, #tpu.memory_space<vmem>>, vector<1x1x20x20xf32>
    %59 = vector.shape_cast %58 : vector<1x1x20x20xf32> to vector<20x20xf32>
    %cst_70 = arith.constant dense<0.000000e+00> : vector<24x20xf32>
    %60 = tpu.matmul %0, %59, %cst_70 {dimension_numbers = #tpu.dot_dimension_numbers<[1], [0], [0], [1], [0, 0, 1, 1], [], []>} : vector<24x20xf32>, vector<20x20xf32>, vector<24x20xf32> -> vector<24x20xf32>
    %cst_71 = arith.constant dense<0.000000e+00> : vector<24x40xf32>
    %61 = tpu.matmul %60, %1, %cst_71 {dimension_numbers = #tpu.dot_dimension_numbers<[1], [0], [0], [1], [0, 0, 1, 1], [], []>} : vector<24x20xf32>, vector<20x40xf32>, vector<24x40xf32> -> vector<24x40xf32>
    %c8_72 = arith.constant 8 : index
    %c0_73 = arith.constant 0 : index
    %c0_74 = arith.constant 0 : index
    %62 = vector.load %arg8[%c8_72, %c0_73, %c0_74] : memref<20x24x40xf32, #tpu.memory_space<vmem>>, vector<1x24x40xf32>
    %63 = vector.shape_cast %62 : vector<1x24x40xf32> to vector<24x40xf32>
    %64 = vector.shape_cast %61 : vector<24x40xf32> to vector<1x24x40xf32>
    tpu.vector_store %arg8[%c8_72, %c0_73, %c0_74], %64 {strides = array<i32>} : memref<20x24x40xf32, #tpu.memory_space<vmem>>, vector<1x24x40xf32>,
    %c0_75 = arith.constant 0 : index
    %c9 = arith.constant 9 : index
    %c0_76 = arith.constant 0 : index
    %c0_77 = arith.constant 0 : index
    %65 = vector.load %arg5[%c0_75, %c9, %c0_76, %c0_77] : memref<1x20x20x20xf32, #tpu.memory_space<vmem>>, vector<1x1x20x20xf32>
    %66 = vector.shape_cast %65 : vector<1x1x20x20xf32> to vector<20x20xf32>
    %cst_78 = arith.constant dense<0.000000e+00> : vector<24x20xf32>
    %67 = tpu.matmul %0, %66, %cst_78 {dimension_numbers = #tpu.dot_dimension_numbers<[1], [0], [0], [1], [0, 0, 1, 1], [], []>} : vector<24x20xf32>, vector<20x20xf32>, vector<24x20xf32> -> vector<24x20xf32>
    %cst_79 = arith.constant dense<0.000000e+00> : vector<24x40xf32>
    %68 = tpu.matmul %67, %1, %cst_79 {dimension_numbers = #tpu.dot_dimension_numbers<[1], [0], [0], [1], [0, 0, 1, 1], [], []>} : vector<24x20xf32>, vector<20x40xf32>, vector<24x40xf32> -> vector<24x40xf32>
    %c9_80 = arith.constant 9 : index
    %c0_81 = arith.constant 0 : index
    %c0_82 = arith.constant 0 : index
    %69 = vector.load %arg8[%c9_80, %c0_81, %c0_82] : memref<20x24x40xf32, #tpu.memory_space<vmem>>, vector<1x24x40xf32>
    %70 = vector.shape_cast %69 : vector<1x24x40xf32> to vector<24x40xf32>
    %71 = vector.shape_cast %68 : vector<24x40xf32> to vector<1x24x40xf32>
    tpu.vector_store %arg8[%c9_80, %c0_81, %c0_82], %71 {strides = array<i32>} : memref<20x24x40xf32, #tpu.memory_space<vmem>>, vector<1x24x40xf32>,
    %c0_83 = arith.constant 0 : index
    %c10 = arith.constant 10 : index
    %c0_84 = arith.constant 0 : index
    %c0_85 = arith.constant 0 : index
    %72 = vector.load %arg5[%c0_83, %c10, %c0_84, %c0_85] : memref<1x20x20x20xf32, #tpu.memory_space<vmem>>, vector<1x1x20x20xf32>
    %73 = vector.shape_cast %72 : vector<1x1x20x20xf32> to vector<20x20xf32>
    %cst_86 = arith.constant dense<0.000000e+00> : vector<24x20xf32>
    %74 = tpu.matmul %0, %73, %cst_86 {dimension_numbers = #tpu.dot_dimension_numbers<[1], [0], [0], [1], [0, 0, 1, 1], [], []>} : vector<24x20xf32>, vector<20x20xf32>, vector<24x20xf32> -> vector<24x20xf32>
    %cst_87 = arith.constant dense<0.000000e+00> : vector<24x40xf32>
    %75 = tpu.matmul %74, %1, %cst_87 {dimension_numbers = #tpu.dot_dimension_numbers<[1], [0], [0], [1], [0, 0, 1, 1], [], []>} : vector<24x20xf32>, vector<20x40xf32>, vector<24x40xf32> -> vector<24x40xf32>
    %c10_88 = arith.constant 10 : index
    %c0_89 = arith.constant 0 : index
    %c0_90 = arith.constant 0 : index
    %76 = vector.load %arg8[%c10_88, %c0_89, %c0_90] : memref<20x24x40xf32, #tpu.memory_space<vmem>>, vector<1x24x40xf32>
    %77 = vector.shape_cast %76 : vector<1x24x40xf32> to vector<24x40xf32>
    %78 = vector.shape_cast %75 : vector<24x40xf32> to vector<1x24x40xf32>
    tpu.vector_store %arg8[%c10_88, %c0_89, %c0_90], %78 {strides = array<i32>} : memref<20x24x40xf32, #tpu.memory_space<vmem>>, vector<1x24x40xf32>,
    %c0_91 = arith.constant 0 : index
    %c11 = arith.constant 11 : index
    %c0_92 = arith.constant 0 : index
    %c0_93 = arith.constant 0 : index
    %79 = vector.load %arg5[%c0_91, %c11, %c0_92, %c0_93] : memref<1x20x20x20xf32, #tpu.memory_space<vmem>>, vector<1x1x20x20xf32>
    %80 = vector.shape_cast %79 : vector<1x1x20x20xf32> to vector<20x20xf32>
    %cst_94 = arith.constant dense<0.000000e+00> : vector<24x20xf32>
    %81 = tpu.matmul %0, %80, %cst_94 {dimension_numbers = #tpu.dot_dimension_numbers<[1], [0], [0], [1], [0, 0, 1, 1], [], []>} : vector<24x20xf32>, vector<20x20xf32>, vector<24x20xf32> -> vector<24x20xf32>
    %cst_95 = arith.constant dense<0.000000e+00> : vector<24x40xf32>
    %82 = tpu.matmul %81, %1, %cst_95 {dimension_numbers = #tpu.dot_dimension_numbers<[1], [0], [0], [1], [0, 0, 1, 1], [], []>} : vector<24x20xf32>, vector<20x40xf32>, vector<24x40xf32> -> vector<24x40xf32>
    %c11_96 = arith.constant 11 : index
    %c0_97 = arith.constant 0 : index
    %c0_98 = arith.constant 0 : index
    %83 = vector.load %arg8[%c11_96, %c0_97, %c0_98] : memref<20x24x40xf32, #tpu.memory_space<vmem>>, vector<1x24x40xf32>
    %84 = vector.shape_cast %83 : vector<1x24x40xf32> to vector<24x40xf32>
    %85 = vector.shape_cast %82 : vector<24x40xf32> to vector<1x24x40xf32>
    tpu.vector_store %arg8[%c11_96, %c0_97, %c0_98], %85 {strides = array<i32>} : memref<20x24x40xf32, #tpu.memory_space<vmem>>, vector<1x24x40xf32>,
    %c0_99 = arith.constant 0 : index
    %c12 = arith.constant 12 : index
    %c0_100 = arith.constant 0 : index
    %c0_101 = arith.constant 0 : index
    %86 = vector.load %arg5[%c0_99, %c12, %c0_100, %c0_101] : memref<1x20x20x20xf32, #tpu.memory_space<vmem>>, vector<1x1x20x20xf32>
    %87 = vector.shape_cast %86 : vector<1x1x20x20xf32> to vector<20x20xf32>
    %cst_102 = arith.constant dense<0.000000e+00> : vector<24x20xf32>
    %88 = tpu.matmul %0, %87, %cst_102 {dimension_numbers = #tpu.dot_dimension_numbers<[1], [0], [0], [1], [0, 0, 1, 1], [], []>} : vector<24x20xf32>, vector<20x20xf32>, vector<24x20xf32> -> vector<24x20xf32>
    %cst_103 = arith.constant dense<0.000000e+00> : vector<24x40xf32>
    %89 = tpu.matmul %88, %1, %cst_103 {dimension_numbers = #tpu.dot_dimension_numbers<[1], [0], [0], [1], [0, 0, 1, 1], [], []>} : vector<24x20xf32>, vector<20x40xf32>, vector<24x40xf32> -> vector<24x40xf32>
    %c12_104 = arith.constant 12 : index
    %c0_105 = arith.constant 0 : index
    %c0_106 = arith.constant 0 : index
    %90 = vector.load %arg8[%c12_104, %c0_105, %c0_106] : memref<20x24x40xf32, #tpu.memory_space<vmem>>, vector<1x24x40xf32>
    %91 = vector.shape_cast %90 : vector<1x24x40xf32> to vector<24x40xf32>
    %92 = vector.shape_cast %89 : vector<24x40xf32> to vector<1x24x40xf32>
    tpu.vector_store %arg8[%c12_104, %c0_105, %c0_106], %92 {strides = array<i32>} : memref<20x24x40xf32, #tpu.memory_space<vmem>>, vector<1x24x40xf32>,
    %c0_107 = arith.constant 0 : index
    %c13 = arith.constant 13 : index
    %c0_108 = arith.constant 0 : index
    %c0_109 = arith.constant 0 : index
    %93 = vector.load %arg5[%c0_107, %c13, %c0_108, %c0_109] : memref<1x20x20x20xf32, #tpu.memory_space<vmem>>, vector<1x1x20x20xf32>
    %94 = vector.shape_cast %93 : vector<1x1x20x20xf32> to vector<20x20xf32>
    %cst_110 = arith.constant dense<0.000000e+00> : vector<24x20xf32>
    %95 = tpu.matmul %0, %94, %cst_110 {dimension_numbers = #tpu.dot_dimension_numbers<[1], [0], [0], [1], [0, 0, 1, 1], [], []>} : vector<24x20xf32>, vector<20x20xf32>, vector<24x20xf32> -> vector<24x20xf32>
    %cst_111 = arith.constant dense<0.000000e+00> : vector<24x40xf32>
    %96 = tpu.matmul %95, %1, %cst_111 {dimension_numbers = #tpu.dot_dimension_numbers<[1], [0], [0], [1], [0, 0, 1, 1], [], []>} : vector<24x20xf32>, vector<20x40xf32>, vector<24x40xf32> -> vector<24x40xf32>
    %c13_112 = arith.constant 13 : index
    %c0_113 = arith.constant 0 : index
    %c0_114 = arith.constant 0 : index
    %97 = vector.load %arg8[%c13_112, %c0_113, %c0_114] : memref<20x24x40xf32, #tpu.memory_space<vmem>>, vector<1x24x40xf32>
    %98 = vector.shape_cast %97 : vector<1x24x40xf32> to vector<24x40xf32>
    %99 = vector.shape_cast %96 : vector<24x40xf32> to vector<1x24x40xf32>
    tpu.vector_store %arg8[%c13_112, %c0_113, %c0_114], %99 {strides = array<i32>} : memref<20x24x40xf32, #tpu.memory_space<vmem>>, vector<1x24x40xf32>,
    %c0_115 = arith.constant 0 : index
    %c14 = arith.constant 14 : index
    %c0_116 = arith.constant 0 : index
    %c0_117 = arith.constant 0 : index
    %100 = vector.load %arg5[%c0_115, %c14, %c0_116, %c0_117] : memref<1x20x20x20xf32, #tpu.memory_space<vmem>>, vector<1x1x20x20xf32>
    %101 = vector.shape_cast %100 : vector<1x1x20x20xf32> to vector<20x20xf32>
    %cst_118 = arith.constant dense<0.000000e+00> : vector<24x20xf32>
    %102 = tpu.matmul %0, %101, %cst_118 {dimension_numbers = #tpu.dot_dimension_numbers<[1], [0], [0], [1], [0, 0, 1, 1], [], []>} : vector<24x20xf32>, vector<20x20xf32>, vector<24x20xf32> -> vector<24x20xf32>
    %cst_119 = arith.constant dense<0.000000e+00> : vector<24x40xf32>
    %103 = tpu.matmul %102, %1, %cst_119 {dimension_numbers = #tpu.dot_dimension_numbers<[1], [0], [0], [1], [0, 0, 1, 1], [], []>} : vector<24x20xf32>, vector<20x40xf32>, vector<24x40xf32> -> vector<24x40xf32>
    %c14_120 = arith.constant 14 : index
    %c0_121 = arith.constant 0 : index
    %c0_122 = arith.constant 0 : index
    %104 = vector.load %arg8[%c14_120, %c0_121, %c0_122] : memref<20x24x40xf32, #tpu.memory_space<vmem>>, vector<1x24x40xf32>
    %105 = vector.shape_cast %104 : vector<1x24x40xf32> to vector<24x40xf32>
    %106 = vector.shape_cast %103 : vector<24x40xf32> to vector<1x24x40xf32>
    tpu.vector_store %arg8[%c14_120, %c0_121, %c0_122], %106 {strides = array<i32>} : memref<20x24x40xf32, #tpu.memory_space<vmem>>, vector<1x24x40xf32>,
    %c0_123 = arith.constant 0 : index
    %c15 = arith.constant 15 : index
    %c0_124 = arith.constant 0 : index
    %c0_125 = arith.constant 0 : index
    %107 = vector.load %arg5[%c0_123, %c15, %c0_124, %c0_125] : memref<1x20x20x20xf32, #tpu.memory_space<vmem>>, vector<1x1x20x20xf32>
    %108 = vector.shape_cast %107 : vector<1x1x20x20xf32> to vector<20x20xf32>
    %cst_126 = arith.constant dense<0.000000e+00> : vector<24x20xf32>
    %109 = tpu.matmul %0, %108, %cst_126 {dimension_numbers = #tpu.dot_dimension_numbers<[1], [0], [0], [1], [0, 0, 1, 1], [], []>} : vector<24x20xf32>, vector<20x20xf32>, vector<24x20xf32> -> vector<24x20xf32>
    %cst_127 = arith.constant dense<0.000000e+00> : vector<24x40xf32>
    %110 = tpu.matmul %109, %1, %cst_127 {dimension_numbers = #tpu.dot_dimension_numbers<[1], [0], [0], [1], [0, 0, 1, 1], [], []>} : vector<24x20xf32>, vector<20x40xf32>, vector<24x40xf32> -> vector<24x40xf32>
    %c15_128 = arith.constant 15 : index
    %c0_129 = arith.constant 0 : index
    %c0_130 = arith.constant 0 : index
    %111 = vector.load %arg8[%c15_128, %c0_129, %c0_130] : memref<20x24x40xf32, #tpu.memory_space<vmem>>, vector<1x24x40xf32>
    %112 = vector.shape_cast %111 : vector<1x24x40xf32> to vector<24x40xf32>
    %113 = vector.shape_cast %110 : vector<24x40xf32> to vector<1x24x40xf32>
    tpu.vector_store %arg8[%c15_128, %c0_129, %c0_130], %113 {strides = array<i32>} : memref<20x24x40xf32, #tpu.memory_space<vmem>>, vector<1x24x40xf32>,
    %c0_131 = arith.constant 0 : index
    %c16 = arith.constant 16 : index
    %c0_132 = arith.constant 0 : index
    %c0_133 = arith.constant 0 : index
    %114 = vector.load %arg5[%c0_131, %c16, %c0_132, %c0_133] : memref<1x20x20x20xf32, #tpu.memory_space<vmem>>, vector<1x1x20x20xf32>
    %115 = vector.shape_cast %114 : vector<1x1x20x20xf32> to vector<20x20xf32>
    %cst_134 = arith.constant dense<0.000000e+00> : vector<24x20xf32>
    %116 = tpu.matmul %0, %115, %cst_134 {dimension_numbers = #tpu.dot_dimension_numbers<[1], [0], [0], [1], [0, 0, 1, 1], [], []>} : vector<24x20xf32>, vector<20x20xf32>, vector<24x20xf32> -> vector<24x20xf32>
    %cst_135 = arith.constant dense<0.000000e+00> : vector<24x40xf32>
    %117 = tpu.matmul %116, %1, %cst_135 {dimension_numbers = #tpu.dot_dimension_numbers<[1], [0], [0], [1], [0, 0, 1, 1], [], []>} : vector<24x20xf32>, vector<20x40xf32>, vector<24x40xf32> -> vector<24x40xf32>
    %c16_136 = arith.constant 16 : index
    %c0_137 = arith.constant 0 : index
    %c0_138 = arith.constant 0 : index
    %118 = vector.load %arg8[%c16_136, %c0_137, %c0_138] : memref<20x24x40xf32, #tpu.memory_space<vmem>>, vector<1x24x40xf32>
    %119 = vector.shape_cast %118 : vector<1x24x40xf32> to vector<24x40xf32>
    %120 = vector.shape_cast %117 : vector<24x40xf32> to vector<1x24x40xf32>
    tpu.vector_store %arg8[%c16_136, %c0_137, %c0_138], %120 {strides = array<i32>} : memref<20x24x40xf32, #tpu.memory_space<vmem>>, vector<1x24x40xf32>,
    %c0_139 = arith.constant 0 : index
    %c17 = arith.constant 17 : index
    %c0_140 = arith.constant 0 : index
    %c0_141 = arith.constant 0 : index
    %121 = vector.load %arg5[%c0_139, %c17, %c0_140, %c0_141] : memref<1x20x20x20xf32, #tpu.memory_space<vmem>>, vector<1x1x20x20xf32>
    %122 = vector.shape_cast %121 : vector<1x1x20x20xf32> to vector<20x20xf32>
    %cst_142 = arith.constant dense<0.000000e+00> : vector<24x20xf32>
    %123 = tpu.matmul %0, %122, %cst_142 {dimension_numbers = #tpu.dot_dimension_numbers<[1], [0], [0], [1], [0, 0, 1, 1], [], []>} : vector<24x20xf32>, vector<20x20xf32>, vector<24x20xf32> -> vector<24x20xf32>
    %cst_143 = arith.constant dense<0.000000e+00> : vector<24x40xf32>
    %124 = tpu.matmul %123, %1, %cst_143 {dimension_numbers = #tpu.dot_dimension_numbers<[1], [0], [0], [1], [0, 0, 1, 1], [], []>} : vector<24x20xf32>, vector<20x40xf32>, vector<24x40xf32> -> vector<24x40xf32>
    %c17_144 = arith.constant 17 : index
    %c0_145 = arith.constant 0 : index
    %c0_146 = arith.constant 0 : index
    %125 = vector.load %arg8[%c17_144, %c0_145, %c0_146] : memref<20x24x40xf32, #tpu.memory_space<vmem>>, vector<1x24x40xf32>
    %126 = vector.shape_cast %125 : vector<1x24x40xf32> to vector<24x40xf32>
    %127 = vector.shape_cast %124 : vector<24x40xf32> to vector<1x24x40xf32>
    tpu.vector_store %arg8[%c17_144, %c0_145, %c0_146], %127 {strides = array<i32>} : memref<20x24x40xf32, #tpu.memory_space<vmem>>, vector<1x24x40xf32>,
    %c0_147 = arith.constant 0 : index
    %c18 = arith.constant 18 : index
    %c0_148 = arith.constant 0 : index
    %c0_149 = arith.constant 0 : index
    %128 = vector.load %arg5[%c0_147, %c18, %c0_148, %c0_149] : memref<1x20x20x20xf32, #tpu.memory_space<vmem>>, vector<1x1x20x20xf32>
    %129 = vector.shape_cast %128 : vector<1x1x20x20xf32> to vector<20x20xf32>
    %cst_150 = arith.constant dense<0.000000e+00> : vector<24x20xf32>
    %130 = tpu.matmul %0, %129, %cst_150 {dimension_numbers = #tpu.dot_dimension_numbers<[1], [0], [0], [1], [0, 0, 1, 1], [], []>} : vector<24x20xf32>, vector<20x20xf32>, vector<24x20xf32> -> vector<24x20xf32>
    %cst_151 = arith.constant dense<0.000000e+00> : vector<24x40xf32>
    %131 = tpu.matmul %130, %1, %cst_151 {dimension_numbers = #tpu.dot_dimension_numbers<[1], [0], [0], [1], [0, 0, 1, 1], [], []>} : vector<24x20xf32>, vector<20x40xf32>, vector<24x40xf32> -> vector<24x40xf32>
    %c18_152 = arith.constant 18 : index
    %c0_153 = arith.constant 0 : index
    %c0_154 = arith.constant 0 : index
    %132 = vector.load %arg8[%c18_152, %c0_153, %c0_154] : memref<20x24x40xf32, #tpu.memory_space<vmem>>, vector<1x24x40xf32>
    %133 = vector.shape_cast %132 : vector<1x24x40xf32> to vector<24x40xf32>
    %134 = vector.shape_cast %131 : vector<24x40xf32> to vector<1x24x40xf32>
    tpu.vector_store %arg8[%c18_152, %c0_153, %c0_154], %134 {strides = array<i32>} : memref<20x24x40xf32, #tpu.memory_space<vmem>>, vector<1x24x40xf32>,
    %c0_155 = arith.constant 0 : index
    %c19 = arith.constant 19 : index
    %c0_156 = arith.constant 0 : index
    %c0_157 = arith.constant 0 : index
    %135 = vector.load %arg5[%c0_155, %c19, %c0_156, %c0_157] : memref<1x20x20x20xf32, #tpu.memory_space<vmem>>, vector<1x1x20x20xf32>
    %136 = vector.shape_cast %135 : vector<1x1x20x20xf32> to vector<20x20xf32>
    %cst_158 = arith.constant dense<0.000000e+00> : vector<24x20xf32>
    %137 = tpu.matmul %0, %136, %cst_158 {dimension_numbers = #tpu.dot_dimension_numbers<[1], [0], [0], [1], [0, 0, 1, 1], [], []>} : vector<24x20xf32>, vector<20x20xf32>, vector<24x20xf32> -> vector<24x20xf32>
    %cst_159 = arith.constant dense<0.000000e+00> : vector<24x40xf32>
    %138 = tpu.matmul %137, %1, %cst_159 {dimension_numbers = #tpu.dot_dimension_numbers<[1], [0], [0], [1], [0, 0, 1, 1], [], []>} : vector<24x20xf32>, vector<20x40xf32>, vector<24x40xf32> -> vector<24x40xf32>
    %c19_160 = arith.constant 19 : index
    %c0_161 = arith.constant 0 : index
    %c0_162 = arith.constant 0 : index
    %139 = vector.load %arg8[%c19_160, %c0_161, %c0_162] : memref<20x24x40xf32, #tpu.memory_space<vmem>>, vector<1x24x40xf32>
    %140 = vector.shape_cast %139 : vector<1x24x40xf32> to vector<24x40xf32>
    %141 = vector.shape_cast %138 : vector<24x40xf32> to vector<1x24x40xf32>
    tpu.vector_store %arg8[%c19_160, %c0_161, %c0_162], %141 {strides = array<i32>} : memref<20x24x40xf32, #tpu.memory_space<vmem>>, vector<1x24x40xf32>,
    %c0_163 = arith.constant 0 : index
    %c0_164 = arith.constant 0 : index
    %c0_165 = arith.constant 0 : index
    %142 = vector.load %arg6[%c0_163, %c0_164, %c0_165] : memref<1x24x40xi32, #tpu.memory_space<vmem>>, vector<1x24x40xi32>
    %143 = vector.shape_cast %142 : vector<1x24x40xi32> to vector<24x40xi32>
    %c1_i32 = arith.constant 1 : i32
    %144 = arith.muli %arg1, %c1_i32 : i32
    %145 = arith.addi %144, %arg2 : i32
    %c24_i32 = arith.constant 24 : i32
    %146 = arith.muli %145, %c24_i32 : i32
    %147 = tpu.iota {dimensions = array<i32: 0>} : vector<24x40xi32>
    %148 = vector.broadcast %146 : i32 to vector<24x40xi32>
    %149 = arith.addi %148, %147 : vector<24x40xi32>
    %c40_i32 = arith.constant 40 : i32
    %150 = vector.broadcast %c40_i32 : i32 to vector<24x40xi32>
    %151 = arith.cmpi slt, %149, %150 : vector<24x40xi32>
    %c0_i32 = arith.constant 0 : i32
    %152 = arith.cmpi eq, %arg2, %c0_i32 : i32
    %c255_i32 = arith.constant 255 : i32
    %153 = vector.broadcast %c255_i32 : i32 to vector<24x40xi32>
    %154 = arith.cmpi ne, %143, %153 : vector<24x40xi32>
    %155 = arith.andi %154, %151 : vector<24x40xi1>
    %c0_166 = arith.constant 0 : index
    %c0_167 = arith.constant 0 : index
    %c0_168 = arith.constant 0 : index
    %156 = vector.load %arg8[%c0_166, %c0_167, %c0_168] : memref<20x24x40xf32, #tpu.memory_space<vmem>>, vector<1x24x40xf32>
    %157 = vector.shape_cast %156 : vector<1x24x40xf32> to vector<24x40xf32>
    %c1_169 = arith.constant 1 : index
    %c0_170 = arith.constant 0 : index
    %c0_171 = arith.constant 0 : index
    %158 = vector.load %arg8[%c1_169, %c0_170, %c0_171] : memref<20x24x40xf32, #tpu.memory_space<vmem>>, vector<1x24x40xf32>
    %159 = vector.shape_cast %158 : vector<1x24x40xf32> to vector<24x40xf32>
    %160 = arith.maximumf %157, %159 : vector<24x40xf32>
    %c2_172 = arith.constant 2 : index
    %c0_173 = arith.constant 0 : index
    %c0_174 = arith.constant 0 : index
    %161 = vector.load %arg8[%c2_172, %c0_173, %c0_174] : memref<20x24x40xf32, #tpu.memory_space<vmem>>, vector<1x24x40xf32>
    %162 = vector.shape_cast %161 : vector<1x24x40xf32> to vector<24x40xf32>
    %163 = arith.maximumf %160, %162 : vector<24x40xf32>
    %c3_175 = arith.constant 3 : index
    %c0_176 = arith.constant 0 : index
    %c0_177 = arith.constant 0 : index
    %164 = vector.load %arg8[%c3_175, %c0_176, %c0_177] : memref<20x24x40xf32, #tpu.memory_space<vmem>>, vector<1x24x40xf32>
    %165 = vector.shape_cast %164 : vector<1x24x40xf32> to vector<24x40xf32>
    %166 = arith.maximumf %163, %165 : vector<24x40xf32>
    %c4_178 = arith.constant 4 : index
    %c0_179 = arith.constant 0 : index
    %c0_180 = arith.constant 0 : index
    %167 = vector.load %arg8[%c4_178, %c0_179, %c0_180] : memref<20x24x40xf32, #tpu.memory_space<vmem>>, vector<1x24x40xf32>
    %168 = vector.shape_cast %167 : vector<1x24x40xf32> to vector<24x40xf32>
    %169 = arith.maximumf %166, %168 : vector<24x40xf32>
    %c5_181 = arith.constant 5 : index
    %c0_182 = arith.constant 0 : index
    %c0_183 = arith.constant 0 : index
    %170 = vector.load %arg8[%c5_181, %c0_182, %c0_183] : memref<20x24x40xf32, #tpu.memory_space<vmem>>, vector<1x24x40xf32>
    %171 = vector.shape_cast %170 : vector<1x24x40xf32> to vector<24x40xf32>
    %172 = arith.maximumf %169, %171 : vector<24x40xf32>
    %c6_184 = arith.constant 6 : index
    %c0_185 = arith.constant 0 : index
    %c0_186 = arith.constant 0 : index
    %173 = vector.load %arg8[%c6_184, %c0_185, %c0_186] : memref<20x24x40xf32, #tpu.memory_space<vmem>>, vector<1x24x40xf32>
    %174 = vector.shape_cast %173 : vector<1x24x40xf32> to vector<24x40xf32>
    %175 = arith.maximumf %172, %174 : vector<24x40xf32>
    %c7_187 = arith.constant 7 : index
    %c0_188 = arith.constant 0 : index
    %c0_189 = arith.constant 0 : index
    %176 = vector.load %arg8[%c7_187, %c0_188, %c0_189] : memref<20x24x40xf32, #tpu.memory_space<vmem>>, vector<1x24x40xf32>
    %177 = vector.shape_cast %176 : vector<1x24x40xf32> to vector<24x40xf32>
    %178 = arith.maximumf %175, %177 : vector<24x40xf32>
    %c8_190 = arith.constant 8 : index
    %c0_191 = arith.constant 0 : index
    %c0_192 = arith.constant 0 : index
    %179 = vector.load %arg8[%c8_190, %c0_191, %c0_192] : memref<20x24x40xf32, #tpu.memory_space<vmem>>, vector<1x24x40xf32>
    %180 = vector.shape_cast %179 : vector<1x24x40xf32> to vector<24x40xf32>
    %181 = arith.maximumf %178, %180 : vector<24x40xf32>
    %c9_193 = arith.constant 9 : index
    %c0_194 = arith.constant 0 : index
    %c0_195 = arith.constant 0 : index
    %182 = vector.load %arg8[%c9_193, %c0_194, %c0_195] : memref<20x24x40xf32, #tpu.memory_space<vmem>>, vector<1x24x40xf32>
    %183 = vector.shape_cast %182 : vector<1x24x40xf32> to vector<24x40xf32>
    %184 = arith.maximumf %181, %183 : vector<24x40xf32>
    %c10_196 = arith.constant 10 : index
    %c0_197 = arith.constant 0 : index
    %c0_198 = arith.constant 0 : index
    %185 = vector.load %arg8[%c10_196, %c0_197, %c0_198] : memref<20x24x40xf32, #tpu.memory_space<vmem>>, vector<1x24x40xf32>
    %186 = vector.shape_cast %185 : vector<1x24x40xf32> to vector<24x40xf32>
    %187 = arith.maximumf %184, %186 : vector<24x40xf32>
    %c11_199 = arith.constant 11 : index
    %c0_200 = arith.constant 0 : index
    %c0_201 = arith.constant 0 : index
    %188 = vector.load %arg8[%c11_199, %c0_200, %c0_201] : memref<20x24x40xf32, #tpu.memory_space<vmem>>, vector<1x24x40xf32>
    %189 = vector.shape_cast %188 : vector<1x24x40xf32> to vector<24x40xf32>
    %190 = arith.maximumf %187, %189 : vector<24x40xf32>
    %c12_202 = arith.constant 12 : index
    %c0_203 = arith.constant 0 : index
    %c0_204 = arith.constant 0 : index
    %191 = vector.load %arg8[%c12_202, %c0_203, %c0_204] : memref<20x24x40xf32, #tpu.memory_space<vmem>>, vector<1x24x40xf32>
    %192 = vector.shape_cast %191 : vector<1x24x40xf32> to vector<24x40xf32>
    %193 = arith.maximumf %190, %192 : vector<24x40xf32>
    %c13_205 = arith.constant 13 : index
    %c0_206 = arith.constant 0 : index
    %c0_207 = arith.constant 0 : index
    %194 = vector.load %arg8[%c13_205, %c0_206, %c0_207] : memref<20x24x40xf32, #tpu.memory_space<vmem>>, vector<1x24x40xf32>
    %195 = vector.shape_cast %194 : vector<1x24x40xf32> to vector<24x40xf32>
    %196 = arith.maximumf %193, %195 : vector<24x40xf32>
    %c14_208 = arith.constant 14 : index
    %c0_209 = arith.constant 0 : index
    %c0_210 = arith.constant 0 : index
    %197 = vector.load %arg8[%c14_208, %c0_209, %c0_210] : memref<20x24x40xf32, #tpu.memory_space<vmem>>, vector<1x24x40xf32>
    %198 = vector.shape_cast %197 : vector<1x24x40xf32> to vector<24x40xf32>
    %199 = arith.maximumf %196, %198 : vector<24x40xf32>
    %c15_211 = arith.constant 15 : index
    %c0_212 = arith.constant 0 : index
    %c0_213 = arith.constant 0 : index
    %200 = vector.load %arg8[%c15_211, %c0_212, %c0_213] : memref<20x24x40xf32, #tpu.memory_space<vmem>>, vector<1x24x40xf32>
    %201 = vector.shape_cast %200 : vector<1x24x40xf32> to vector<24x40xf32>
    %202 = arith.maximumf %199, %201 : vector<24x40xf32>
    %c16_214 = arith.constant 16 : index
    %c0_215 = arith.constant 0 : index
    %c0_216 = arith.constant 0 : index
    %203 = vector.load %arg8[%c16_214, %c0_215, %c0_216] : memref<20x24x40xf32, #tpu.memory_space<vmem>>, vector<1x24x40xf32>
    %204 = vector.shape_cast %203 : vector<1x24x40xf32> to vector<24x40xf32>
    %205 = arith.maximumf %202, %204 : vector<24x40xf32>
    %c17_217 = arith.constant 17 : index
    %c0_218 = arith.constant 0 : index
    %c0_219 = arith.constant 0 : index
    %206 = vector.load %arg8[%c17_217, %c0_218, %c0_219] : memref<20x24x40xf32, #tpu.memory_space<vmem>>, vector<1x24x40xf32>
    %207 = vector.shape_cast %206 : vector<1x24x40xf32> to vector<24x40xf32>
    %208 = arith.maximumf %205, %207 : vector<24x40xf32>
    %c18_220 = arith.constant 18 : index
    %c0_221 = arith.constant 0 : index
    %c0_222 = arith.constant 0 : index
    %209 = vector.load %arg8[%c18_220, %c0_221, %c0_222] : memref<20x24x40xf32, #tpu.memory_space<vmem>>, vector<1x24x40xf32>
    %210 = vector.shape_cast %209 : vector<1x24x40xf32> to vector<24x40xf32>
    %211 = arith.maximumf %208, %210 : vector<24x40xf32>
    %c19_223 = arith.constant 19 : index
    %c0_224 = arith.constant 0 : index
    %c0_225 = arith.constant 0 : index
    %212 = vector.load %arg8[%c19_223, %c0_224, %c0_225] : memref<20x24x40xf32, #tpu.memory_space<vmem>>, vector<1x24x40xf32>
    %213 = vector.shape_cast %212 : vector<1x24x40xf32> to vector<24x40xf32>
    %214 = arith.maximumf %211, %213 : vector<24x40xf32>
    %cst_226 = arith.constant 0.000000e+00 : f32
    %215 = vector.broadcast %cst_226 : f32 to vector<24x40xf32>
    %cst_227 = arith.constant 0.000000e+00 : f32
    %216 = vector.broadcast %cst_227 : f32 to vector<24x40xf32>
    %c0_228 = arith.constant 0 : index
    %c0_229 = arith.constant 0 : index
    %c0_230 = arith.constant 0 : index
    %217 = vector.load %arg8[%c0_228, %c0_229, %c0_230] : memref<20x24x40xf32, #tpu.memory_space<vmem>>, vector<1x24x40xf32>
    %218 = vector.shape_cast %217 : vector<1x24x40xf32> to vector<24x40xf32>
    %219 = arith.subf %218, %214 : vector<24x40xf32>
    %220 = math.exp %219 : vector<24x40xf32>
    %221 = arith.addf %215, %220 : vector<24x40xf32>
    %c0_i32_231 = arith.constant 0 : i32
    %222 = vector.broadcast %c0_i32_231 : i32 to vector<24x40xi32>
    %223 = arith.cmpi eq, %143, %222 : vector<24x40xi32>
    %cst_232 = arith.constant 0.000000e+00 : f32
    %224 = vector.broadcast %cst_232 : f32 to vector<24x40xf32>
    %225 = arith.select %223, %218, %224 : vector<24x40xi1>, vector<24x40xf32>
    %226 = arith.addf %216, %225 : vector<24x40xf32>
    %c1_233 = arith.constant 1 : index
    %c0_234 = arith.constant 0 : index
    %c0_235 = arith.constant 0 : index
    %227 = vector.load %arg8[%c1_233, %c0_234, %c0_235] : memref<20x24x40xf32, #tpu.memory_space<vmem>>, vector<1x24x40xf32>
    %228 = vector.shape_cast %227 : vector<1x24x40xf32> to vector<24x40xf32>
    %229 = arith.subf %228, %214 : vector<24x40xf32>
    %230 = math.exp %229 : vector<24x40xf32>
    %231 = arith.addf %221, %230 : vector<24x40xf32>
    %c1_i32_236 = arith.constant 1 : i32
    %232 = vector.broadcast %c1_i32_236 : i32 to vector<24x40xi32>
    %233 = arith.cmpi eq, %143, %232 : vector<24x40xi32>
    %cst_237 = arith.constant 0.000000e+00 : f32
    %234 = vector.broadcast %cst_237 : f32 to vector<24x40xf32>
    %235 = arith.select %233, %228, %234 : vector<24x40xi1>, vector<24x40xf32>
    %236 = arith.addf %226, %235 : vector<24x40xf32>
    %c2_238 = arith.constant 2 : index
    %c0_239 = arith.constant 0 : index
    %c0_240 = arith.constant 0 : index
    %237 = vector.load %arg8[%c2_238, %c0_239, %c0_240] : memref<20x24x40xf32, #tpu.memory_space<vmem>>, vector<1x24x40xf32>
    %238 = vector.shape_cast %237 : vector<1x24x40xf32> to vector<24x40xf32>
    %239 = arith.subf %238, %214 : vector<24x40xf32>
    %240 = math.exp %239 : vector<24x40xf32>
    %241 = arith.addf %231, %240 : vector<24x40xf32>
    %c2_i32 = arith.constant 2 : i32
    %242 = vector.broadcast %c2_i32 : i32 to vector<24x40xi32>
    %243 = arith.cmpi eq, %143, %242 : vector<24x40xi32>
    %cst_241 = arith.constant 0.000000e+00 : f32
    %244 = vector.broadcast %cst_241 : f32 to vector<24x40xf32>
    %245 = arith.select %243, %238, %244 : vector<24x40xi1>, vector<24x40xf32>
    %246 = arith.addf %236, %245 : vector<24x40xf32>
    %c3_242 = arith.constant 3 : index
    %c0_243 = arith.constant 0 : index
    %c0_244 = arith.constant 0 : index
    %247 = vector.load %arg8[%c3_242, %c0_243, %c0_244] : memref<20x24x40xf32, #tpu.memory_space<vmem>>, vector<1x24x40xf32>
    %248 = vector.shape_cast %247 : vector<1x24x40xf32> to vector<24x40xf32>
    %249 = arith.subf %248, %214 : vector<24x40xf32>
    %250 = math.exp %249 : vector<24x40xf32>
    %251 = arith.addf %241, %250 : vector<24x40xf32>
    %c3_i32 = arith.constant 3 : i32
    %252 = vector.broadcast %c3_i32 : i32 to vector<24x40xi32>
    %253 = arith.cmpi eq, %143, %252 : vector<24x40xi32>
    %cst_245 = arith.constant 0.000000e+00 : f32
    %254 = vector.broadcast %cst_245 : f32 to vector<24x40xf32>
    %255 = arith.select %253, %248, %254 : vector<24x40xi1>, vector<24x40xf32>
    %256 = arith.addf %246, %255 : vector<24x40xf32>
    %c4_246 = arith.constant 4 : index
    %c0_247 = arith.constant 0 : index
    %c0_248 = arith.constant 0 : index
    %257 = vector.load %arg8[%c4_246, %c0_247, %c0_248] : memref<20x24x40xf32, #tpu.memory_space<vmem>>, vector<1x24x40xf32>
    %258 = vector.shape_cast %257 : vector<1x24x40xf32> to vector<24x40xf32>
    %259 = arith.subf %258, %214 : vector<24x40xf32>
    %260 = math.exp %259 : vector<24x40xf32>
    %261 = arith.addf %251, %260 : vector<24x40xf32>
    %c4_i32 = arith.constant 4 : i32
    %262 = vector.broadcast %c4_i32 : i32 to vector<24x40xi32>
    %263 = arith.cmpi eq, %143, %262 : vector<24x40xi32>
    %cst_249 = arith.constant 0.000000e+00 : f32
    %264 = vector.broadcast %cst_249 : f32 to vector<24x40xf32>
    %265 = arith.select %263, %258, %264 : vector<24x40xi1>, vector<24x40xf32>
    %266 = arith.addf %256, %265 : vector<24x40xf32>
    %c5_250 = arith.constant 5 : index
    %c0_251 = arith.constant 0 : index
    %c0_252 = arith.constant 0 : index
    %267 = vector.load %arg8[%c5_250, %c0_251, %c0_252] : memref<20x24x40xf32, #tpu.memory_space<vmem>>, vector<1x24x40xf32>
    %268 = vector.shape_cast %267 : vector<1x24x40xf32> to vector<24x40xf32>
    %269 = arith.subf %268, %214 : vector<24x40xf32>
    %270 = math.exp %269 : vector<24x40xf32>
    %271 = arith.addf %261, %270 : vector<24x40xf32>
    %c5_i32 = arith.constant 5 : i32
    %272 = vector.broadcast %c5_i32 : i32 to vector<24x40xi32>
    %273 = arith.cmpi eq, %143, %272 : vector<24x40xi32>
    %cst_253 = arith.constant 0.000000e+00 : f32
    %274 = vector.broadcast %cst_253 : f32 to vector<24x40xf32>
    %275 = arith.select %273, %268, %274 : vector<24x40xi1>, vector<24x40xf32>
    %276 = arith.addf %266, %275 : vector<24x40xf32>
    %c6_254 = arith.constant 6 : index
    %c0_255 = arith.constant 0 : index
    %c0_256 = arith.constant 0 : index
    %277 = vector.load %arg8[%c6_254, %c0_255, %c0_256] : memref<20x24x40xf32, #tpu.memory_space<vmem>>, vector<1x24x40xf32>
    %278 = vector.shape_cast %277 : vector<1x24x40xf32> to vector<24x40xf32>
    %279 = arith.subf %278, %214 : vector<24x40xf32>
    %280 = math.exp %279 : vector<24x40xf32>
    %281 = arith.addf %271, %280 : vector<24x40xf32>
    %c6_i32 = arith.constant 6 : i32
    %282 = vector.broadcast %c6_i32 : i32 to vector<24x40xi32>
    %283 = arith.cmpi eq, %143, %282 : vector<24x40xi32>
    %cst_257 = arith.constant 0.000000e+00 : f32
    %284 = vector.broadcast %cst_257 : f32 to vector<24x40xf32>
    %285 = arith.select %283, %278, %284 : vector<24x40xi1>, vector<24x40xf32>
    %286 = arith.addf %276, %285 : vector<24x40xf32>
    %c7_258 = arith.constant 7 : index
    %c0_259 = arith.constant 0 : index
    %c0_260 = arith.constant 0 : index
    %287 = vector.load %arg8[%c7_258, %c0_259, %c0_260] : memref<20x24x40xf32, #tpu.memory_space<vmem>>, vector<1x24x40xf32>
    %288 = vector.shape_cast %287 : vector<1x24x40xf32> to vector<24x40xf32>
    %289 = arith.subf %288, %214 : vector<24x40xf32>
    %290 = math.exp %289 : vector<24x40xf32>
    %291 = arith.addf %281, %290 : vector<24x40xf32>
    %c7_i32 = arith.constant 7 : i32
    %292 = vector.broadcast %c7_i32 : i32 to vector<24x40xi32>
    %293 = arith.cmpi eq, %143, %292 : vector<24x40xi32>
    %cst_261 = arith.constant 0.000000e+00 : f32
    %294 = vector.broadcast %cst_261 : f32 to vector<24x40xf32>
    %295 = arith.select %293, %288, %294 : vector<24x40xi1>, vector<24x40xf32>
    %296 = arith.addf %286, %295 : vector<24x40xf32>
    %c8_262 = arith.constant 8 : index
    %c0_263 = arith.constant 0 : index
    %c0_264 = arith.constant 0 : index
    %297 = vector.load %arg8[%c8_262, %c0_263, %c0_264] : memref<20x24x40xf32, #tpu.memory_space<vmem>>, vector<1x24x40xf32>
    %298 = vector.shape_cast %297 : vector<1x24x40xf32> to vector<24x40xf32>
    %299 = arith.subf %298, %214 : vector<24x40xf32>
    %300 = math.exp %299 : vector<24x40xf32>
    %301 = arith.addf %291, %300 : vector<24x40xf32>
    %c8_i32 = arith.constant 8 : i32
    %302 = vector.broadcast %c8_i32 : i32 to vector<24x40xi32>
    %303 = arith.cmpi eq, %143, %302 : vector<24x40xi32>
    %cst_265 = arith.constant 0.000000e+00 : f32
    %304 = vector.broadcast %cst_265 : f32 to vector<24x40xf32>
    %305 = arith.select %303, %298, %304 : vector<24x40xi1>, vector<24x40xf32>
    %306 = arith.addf %296, %305 : vector<24x40xf32>
    %c9_266 = arith.constant 9 : index
    %c0_267 = arith.constant 0 : index
    %c0_268 = arith.constant 0 : index
    %307 = vector.load %arg8[%c9_266, %c0_267, %c0_268] : memref<20x24x40xf32, #tpu.memory_space<vmem>>, vector<1x24x40xf32>
    %308 = vector.shape_cast %307 : vector<1x24x40xf32> to vector<24x40xf32>
    %309 = arith.subf %308, %214 : vector<24x40xf32>
    %310 = math.exp %309 : vector<24x40xf32>
    %311 = arith.addf %301, %310 : vector<24x40xf32>
    %c9_i32 = arith.constant 9 : i32
    %312 = vector.broadcast %c9_i32 : i32 to vector<24x40xi32>
    %313 = arith.cmpi eq, %143, %312 : vector<24x40xi32>
    %cst_269 = arith.constant 0.000000e+00 : f32
    %314 = vector.broadcast %cst_269 : f32 to vector<24x40xf32>
    %315 = arith.select %313, %308, %314 : vector<24x40xi1>, vector<24x40xf32>
    %316 = arith.addf %306, %315 : vector<24x40xf32>
    %c10_270 = arith.constant 10 : index
    %c0_271 = arith.constant 0 : index
    %c0_272 = arith.constant 0 : index
    %317 = vector.load %arg8[%c10_270, %c0_271, %c0_272] : memref<20x24x40xf32, #tpu.memory_space<vmem>>, vector<1x24x40xf32>
    %318 = vector.shape_cast %317 : vector<1x24x40xf32> to vector<24x40xf32>
    %319 = arith.subf %318, %214 : vector<24x40xf32>
    %320 = math.exp %319 : vector<24x40xf32>
    %321 = arith.addf %311, %320 : vector<24x40xf32>
    %c10_i32 = arith.constant 10 : i32
    %322 = vector.broadcast %c10_i32 : i32 to vector<24x40xi32>
    %323 = arith.cmpi eq, %143, %322 : vector<24x40xi32>
    %cst_273 = arith.constant 0.000000e+00 : f32
    %324 = vector.broadcast %cst_273 : f32 to vector<24x40xf32>
    %325 = arith.select %323, %318, %324 : vector<24x40xi1>, vector<24x40xf32>
    %326 = arith.addf %316, %325 : vector<24x40xf32>
    %c11_274 = arith.constant 11 : index
    %c0_275 = arith.constant 0 : index
    %c0_276 = arith.constant 0 : index
    %327 = vector.load %arg8[%c11_274, %c0_275, %c0_276] : memref<20x24x40xf32, #tpu.memory_space<vmem>>, vector<1x24x40xf32>
    %328 = vector.shape_cast %327 : vector<1x24x40xf32> to vector<24x40xf32>
    %329 = arith.subf %328, %214 : vector<24x40xf32>
    %330 = math.exp %329 : vector<24x40xf32>
    %331 = arith.addf %321, %330 : vector<24x40xf32>
    %c11_i32 = arith.constant 11 : i32
    %332 = vector.broadcast %c11_i32 : i32 to vector<24x40xi32>
    %333 = arith.cmpi eq, %143, %332 : vector<24x40xi32>
    %cst_277 = arith.constant 0.000000e+00 : f32
    %334 = vector.broadcast %cst_277 : f32 to vector<24x40xf32>
    %335 = arith.select %333, %328, %334 : vector<24x40xi1>, vector<24x40xf32>
    %336 = arith.addf %326, %335 : vector<24x40xf32>
    %c12_278 = arith.constant 12 : index
    %c0_279 = arith.constant 0 : index
    %c0_280 = arith.constant 0 : index
    %337 = vector.load %arg8[%c12_278, %c0_279, %c0_280] : memref<20x24x40xf32, #tpu.memory_space<vmem>>, vector<1x24x40xf32>
    %338 = vector.shape_cast %337 : vector<1x24x40xf32> to vector<24x40xf32>
    %339 = arith.subf %338, %214 : vector<24x40xf32>
    %340 = math.exp %339 : vector<24x40xf32>
    %341 = arith.addf %331, %340 : vector<24x40xf32>
    %c12_i32 = arith.constant 12 : i32
    %342 = vector.broadcast %c12_i32 : i32 to vector<24x40xi32>
    %343 = arith.cmpi eq, %143, %342 : vector<24x40xi32>
    %cst_281 = arith.constant 0.000000e+00 : f32
    %344 = vector.broadcast %cst_281 : f32 to vector<24x40xf32>
    %345 = arith.select %343, %338, %344 : vector<24x40xi1>, vector<24x40xf32>
    %346 = arith.addf %336, %345 : vector<24x40xf32>
    %c13_282 = arith.constant 13 : index
    %c0_283 = arith.constant 0 : index
    %c0_284 = arith.constant 0 : index
    %347 = vector.load %arg8[%c13_282, %c0_283, %c0_284] : memref<20x24x40xf32, #tpu.memory_space<vmem>>, vector<1x24x40xf32>
    %348 = vector.shape_cast %347 : vector<1x24x40xf32> to vector<24x40xf32>
    %349 = arith.subf %348, %214 : vector<24x40xf32>
    %350 = math.exp %349 : vector<24x40xf32>
    %351 = arith.addf %341, %350 : vector<24x40xf32>
    %c13_i32 = arith.constant 13 : i32
    %352 = vector.broadcast %c13_i32 : i32 to vector<24x40xi32>
    %353 = arith.cmpi eq, %143, %352 : vector<24x40xi32>
    %cst_285 = arith.constant 0.000000e+00 : f32
    %354 = vector.broadcast %cst_285 : f32 to vector<24x40xf32>
    %355 = arith.select %353, %348, %354 : vector<24x40xi1>, vector<24x40xf32>
    %356 = arith.addf %346, %355 : vector<24x40xf32>
    %c14_286 = arith.constant 14 : index
    %c0_287 = arith.constant 0 : index
    %c0_288 = arith.constant 0 : index
    %357 = vector.load %arg8[%c14_286, %c0_287, %c0_288] : memref<20x24x40xf32, #tpu.memory_space<vmem>>, vector<1x24x40xf32>
    %358 = vector.shape_cast %357 : vector<1x24x40xf32> to vector<24x40xf32>
    %359 = arith.subf %358, %214 : vector<24x40xf32>
    %360 = math.exp %359 : vector<24x40xf32>
    %361 = arith.addf %351, %360 : vector<24x40xf32>
    %c14_i32 = arith.constant 14 : i32
    %362 = vector.broadcast %c14_i32 : i32 to vector<24x40xi32>
    %363 = arith.cmpi eq, %143, %362 : vector<24x40xi32>
    %cst_289 = arith.constant 0.000000e+00 : f32
    %364 = vector.broadcast %cst_289 : f32 to vector<24x40xf32>
    %365 = arith.select %363, %358, %364 : vector<24x40xi1>, vector<24x40xf32>
    %366 = arith.addf %356, %365 : vector<24x40xf32>
    %c15_290 = arith.constant 15 : index
    %c0_291 = arith.constant 0 : index
    %c0_292 = arith.constant 0 : index
    %367 = vector.load %arg8[%c15_290, %c0_291, %c0_292] : memref<20x24x40xf32, #tpu.memory_space<vmem>>, vector<1x24x40xf32>
    %368 = vector.shape_cast %367 : vector<1x24x40xf32> to vector<24x40xf32>
    %369 = arith.subf %368, %214 : vector<24x40xf32>
    %370 = math.exp %369 : vector<24x40xf32>
    %371 = arith.addf %361, %370 : vector<24x40xf32>
    %c15_i32 = arith.constant 15 : i32
    %372 = vector.broadcast %c15_i32 : i32 to vector<24x40xi32>
    %373 = arith.cmpi eq, %143, %372 : vector<24x40xi32>
    %cst_293 = arith.constant 0.000000e+00 : f32
    %374 = vector.broadcast %cst_293 : f32 to vector<24x40xf32>
    %375 = arith.select %373, %368, %374 : vector<24x40xi1>, vector<24x40xf32>
    %376 = arith.addf %366, %375 : vector<24x40xf32>
    %c16_294 = arith.constant 16 : index
    %c0_295 = arith.constant 0 : index
    %c0_296 = arith.constant 0 : index
    %377 = vector.load %arg8[%c16_294, %c0_295, %c0_296] : memref<20x24x40xf32, #tpu.memory_space<vmem>>, vector<1x24x40xf32>
    %378 = vector.shape_cast %377 : vector<1x24x40xf32> to vector<24x40xf32>
    %379 = arith.subf %378, %214 : vector<24x40xf32>
    %380 = math.exp %379 : vector<24x40xf32>
    %381 = arith.addf %371, %380 : vector<24x40xf32>
    %c16_i32 = arith.constant 16 : i32
    %382 = vector.broadcast %c16_i32 : i32 to vector<24x40xi32>
    %383 = arith.cmpi eq, %143, %382 : vector<24x40xi32>
    %cst_297 = arith.constant 0.000000e+00 : f32
    %384 = vector.broadcast %cst_297 : f32 to vector<24x40xf32>
    %385 = arith.select %383, %378, %384 : vector<24x40xi1>, vector<24x40xf32>
    %386 = arith.addf %376, %385 : vector<24x40xf32>
    %c17_298 = arith.constant 17 : index
    %c0_299 = arith.constant 0 : index
    %c0_300 = arith.constant 0 : index
    %387 = vector.load %arg8[%c17_298, %c0_299, %c0_300] : memref<20x24x40xf32, #tpu.memory_space<vmem>>, vector<1x24x40xf32>
    %388 = vector.shape_cast %387 : vector<1x24x40xf32> to vector<24x40xf32>
    %389 = arith.subf %388, %214 : vector<24x40xf32>
    %390 = math.exp %389 : vector<24x40xf32>
    %391 = arith.addf %381, %390 : vector<24x40xf32>
    %c17_i32 = arith.constant 17 : i32
    %392 = vector.broadcast %c17_i32 : i32 to vector<24x40xi32>
    %393 = arith.cmpi eq, %143, %392 : vector<24x40xi32>
    %cst_301 = arith.constant 0.000000e+00 : f32
    %394 = vector.broadcast %cst_301 : f32 to vector<24x40xf32>
    %395 = arith.select %393, %388, %394 : vector<24x40xi1>, vector<24x40xf32>
    %396 = arith.addf %386, %395 : vector<24x40xf32>
    %c18_302 = arith.constant 18 : index
    %c0_303 = arith.constant 0 : index
    %c0_304 = arith.constant 0 : index
    %397 = vector.load %arg8[%c18_302, %c0_303, %c0_304] : memref<20x24x40xf32, #tpu.memory_space<vmem>>, vector<1x24x40xf32>
    %398 = vector.shape_cast %397 : vector<1x24x40xf32> to vector<24x40xf32>
    %399 = arith.subf %398, %214 : vector<24x40xf32>
    %400 = math.exp %399 : vector<24x40xf32>
    %401 = arith.addf %391, %400 : vector<24x40xf32>
    %c18_i32 = arith.constant 18 : i32
    %402 = vector.broadcast %c18_i32 : i32 to vector<24x40xi32>
    %403 = arith.cmpi eq, %143, %402 : vector<24x40xi32>
    %cst_305 = arith.constant 0.000000e+00 : f32
    %404 = vector.broadcast %cst_305 : f32 to vector<24x40xf32>
    %405 = arith.select %403, %398, %404 : vector<24x40xi1>, vector<24x40xf32>
    %406 = arith.addf %396, %405 : vector<24x40xf32>
    %c19_306 = arith.constant 19 : index
    %c0_307 = arith.constant 0 : index
    %c0_308 = arith.constant 0 : index
    %407 = vector.load %arg8[%c19_306, %c0_307, %c0_308] : memref<20x24x40xf32, #tpu.memory_space<vmem>>, vector<1x24x40xf32>
    %408 = vector.shape_cast %407 : vector<1x24x40xf32> to vector<24x40xf32>
    %409 = arith.subf %408, %214 : vector<24x40xf32>
    %410 = math.exp %409 : vector<24x40xf32>
    %411 = arith.addf %401, %410 : vector<24x40xf32>
    %c19_i32 = arith.constant 19 : i32
    %412 = vector.broadcast %c19_i32 : i32 to vector<24x40xi32>
    %413 = arith.cmpi eq, %143, %412 : vector<24x40xi32>
    %cst_309 = arith.constant 0.000000e+00 : f32
    %414 = vector.broadcast %cst_309 : f32 to vector<24x40xf32>
    %415 = arith.select %413, %408, %414 : vector<24x40xi1>, vector<24x40xf32>
    %416 = arith.addf %406, %415 : vector<24x40xf32>
    %417 = math.log %411 : vector<24x40xf32>
    %418 = arith.addf %417, %214 : vector<24x40xf32>
    %419 = arith.subf %418, %416 : vector<24x40xf32>
    %cst_310 = arith.constant 0.000000e+00 : f32
    %420 = vector.broadcast %cst_310 : f32 to vector<24x40xf32>
    %421 = arith.select %155, %419, %420 : vector<24x40xi1>, vector<24x40xf32>
    %c0_i32_311 = arith.constant 0 : i32
    %422 = vector.broadcast %c0_i32_311 : i32 to vector<24x40xi32>
    %423 = arith.cmpi eq, %143, %422 : vector<24x40xi32>
    %cst_312 = arith.constant 1.000000e+00 : f32
    %cst_313 = arith.constant 5.100000e+01 : f32
    %424 = vector.broadcast %cst_312 : f32 to vector<24x40xf32>
    %425 = vector.broadcast %cst_313 : f32 to vector<24x40xf32>
    %426 = arith.select %423, %424, %425 : vector<24x40xi1>, vector<24x40xf32>
    %427 = vector.shape_cast %421 : vector<24x40xf32> to vector<1x24x40xf32>
    %cst_314 = arith.constant dense<0.000000e+00> : vector<1xf32>
    %428 = vector.multi_reduction <add>, %427, %cst_314 [1, 2] : vector<1x24x40xf32> to vector<1xf32>
    %429 = vector.shape_cast %428 : vector<1xf32> to vector<1x1x1xf32>
    %430 = vector.extract %429[0, 0, 0] : f32 from vector<1x1x1xf32>
    %431 = arith.mulf %421, %426 : vector<24x40xf32>
    %432 = vector.shape_cast %431 : vector<24x40xf32> to vector<1x24x40xf32>
    %cst_315 = arith.constant dense<0.000000e+00> : vector<1xf32>
    %433 = vector.multi_reduction <add>, %432, %cst_315 [1, 2] : vector<1x24x40xf32> to vector<1xf32>
    %434 = vector.shape_cast %433 : vector<1xf32> to vector<1x1x1xf32>
    %435 = vector.extract %434[0, 0, 0] : f32 from vector<1x1x1xf32>
    %436 = arith.extui %155 : vector<24x40xi1> to vector<24x40xi32>
    %437 = arith.sitofp %436 : vector<24x40xi32> to vector<24x40xf32>
    %438 = vector.shape_cast %437 : vector<24x40xf32> to vector<1x24x40xf32>
    %cst_316 = arith.constant dense<0.000000e+00> : vector<1xf32>
    %439 = vector.multi_reduction <add>, %438, %cst_316 [1, 2] : vector<1x24x40xf32> to vector<1xf32>
    %440 = vector.shape_cast %439 : vector<1xf32> to vector<1x1x1xf32>
    %441 = vector.extract %440[0, 0, 0] : f32 from vector<1x1x1xf32>
    %442 = arith.extui %152 : i1 to i32
    %c0_i32_317 = arith.constant 0 : i32
    %443 = arith.cmpi ne, %442, %c0_i32_317 : i32
    scf.if %443 {
      %cst_332 = arith.constant 0.000000e+00 : f32
      %468 = vector.broadcast %cst_332 : f32 to vector<8x128xf32>
      %c0_333 = arith.constant 0 : index
      %c0_334 = arith.constant 0 : index
      %c0_335 = arith.constant 0 : index
      %c0_336 = arith.constant 0 : index
      %469 = vector.load %arg7[%c0_333, %c0_334, %c0_335, %c0_336] : memref<1x1x8x128xf32, #tpu.memory_space<vmem>>, vector<1x1x8x128xf32>
      %470 = vector.shape_cast %469 : vector<1x1x8x128xf32> to vector<8x128xf32>
      %471 = vector.shape_cast %468 : vector<8x128xf32> to vector<1x1x8x128xf32>
      tpu.vector_store %arg7[%c0_333, %c0_334, %c0_335, %c0_336], %471 {strides = array<i32>} : memref<1x1x8x128xf32, #tpu.memory_space<vmem>>, vector<1x1x8x128xf32>,
    } else {
    }
    %444 = tpu.iota {dimensions = array<i32: 0>} : vector<8x128xi32>
    %c0_318 = arith.constant 0 : index
    %c0_319 = arith.constant 0 : index
    %c0_320 = arith.constant 0 : index
    %c0_321 = arith.constant 0 : index
    %445 = vector.load %arg7[%c0_318, %c0_319, %c0_320, %c0_321] : memref<1x1x8x128xf32, #tpu.memory_space<vmem>>, vector<1x1x8x128xf32>
    %446 = vector.shape_cast %445 : vector<1x1x8x128xf32> to vector<8x128xf32>
    %c0_i32_322 = arith.constant 0 : i32
    %447 = vector.broadcast %c0_i32_322 : i32 to vector<8x128xi32>
    %448 = arith.cmpi eq, %444, %447 : vector<8x128xi32>
    %cst_323 = arith.constant 0.000000e+00 : f32
    %449 = vector.broadcast %430 : f32 to vector<8x128xf32>
    %450 = vector.broadcast %cst_323 : f32 to vector<8x128xf32>
    %451 = arith.select %448, %449, %450 : vector<8x128xi1>, vector<8x128xf32>
    %c1_i32_324 = arith.constant 1 : i32
    %452 = vector.broadcast %c1_i32_324 : i32 to vector<8x128xi32>
    %453 = arith.cmpi eq, %444, %452 : vector<8x128xi32>
    %cst_325 = arith.constant 0.000000e+00 : f32
    %454 = vector.broadcast %435 : f32 to vector<8x128xf32>
    %455 = vector.broadcast %cst_325 : f32 to vector<8x128xf32>
    %456 = arith.select %453, %454, %455 : vector<8x128xi1>, vector<8x128xf32>
    %457 = arith.addf %451, %456 : vector<8x128xf32>
    %c2_i32_326 = arith.constant 2 : i32
    %458 = vector.broadcast %c2_i32_326 : i32 to vector<8x128xi32>
    %459 = arith.cmpi eq, %444, %458 : vector<8x128xi32>
    %cst_327 = arith.constant 0.000000e+00 : f32
    %460 = vector.broadcast %441 : f32 to vector<8x128xf32>
    %461 = vector.broadcast %cst_327 : f32 to vector<8x128xf32>
    %462 = arith.select %459, %460, %461 : vector<8x128xi1>, vector<8x128xf32>
    %463 = arith.addf %457, %462 : vector<8x128xf32>
    %464 = arith.addf %446, %463 : vector<8x128xf32>
    %c0_328 = arith.constant 0 : index
    %c0_329 = arith.constant 0 : index
    %c0_330 = arith.constant 0 : index
    %c0_331 = arith.constant 0 : index
    %465 = vector.load %arg7[%c0_328, %c0_329, %c0_330, %c0_331] : memref<1x1x8x128xf32, #tpu.memory_space<vmem>>, vector<1x1x8x128xf32>
    %466 = vector.shape_cast %465 : vector<1x1x8x128xf32> to vector<8x128xf32>
    %467 = vector.shape_cast %464 : vector<8x128xf32> to vector<1x1x8x128xf32>
    tpu.vector_store %arg7[%c0_328, %c0_329, %c0_330, %c0_331], %467 {strides = array<i32>} : memref<1x1x8x128xf32, #tpu.memory_space<vmem>>, vector<1x1x8x128xf32>,
    return
  }
  func.func @transform_0(%arg0: i32, %arg1: i32, %arg2: i32) -> (i32, i32) {
    %c1_i32 = arith.constant 1 : i32
    %0 = arith.muli %arg1, %c1_i32 : i32
    %1 = arith.addi %0, %arg2 : i32
    %c1_i32_0 = arith.constant 1 : i32
    %2 = arith.minsi %1, %c1_i32_0 : i32
    %c0_i32 = arith.constant 0 : i32
    %c0_i32_1 = arith.constant 0 : i32
    return %2, %c0_i32 : i32, i32
  }
  func.func @transform_1(%arg0: i32, %arg1: i32, %arg2: i32) -> (i32, i32) {
    %c0_i32 = arith.constant 0 : i32
    %c0_i32_0 = arith.constant 0 : i32
    %c0_i32_1 = arith.constant 0 : i32
    return %c0_i32, %c0_i32_0 : i32, i32
  }
  func.func @transform_2(%arg0: i32, %arg1: i32, %arg2: i32) -> (i32, i32, i32, i32) {
    %c0_i32 = arith.constant 0 : i32
    %c0_i32_0 = arith.constant 0 : i32
    %c0_i32_1 = arith.constant 0 : i32
    %c0_i32_2 = arith.constant 0 : i32
    return %arg0, %c0_i32, %c0_i32_0, %c0_i32_1 : i32, i32, i32, i32
  }
  func.func @transform_3(%arg0: i32, %arg1: i32, %arg2: i32) -> (i32, i32, i32) {
    %c1_i32 = arith.constant 1 : i32
    %0 = arith.muli %arg1, %c1_i32 : i32
    %1 = arith.addi %0, %arg2 : i32
    %c1_i32_0 = arith.constant 1 : i32
    %2 = arith.minsi %1, %c1_i32_0 : i32
    %c0_i32 = arith.constant 0 : i32
    %c0_i32_1 = arith.constant 0 : i32
    return %arg0, %2, %c0_i32 : i32, i32, i32
  }
  func.func @transform_4(%arg0: i32, %arg1: i32, %arg2: i32) -> (i32, i32, i32, i32) {
    %c0_i32 = arith.constant 0 : i32
    %c0_i32_0 = arith.constant 0 : i32
    %c0_i32_1 = arith.constant 0 : i32
    return %arg0, %arg1, %c0_i32, %c0_i32_0 : i32, i32, i32, i32
  }
}

</mosaic_0001>

<bundles_post_ra>
// kernel: tpu_custom_call.1
= control target key start
LH: loop header
LB: loop body
LE: loop exit
PB: predicated region body
PF: predicated region fallthrough
CT: control target
= control target key end

     0   :  { %9 = vsyncpa [#allocation4], 0  ;;  %s4320_s0 = inlined_call_operand.vmem [shape: f32[40,20], index: 0, kind: input, shape index: {}]   ;;  %s4321_s1 = inlined_call_operand.vmem [shape: f32[20,40], index: 1, kind: input, shape index: {}]   ;;  %s4322_s2 = inlined_call_operand.vmem [shape: f32[2,20,20,20], index: 2, kind: input, shape index: {}]   ;;  %s4323_s3 = inlined_call_operand.vmem [shape: s32[2,40,40], index: 3, kind: input, shape index: {}]   ;;  %s4324_s4 = inlined_call_operand.hbm [shape: f32[2,2,8,128], index: 4, kind: output, shape index: {}]  }
   0x1   :  { %11 = vsyncpa [#allocation4 + $0x1], 0  ;;  %s3153_s15 = smov 0   ;;  %s3155_s16 = smov 0  }
   0x2   :  { %s3157_s17 = smov 0   ;;  %s3159_s18 = smov 0  }
   0x3   :  { %s3161_s19 = smov 0   ;;  %s3163_s20 = smov 0  }
   0x4   :  { %s3165_s21 = smov 0   ;;  %s3167_s22 = smov 0  }
   0x5 LB: > { %s2586_s23 = sadd.s32 4294967295, %s3124_s22   ;;  %s2587_s24 = sadd.s32 4294967294, %s3124_s22   ;;  %s3124_s22 = sphi %s3167_s22, %s17_s22   ;;  %s3120_s21 = sphi %s3165_s21, %s4394_s21   ;;  %s3116_s20 = sphi %s3163_s20, %s4393_s20   ;;  %s3112_s19 = sphi %s3161_s19, %s4392_s19   ;;  %s3108_s18 = sphi %s3159_s18, %s4391_s18   ;;  %s3104_s17 = sphi %s3157_s17, %s4390_s17   ;;  %s3100_s16 = sphi %s3155_s16, %s4389_s16   ;;  %s3096_s15 = sphi %s3153_s15, %s4388_s15  }
   0x6   : > { %s32_s25 = sadd.s32 1, %s3116_s20  ;;  %s36_s26 = sadd.s32 1, %s3120_s21 }
   0x7   : > { %p34_p0 = scmp.ge.s32.totalorder %s32_s25, 2  ;;  %p168_p1 = scmp.ne.s32.totalorder %s3104_s17, %s3100_s16 }
   0x8   : > { %p169_p2 = scmp.eq.s32.totalorder %s2586_s23, 3  ;;  %p174_p5 = scmp.ne.s32.totalorder %s3100_s16, %s3096_s15 }
   0x9   : > { %s4396_s25 = smov (%p34_p0, %s32_s25), 0  ;;  %s4398_s26 = smov (!%p34_p0, %s36_s26), %s3120_s21 }
   0xa   : > { %s154_s27 = ssub.s32 %s3116_s20, %s4396_s25  ;;  %p3204_p3 = por %p169_p2, %p168_p1 }
   0xb   : > { %p38_p4 = scmp.ge.s32.totalorder %s4398_s26, 2  ;;  %p175_p6 = scmp.eq.s32.totalorder %s2587_s24, 3 }
   0xc   : > { %p2590_p7 = scmp.ge.s32.totalorder %s3124_s22, 1  ;;  %p254_p9 = scmp.lt.s32.totalorder %s3124_s22, 5 }
   0xd   : > { %s4400_s26 = smov (%p38_p4, %s4398_s26), 0  ;;  %p3213_p8 = por %p175_p6, %p174_p5 }
   0xe   : > { %s153_s30 = ssub.s32 %s3120_s21, %s4400_s26  ;;  %s158_s5 = sadd.s32 1, %s3104_s17 }
   0xf   : > { %s155_s6 = sor.u32 %s154_s27, %s153_s30  ;;  %p255_p10 = pnand %p2590_p7, %p254_p9 }
  0x10   : > { %p156_p11 = scmp.eq.s32.totalorder %s155_s6, 0 }
  0x11   : > { %258 = sbr.rel (%p255_p10) target bundleno = 814 (0x32e), region = 36 }
  0x12   : > { %s3222_s7 = scalar_select %p156_p11, %s3104_s17, %s158_s5  }
  0x16   : > { %p328_p12 = scmp.lt.s32.totalorder %s3112_s19, 1  ;;  %p309_p13 = scmp.lt.s32.totalorder %s3108_s18, 1  ;;  %vm376_vm0 = vcmask 1043456   ;;  %vm366_vm1 = vcmask 162816   ;;  %v3343_v39 = vld [vmem:[%s4321_s1 + $0x10] sm:$0xf] }
  0x17   : > { %v3348_v40 = vld [vmem:[%s4321_s1 + $0x8] sm:$0xff]  ;;  %2599 = vmatpush.msk.msra.mxu1 %vm376_vm0, %v3343_v39  ;;  %2610 = vmatpush.msk.msra.mxu3 %vm376_vm0, %v3343_v39  ;;  %v3359_v41 = vld [vmem:[%s4321_s1] sm:$0xff]  ;;  %vm444_vm2 = vcmask 326656   ;;  %s2816_s5 = sshll.u32 %s3112_s19, 1 }
  0x18   : > { %s329_s8 = scalar_select %p328_p12, %s3112_s19, 1 }
  0x19   : > { %s310_s9 = scalar_select %p309_p13, %s3108_s18, 1  ;;  %432 = vmatpush.msra.mxu1 %v3348_v40  ;;  %504 = vmatpush.msra.mxu3 %v3348_v40 }
  0x1a   : > { %s2820_s10 = smul.u32 480, %s329_s8 }
  0x1b   : > { %s311_s11 = smul.u32 3, %s310_s9  ;;  %433 = vmatpush.msra.mxu1 %v3359_v41  ;;  %505 = vmatpush.msra.mxu3 %v3359_v41 }
  0x1c   : > { %s3231_s14 = scalar_lea.vmem %s4322_s2, %s2820_s10  ;;  %s2821_s23 = smul.u32 5, %s329_s8 }
  0x1d   : > { %v365_v0 = vld [vmem:[%s3231_s14 + $0x10] sm:$0xf]  ;;  %v2605_v1 = vld [vmem:[%s3231_s14 + $0x28] sm:$0xf]  ;;  %p316_p0 = scmp.lt.s32.totalorder %s311_s11, 4  ;;  %v2604_v3 = vld [vmem:[%s3231_s14 + $0x20] sm:$0xff]  ;;  %2632 = vmatpush.msk.msrb.mxu3 %vm376_vm0, %v3343_v39  ;;  %2621 = vmatpush.msk.msrb.mxu1 %vm376_vm0, %v3343_v39  ;;  %s2474_s8 = sadd.s32 %s3108_s18, %s2816_s5 }
  0x1e   : > { %v364_v2 = vld [vmem:[%s3231_s14 + $0x8] sm:$0xff]  ;;  %2595 = vmatpush.msk.msra.mxu0 %vm376_vm0, %v365_v0  ;;  %2606 = vmatpush.msk.msra.mxu2 %vm376_vm0, %v2605_v1  ;;  %v363_v4 = vld [vmem:[%s3231_s14] sm:$0xff]  ;;  %v2603_v5 = vld [vmem:[%s3231_s14 + $0x18] sm:$0xff] }
  0x1f   : > { %s4402_s11 = smov (!%p316_p0, %s311_s11), 4  ;;  %v2627_v6 = vld [vmem:[%s3231_s14 + $0x58] sm:$0xf]  ;;  %v2616_v7 = vld [vmem:[%s3231_s14 + $0x40] sm:$0xf]  ;;  %v2626_v8 = vld [vmem:[%s3231_s14 + $0x50] sm:$0xff]  ;;  %648 = vmatpush.msrb.mxu3 %v3348_v40  ;;  %576 = vmatpush.msrb.mxu1 %v3348_v40 }
  0x20   : > { %394 = vmatpush.msra.mxu0 %v364_v2  ;;  %469 = vmatpush.msra.mxu2 %v2604_v3  ;;  %s2592_s24 = sshll.u32 %s4402_s11, 3  ;;  %s3243_s27 = sadd.s32 %s2821_s23, %s4402_s11  ;;  %v2615_v9 = vld [vmem:[%s3231_s14 + $0x38] sm:$0xff]  ;;  %v2625_v11 = vld [vmem:[%s3231_s14 + $0x48] sm:$0xff]  ;;  %v2614_v12 = vld [vmem:[%s3231_s14 + $0x30] sm:$0xff] }
  0x21   : > { %s319_s6 = scalar_lea.vmem %s4320_s0, %s2592_s24  ;;  %v2649_v13 = vld [vmem:[%s3231_s14 + $0x88] sm:$0xf]  ;;  %v2638_v14 = vld [vmem:[%s3231_s14 + $0x70] sm:$0xf]  ;;  %v2648_v15 = vld [vmem:[%s3231_s14 + $0x80] sm:$0xff]  ;;  %649 = vmatpush.msrb.mxu3 %v3359_v41  ;;  %577 = vmatpush.msrb.mxu1 %v3359_v41  ;;  %s2817_s11 = sshll.u32 %s2474_s8, 3 }
  0x22   : > { %395 = vmatpush.msra.mxu0 %v363_v4  ;;  %470 = vmatpush.msra.mxu2 %v2603_v5  ;;  %v3250_v10 = vld [vmem:[%s319_s6] sm:$0xff]  ;;  %v3265_v16 = vld [vmem:[%s319_s6 + $0x8] sm:$0xff]  ;;  %v2647_v17 = vld [vmem:[%s3231_s14 + $0x78] sm:$0xff]  ;;  %s2476_s24 = scalar_lea.hbm %s4324_s4, %s2817_s11 }
  0x23   : > { %2596 = vmatmul.msk.f32.vlgmr.msra.gmra.mxu0 %vm366_vm1, %v3250_v10  ;;  %2607 = vmatmul.msk.f32.vlgmr.msra.gmra.mxu2 %vm366_vm1, %v3250_v10  ;;  %v2637_v18 = vld [vmem:[%s3231_s14 + $0x68] sm:$0xff]  ;;  %v2636_v19 = vld [vmem:[%s3231_s14 + $0x60] sm:$0xff]  ;;  %v3274_v20 = vld [vmem:[%s319_s6 + $0x10] sm:$0xff]  ;;  %s305_s6 = sand.u32 1, %s3100_s16  }
  0x24   : > { %2628 = vmatpush.msk.msrb.mxu2 %vm376_vm0, %v2627_v6  ;;  %2617 = vmatpush.msk.msrb.mxu0 %vm376_vm0, %v2616_v7  ;;  %v2671_v21 = vld [vmem:[%s3231_s14 + $0xb8] sm:$0xf]  ;;  %v2670_v22 = vld [vmem:[%s3231_s14 + $0xb0] sm:$0xff]  ;;  %v2660_v23 = vld [vmem:[%s3231_s14 + $0xa0] sm:$0xf]  ;;  %s2591_s10 = sshll.u32 %s305_s6, 3 }
  0x25   : > { %v2669_v24 = vld [vmem:[%s3231_s14 + $0xa8] sm:$0xff]  ;;  %v2659_v25 = vld [vmem:[%s3231_s14 + $0x98] sm:$0xff]  ;;  %v2658_v26 = vld [vmem:[%s3231_s14 + $0x90] sm:$0xff] }
  0x26   : > { %613 = vmatpush.msrb.mxu2 %v2626_v8  ;;  %541 = vmatpush.msrb.mxu0 %v2615_v9  ;;  %v2693_v27 = vld [vmem:[%s3231_s14 + $0xe8] sm:$0xf]  ;;  %v2692_v28 = vld [vmem:[%s3231_s14 + $0xe0] sm:$0xff]  ;;  %v2682_v29 = vld [vmem:[%s3231_s14 + $0xd0] sm:$0xf] }
  0x27   : > { %v2691_v30 = vld [vmem:[%s3231_s14 + $0xd8] sm:$0xff]  ;;  %v2681_v31 = vld [vmem:[%s3231_s14 + $0xc8] sm:$0xff]  ;;  %v2680_v32 = vld [vmem:[%s3231_s14 + $0xc0] sm:$0xff] }
  0x28   : > { %614 = vmatpush.msrb.mxu2 %v2625_v11  ;;  %542 = vmatpush.msrb.mxu0 %v2614_v12  ;;  %v2715_v33 = vld [vmem:[%s3231_s14 + $0x118] sm:$0xf]  ;;  %v2714_v34 = vld [vmem:[%s3231_s14 + $0x110] sm:$0xff]  ;;  %v2704_v35 = vld [vmem:[%s3231_s14 + $0x100] sm:$0xf] }
  0x29   : > { %v2713_v36 = vld [vmem:[%s3231_s14 + $0x108] sm:$0xff]  ;;  %v2703_v37 = vld [vmem:[%s3231_s14 + $0xf8] sm:$0xff]  ;;  %v2702_v38 = vld [vmem:[%s3231_s14 + $0xf0] sm:$0xff] }
  0x2a   : > { %2650 = vmatpush.msk.msra.mxu2 %vm376_vm0, %v2649_v13  ;;  %2639 = vmatpush.msk.msra.mxu0 %vm376_vm0, %v2638_v14  ;;  %v2737_v42 = vld [vmem:[%s3231_s14 + $0x148] sm:$0xf]  ;;  %v2736_v43 = vld [vmem:[%s3231_s14 + $0x140] sm:$0xff]  ;;  %v2726_v44 = vld [vmem:[%s3231_s14 + $0x130] sm:$0xf] }
  0x2b   : > { %2597 = vmatmul.msk.f32.gmra.mxu0 %vm366_vm1, %v3265_v16  ;;  %2608 = vmatmul.msk.f32.gmra.mxu2 %vm366_vm1, %v3265_v16  ;;  %v2735_v45 = vld [vmem:[%s3231_s14 + $0x138] sm:$0xff]  ;;  %v2725_v46 = vld [vmem:[%s3231_s14 + $0x128] sm:$0xff]  ;;  %v2724_v47 = vld [vmem:[%s3231_s14 + $0x120] sm:$0xff] }
  0x2c   : > { %757 = vmatpush.msra.mxu2 %v2648_v15  ;;  %685 = vmatpush.msra.mxu0 %v2637_v18  ;;  %v2759_v48 = vld [vmem:[%s3231_s14 + $0x178] sm:$0xf]  ;;  %v2758_v49 = vld [vmem:[%s3231_s14 + $0x170] sm:$0xff]  ;;  %v2748_v50 = vld [vmem:[%s3231_s14 + $0x160] sm:$0xf] }
  0x2d   : > { %v2757_v52 = vld [vmem:[%s3231_s14 + $0x168] sm:$0xff]  ;;  %v2747_v53 = vld [vmem:[%s3231_s14 + $0x158] sm:$0xff]  ;;  %v2746_v56 = vld [vmem:[%s3231_s14 + $0x150] sm:$0xff] }
  0x2e   : > { %758 = vmatpush.msra.mxu2 %v2647_v17  ;;  %686 = vmatpush.msra.mxu0 %v2636_v19  ;;  %v2781_v59 = vld [vmem:[%s3231_s14 + $0x1a8] sm:$0xf]  ;;  %v2780_v60 = vld [vmem:[%s3231_s14 + $0x1a0] sm:$0xff]  ;;  %v2770_v61 = vld [vmem:[%s3231_s14 + $0x190] sm:$0xf] }
  0x2f   : > { %v2779_v0 = vld [vmem:[%s3231_s14 + $0x198] sm:$0xff]  ;;  %v2769_v1 = vld [vmem:[%s3231_s14 + $0x188] sm:$0xff]  ;;  %v2768_v4 = vld [vmem:[%s3231_s14 + $0x180] sm:$0xff] }
  0x30   : > { %v2803_v7 = vld [vmem:[%s3231_s14 + $0x1d8] sm:$0xf]  ;;  %v2802_v8 = vld [vmem:[%s3231_s14 + $0x1d0] sm:$0xff]  ;;  %v2792_v9 = vld [vmem:[%s3231_s14 + $0x1c0] sm:$0xf] }
  0x31   : > { %v2801_v13 = vld [vmem:[%s3231_s14 + $0x1c8] sm:$0xff]  ;;  %v2791_v14 = vld [vmem:[%s3231_s14 + $0x1b8] sm:$0xff]  ;;  %v2790_v18 = vld [vmem:[%s3231_s14 + $0x1b0] sm:$0xff]  ;;  %s2594_s14 = sshll.u32 %s3243_s27, 3  ;;  %s1820_s27 = smul.u32 24, %s3108_s18 }
  0x32   : > { %s3650_s30 = scalar_lea.vmem %s4323_s3, %s2594_s14  ;;  %s307_s18 = scalar_lea.vmem [#allocation3], %s2591_s10 }
  0x33   : > { %2598 = vmatmul.msk.f32.gmra.mxu0 %vm366_vm1, %v3274_v20  ;;  %2609 = vmatmul.msk.f32.gmra.mxu2 %vm366_vm1, %v3274_v20  ;;  %s2478_s19 = sshll.u32 %s307_s18, 4  ;;  %s2479_s19 = int_to_ptr.vmem [resolvable:$true] %s2478_s19 }
  0x3b   : > { %2618 = vmatmul.msk.f32.vlgmr.msrb.gmra.mxu0 %vm366_vm1, %v3250_v10  ;;  %2629 = vmatmul.msk.f32.vlgmr.msrb.gmra.mxu2 %vm366_vm1, %v3250_v10 }
  0x3c   : > { %2672 = vmatpush.msk.msrb.mxu2 %vm376_vm0, %v2671_v21  ;;  %2661 = vmatpush.msk.msrb.mxu0 %vm376_vm0, %v2660_v23 }
  0x3e   : > { %901 = vmatpush.msrb.mxu2 %v2670_v22  ;;  %829 = vmatpush.msrb.mxu0 %v2659_v25 }
  0x40   : > { %902 = vmatpush.msrb.mxu2 %v2669_v24  ;;  %830 = vmatpush.msrb.mxu0 %v2658_v26 }
  0x43   : > { %2619 = vmatmul.msk.f32.gmra.mxu0 %vm366_vm1, %v3265_v16  ;;  %2630 = vmatmul.msk.f32.gmra.mxu2 %vm366_vm1, %v3265_v16 }
  0x4b   : > { %2620 = vmatmul.msk.f32.gmra.mxu0 %vm366_vm1, %v3274_v20  ;;  %2631 = vmatmul.msk.f32.gmra.mxu2 %vm366_vm1, %v3274_v20 }
  0x53   : > { %2640 = vmatmul.msk.f32.vlgmr.msra.gmra.mxu0 %vm366_vm1, %v3250_v10  ;;  %2651 = vmatmul.msk.f32.vlgmr.msra.gmra.mxu2 %vm366_vm1, %v3250_v10 }
  0x54   : > { %2694 = vmatpush.msk.msra.mxu2 %vm376_vm0, %v2693_v27  ;;  %2683 = vmatpush.msk.msra.mxu0 %vm376_vm0, %v2682_v29 }
  0x56   : > { %1045 = vmatpush.msra.mxu2 %v2692_v28  ;;  %973 = vmatpush.msra.mxu0 %v2681_v31 }
  0x58   : > { %1046 = vmatpush.msra.mxu2 %v2691_v30  ;;  %974 = vmatpush.msra.mxu0 %v2680_v32 }
  0x5b   : > { %2641 = vmatmul.msk.f32.gmra.mxu0 %vm366_vm1, %v3265_v16  ;;  %2652 = vmatmul.msk.f32.gmra.mxu2 %vm366_vm1, %v3265_v16 }
  0x63   : > { %2642 = vmatmul.msk.f32.gmra.mxu0 %vm366_vm1, %v3274_v20  ;;  %2653 = vmatmul.msk.f32.gmra.mxu2 %vm366_vm1, %v3274_v20 }
  0x6b   : > { %2662 = vmatmul.msk.f32.vlgmr.msrb.gmra.mxu0 %vm366_vm1, %v3250_v10  ;;  %2673 = vmatmul.msk.f32.vlgmr.msrb.gmra.mxu2 %vm366_vm1, %v3250_v10 }
  0x6c   : > { %2716 = vmatpush.msk.msrb.mxu2 %vm376_vm0, %v2715_v33  ;;  %2705 = vmatpush.msk.msrb.mxu0 %vm376_vm0, %v2704_v35 }
  0x6e   : > { %1189 = vmatpush.msrb.mxu2 %v2714_v34  ;;  %1117 = vmatpush.msrb.mxu0 %v2703_v37 }
  0x70   : > { %1190 = vmatpush.msrb.mxu2 %v2713_v36  ;;  %1118 = vmatpush.msrb.mxu0 %v2702_v38 }
  0x73   : > { %2663 = vmatmul.msk.f32.gmra.mxu0 %vm366_vm1, %v3265_v16  ;;  %2674 = vmatmul.msk.f32.gmra.mxu2 %vm366_vm1, %v3265_v16 }
  0x7b   : > { %2664 = vmatmul.msk.f32.gmra.mxu0 %vm366_vm1, %v3274_v20  ;;  %2675 = vmatmul.msk.f32.gmra.mxu2 %vm366_vm1, %v3274_v20 }
  0x83   : > { %2684 = vmatmul.msk.f32.vlgmr.msra.gmra.mxu0 %vm366_vm1, %v3250_v10  ;;  %2695 = vmatmul.msk.f32.vlgmr.msra.gmra.mxu2 %vm366_vm1, %v3250_v10 }
  0x84   : > { %2738 = vmatpush.msk.msra.mxu2 %vm376_vm0, %v2737_v42  ;;  %2727 = vmatpush.msk.msra.mxu0 %vm376_vm0, %v2726_v44 }
  0x86   : > { %1333 = vmatpush.msra.mxu2 %v2736_v43  ;;  %1261 = vmatpush.msra.mxu0 %v2725_v46 }
  0x88   : > { %1334 = vmatpush.msra.mxu2 %v2735_v45  ;;  %1262 = vmatpush.msra.mxu0 %v2724_v47 }
  0x8b   : > { %2685 = vmatmul.msk.f32.gmra.mxu0 %vm366_vm1, %v3265_v16  ;;  %2696 = vmatmul.msk.f32.gmra.mxu2 %vm366_vm1, %v3265_v16 }
  0x93   : > { %2686 = vmatmul.msk.f32.gmra.mxu0 %vm366_vm1, %v3274_v20  ;;  %2697 = vmatmul.msk.f32.gmra.mxu2 %vm366_vm1, %v3274_v20 }
  0x9b   : > { %2706 = vmatmul.msk.f32.vlgmr.msrb.gmra.mxu0 %vm366_vm1, %v3250_v10  ;;  %2717 = vmatmul.msk.f32.vlgmr.msrb.gmra.mxu2 %vm366_vm1, %v3250_v10 }
  0x9c   : > { %2760 = vmatpush.msk.msrb.mxu2 %vm376_vm0, %v2759_v48  ;;  %2749 = vmatpush.msk.msrb.mxu0 %vm376_vm0, %v2748_v50 }
  0x9e   : > { %1477 = vmatpush.msrb.mxu2 %v2758_v49  ;;  %1405 = vmatpush.msrb.mxu0 %v2747_v53 }
  0xa0   : > { %v397_v51 = vpop.f32.mrf.mxu0  ;;  %1478 = vmatpush.msrb.mxu2 %v2757_v52  ;;  %1406 = vmatpush.msrb.mxu0 %v2746_v56 }
  0xa1   : > { %2600 = vmatmul.msk.f32.vlgmr.msra.gmra.mxu1 %vm366_vm1, %v397_v51 }
  0xa2   : > { %2643 = vmatpush.msk.msra.mxu1 %vm376_vm0, %v3343_v39 }
  0xa3   : > { %2707 = vmatmul.msk.f32.gmra.mxu0 %vm366_vm1, %v3265_v16  ;;  %2718 = vmatmul.msk.f32.gmra.mxu2 %vm366_vm1, %v3265_v16 }
  0xa4   : > { %720 = vmatpush.msra.mxu1 %v3348_v40 }
  0xa6   : > { %v472_v54 = vpop.f32.mrf.mxu2  ;;  %721 = vmatpush.msra.mxu1 %v3359_v41 }
  0xa7   : > { %2611 = vmatmul.msk.f32.vlgmr.msra.gmra.mxu3 %vm366_vm1, %v472_v54 }
  0xa8   : > { %v400_v55 = vpop.f32.mrf.mxu0  ;;  %2654 = vmatpush.msk.msra.mxu3 %vm376_vm0, %v3343_v39 }
  0xa9   : > { %2601 = vmatmul.msk.f32.gmra.mxu1 %vm366_vm1, %v400_v55 }
  0xaa   : > { %792 = vmatpush.msra.mxu3 %v3348_v40 }
  0xab   : > { %2708 = vmatmul.msk.f32.gmra.mxu0 %vm366_vm1, %v3274_v20  ;;  %2719 = vmatmul.msk.f32.gmra.mxu2 %vm366_vm1, %v3274_v20 }
  0xac   : > { %793 = vmatpush.msra.mxu3 %v3359_v41 }
  0xae   : > { %v475_v57 = vpop.f32.mrf.mxu2 }
  0xaf   : > { %2612 = vmatmul.msk.f32.gmra.mxu3 %vm366_vm1, %v475_v57 }
  0xb0   : > { %v403_v58 = vpop.f32.mrf.mxu0 }
  0xb1   : > { %2602 = vmatmul.msk.f32.gmra.mxu1 %vm366_vm1, %v403_v58 }
  0xb3   : > { %2728 = vmatmul.msk.f32.vlgmr.msra.gmra.mxu0 %vm366_vm1, %v3250_v10  ;;  %2739 = vmatmul.msk.f32.vlgmr.msra.gmra.mxu2 %vm366_vm1, %v3250_v10 }
  0xb4   : > { %2782 = vmatpush.msk.msra.mxu2 %vm376_vm0, %v2781_v59  ;;  %2771 = vmatpush.msk.msra.mxu0 %vm376_vm0, %v2770_v61 }
  0xb6   : > { %v478_v62 = vpop.f32.mrf.mxu2  ;;  %1621 = vmatpush.msra.mxu2 %v2780_v60  ;;  %1549 = vmatpush.msra.mxu0 %v2769_v1 }
  0xb7   : > { %2613 = vmatmul.msk.f32.gmra.mxu3 %vm366_vm1, %v478_v62 }
  0xb8   : > { %v544_v63 = vpop.f32.mrf.mxu0  ;;  %1622 = vmatpush.msra.mxu2 %v2779_v0  ;;  %1550 = vmatpush.msra.mxu0 %v2768_v4 }
  0xb9   : > { %2622 = vmatmul.msk.f32.vlgmr.msrb.gmra.mxu1 %vm366_vm1, %v544_v63 }
  0xba   : > { %2665 = vmatpush.msk.msrb.mxu1 %vm376_vm0, %v3343_v39 }
  0xbb   : > { %2729 = vmatmul.msk.f32.gmra.mxu0 %vm366_vm1, %v3265_v16  ;;  %2740 = vmatmul.msk.f32.gmra.mxu2 %vm366_vm1, %v3265_v16 }
  0xbc   : > { %864 = vmatpush.msrb.mxu1 %v3348_v40 }
  0xbe   : > { %v616_v2 = vpop.f32.mrf.mxu2  ;;  %865 = vmatpush.msrb.mxu1 %v3359_v41 }
  0xbf   : > { %2633 = vmatmul.msk.f32.vlgmr.msrb.gmra.mxu3 %vm366_vm1, %v616_v2 }
  0xc0   : > { %v547_v3 = vpop.f32.mrf.mxu0  ;;  %2676 = vmatpush.msk.msrb.mxu3 %vm376_vm0, %v3343_v39 }
  0xc1   : > { %2623 = vmatmul.msk.f32.gmra.mxu1 %vm366_vm1, %v547_v3 }
  0xc2   : > { %936 = vmatpush.msrb.mxu3 %v3348_v40 }
  0xc3   : > { %2730 = vmatmul.msk.f32.gmra.mxu0 %vm366_vm1, %v3274_v20  ;;  %2741 = vmatmul.msk.f32.gmra.mxu2 %vm366_vm1, %v3274_v20 }
  0xc4   : > { %937 = vmatpush.msrb.mxu3 %v3359_v41 }
  0xc6   : > { %v619_v5 = vpop.f32.mrf.mxu2 }
  0xc7   : > { %2634 = vmatmul.msk.f32.gmra.mxu3 %vm366_vm1, %v619_v5 }
  0xc8   : > { %v550_v6 = vpop.f32.mrf.mxu0 }
  0xc9   : > { %2624 = vmatmul.msk.f32.gmra.mxu1 %vm366_vm1, %v550_v6 }
  0xcb   : > { %2750 = vmatmul.msk.f32.vlgmr.msrb.gmra.mxu0 %vm366_vm1, %v3250_v10  ;;  %2761 = vmatmul.msk.f32.vlgmr.msrb.gmra.mxu2 %vm366_vm1, %v3250_v10 }
  0xcc   : > { %2804 = vmatpush.msk.msrb.mxu2 %vm376_vm0, %v2803_v7  ;;  %2793 = vmatpush.msk.msrb.mxu0 %vm376_vm0, %v2792_v9 }
  0xce   : > { %v622_v11 = vpop.f32.mrf.mxu2  ;;  %1765 = vmatpush.msrb.mxu2 %v2802_v8  ;;  %1693 = vmatpush.msrb.mxu0 %v2791_v14 }
  0xcf   : > { %2635 = vmatmul.msk.f32.gmra.mxu3 %vm366_vm1, %v622_v11 }
  0xd0   : > { %v688_v12 = vpop.f32.mrf.mxu0  ;;  %1766 = vmatpush.msrb.mxu2 %v2801_v13  ;;  %1694 = vmatpush.msrb.mxu0 %v2790_v18 }
  0xd1   : > { %2644 = vmatmul.msk.f32.vlgmr.msra.gmra.mxu1 %vm366_vm1, %v688_v12 }
  0xd2   : > { %2687 = vmatpush.msk.msra.mxu1 %vm376_vm0, %v3343_v39 }
  0xd3   : > { %2751 = vmatmul.msk.f32.gmra.mxu0 %vm366_vm1, %v3265_v16  ;;  %2762 = vmatmul.msk.f32.gmra.mxu2 %vm366_vm1, %v3265_v16 }
  0xd4   : > { %1008 = vmatpush.msra.mxu1 %v3348_v40 }
  0xd6   : > { %v760_v15 = vpop.f32.mrf.mxu2  ;;  %1009 = vmatpush.msra.mxu1 %v3359_v41 }
  0xd7   : > { %2655 = vmatmul.msk.f32.vlgmr.msra.gmra.mxu3 %vm366_vm1, %v760_v15 }
  0xd8   : > { %v691_v17 = vpop.f32.mrf.mxu0  ;;  %2698 = vmatpush.msk.msra.mxu3 %vm376_vm0, %v3343_v39 }
  0xd9   : > { %2645 = vmatmul.msk.f32.gmra.mxu1 %vm366_vm1, %v691_v17 }
  0xda   : > { %1080 = vmatpush.msra.mxu3 %v3348_v40 }
  0xdb   : > { %2752 = vmatmul.msk.f32.gmra.mxu0 %vm366_vm1, %v3274_v20  ;;  %2763 = vmatmul.msk.f32.gmra.mxu2 %vm366_vm1, %v3274_v20 }
  0xdc   : > { %1081 = vmatpush.msra.mxu3 %v3359_v41 }
  0xde   : > { %v763_v19 = vpop.f32.mrf.mxu2 }
  0xdf   : > { %2656 = vmatmul.msk.f32.gmra.mxu3 %vm366_vm1, %v763_v19 }
  0xe0   : > { %v694_v21 = vpop.f32.mrf.mxu0 }
  0xe1   : > { %2646 = vmatmul.msk.f32.gmra.mxu1 %vm366_vm1, %v694_v21 }
  0xe3   : > { %2772 = vmatmul.msk.f32.vlgmr.msra.gmra.mxu0 %vm366_vm1, %v3250_v10  ;;  %2783 = vmatmul.msk.f32.vlgmr.msra.gmra.mxu2 %vm366_vm1, %v3250_v10 }
  0xe6   : > { %v766_v22 = vpop.f32.mrf.mxu2 }
  0xe7   : > { %2657 = vmatmul.msk.f32.gmra.mxu3 %vm366_vm1, %v766_v22 }
  0xe8   : > { %v832_v23 = vpop.f32.mrf.mxu0 }
  0xe9   : > { %2666 = vmatmul.msk.f32.vlgmr.msrb.gmra.mxu1 %vm366_vm1, %v832_v23 }
  0xea   : > { %2709 = vmatpush.msk.msrb.mxu1 %vm376_vm0, %v3343_v39 }
  0xeb   : > { %2773 = vmatmul.msk.f32.gmra.mxu0 %vm366_vm1, %v3265_v16  ;;  %2784 = vmatmul.msk.f32.gmra.mxu2 %vm366_vm1, %v3265_v16 }
  0xec   : > { %1152 = vmatpush.msrb.mxu1 %v3348_v40 }
  0xee   : > { %v904_v24 = vpop.f32.mrf.mxu2  ;;  %1153 = vmatpush.msrb.mxu1 %v3359_v41 }
  0xef   : > { %2677 = vmatmul.msk.f32.vlgmr.msrb.gmra.mxu3 %vm366_vm1, %v904_v24 }
  0xf0   : > { %v835_v25 = vpop.f32.mrf.mxu0  ;;  %2720 = vmatpush.msk.msrb.mxu3 %vm376_vm0, %v3343_v39 }
  0xf1   : > { %2667 = vmatmul.msk.f32.gmra.mxu1 %vm366_vm1, %v835_v25 }
  0xf2   : > { %1224 = vmatpush.msrb.mxu3 %v3348_v40 }
  0xf3   : > { %2774 = vmatmul.msk.f32.gmra.mxu0 %vm366_vm1, %v3274_v20  ;;  %2785 = vmatmul.msk.f32.gmra.mxu2 %vm366_vm1, %v3274_v20 }
  0xf4   : > { %1225 = vmatpush.msrb.mxu3 %v3359_v41 }
  0xf6   : > { %v907_v26 = vpop.f32.mrf.mxu2 }
  0xf7   : > { %2678 = vmatmul.msk.f32.gmra.mxu3 %vm366_vm1, %v907_v26 }
  0xf8   : > { %v838_v27 = vpop.f32.mrf.mxu0 }
  0xf9   : > { %2668 = vmatmul.msk.f32.gmra.mxu1 %vm366_vm1, %v838_v27 }
  0xfb   : > { %2794 = vmatmul.msk.f32.vlgmr.msrb.gmra.mxu0 %vm366_vm1, %v3250_v10  ;;  %2805 = vmatmul.msk.f32.vlgmr.msrb.gmra.mxu2 %vm366_vm1, %v3250_v10 }
  0xfe   : > { %v910_v28 = vpop.f32.mrf.mxu2 }
  0xff   : > { %2679 = vmatmul.msk.f32.gmra.mxu3 %vm366_vm1, %v910_v28 }
 0x100   : > { %v976_v29 = vpop.f32.mrf.mxu0 }
 0x101   : > { %2688 = vmatmul.msk.f32.vlgmr.msra.gmra.mxu1 %vm366_vm1, %v976_v29 }
 0x102   : > { %2731 = vmatpush.msk.msra.mxu1 %vm376_vm0, %v3343_v39 }
 0x103   : > { %2795 = vmatmul.msk.f32.gmra.mxu0 %vm366_vm1, %v3265_v16  ;;  %2806 = vmatmul.msk.f32.gmra.mxu2 %vm366_vm1, %v3265_v16 }
 0x104   : > { %1296 = vmatpush.msra.mxu1 %v3348_v40 }
 0x106   : > { %v1048_v30 = vpop.f32.mrf.mxu2  ;;  %1297 = vmatpush.msra.mxu1 %v3359_v41 }
 0x107   : > { %2699 = vmatmul.msk.f32.vlgmr.msra.gmra.mxu3 %vm366_vm1, %v1048_v30 }
 0x108   : > { %v979_v10 = vpop.f32.mrf.mxu0  ;;  %2742 = vmatpush.msk.msra.mxu3 %vm376_vm0, %v3343_v39 }
 0x109   : > { %2689 = vmatmul.msk.f32.gmra.mxu1 %vm366_vm1, %v979_v10 }
 0x10a   : > { %1368 = vmatpush.msra.mxu3 %v3348_v40 }
 0x10b   : > { %2796 = vmatmul.msk.f32.gmra.mxu0 %vm366_vm1, %v3274_v20  ;;  %2807 = vmatmul.msk.f32.gmra.mxu2 %vm366_vm1, %v3274_v20 }
 0x10c   : > { %1369 = vmatpush.msra.mxu3 %v3359_v41 }
 0x10e   : > { %v1051_v16 = vpop.f32.mrf.mxu2 }
 0x10f   : > { %2700 = vmatmul.msk.f32.gmra.mxu3 %vm366_vm1, %v1051_v16 }
 0x110   : > { %v982_v31 = vpop.f32.mrf.mxu0 }
 0x111   : > { %2690 = vmatmul.msk.f32.gmra.mxu1 %vm366_vm1, %v982_v31 }
 0x116   : > { %v1054_v32 = vpop.f32.mrf.mxu2 }
 0x117   : > { %2701 = vmatmul.msk.f32.gmra.mxu3 %vm366_vm1, %v1054_v32 }
 0x118   : > { %v1120_v33 = vpop.f32.mrf.mxu0 }
 0x119   : > { %2710 = vmatmul.msk.f32.vlgmr.msrb.gmra.mxu1 %vm366_vm1, %v1120_v33 }
 0x11a   : > { %2753 = vmatpush.msk.msrb.mxu1 %vm376_vm0, %v3343_v39 }
 0x11c   : > { %1440 = vmatpush.msrb.mxu1 %v3348_v40 }
 0x11e   : > { %v435_v20 = vpop.f32.mrf.mxu1  ;;  %v1192_v34 = vpop.f32.mrf.mxu2  ;;  %1441 = vmatpush.msrb.mxu1 %v3359_v41 }
 0x11f   : > { %445 = vst.msk [vmem:[#allocation2] sm:$0xff] %vm444_vm2, %v435_v20  ;;  %2721 = vmatmul.msk.f32.vlgmr.msrb.gmra.mxu3 %vm366_vm1, %v1192_v34 }
 0x120   : > { %v1123_v35 = vpop.f32.mrf.mxu0  ;;  %2764 = vmatpush.msk.msrb.mxu3 %vm376_vm0, %v3343_v39 }
 0x121   : > { %2711 = vmatmul.msk.f32.gmra.mxu1 %vm366_vm1, %v1123_v35 }
 0x122   : > { %1512 = vmatpush.msrb.mxu3 %v3348_v40 }
 0x124   : > { %1513 = vmatpush.msrb.mxu3 %v3359_v41 }
 0x126   : > { %v438_v36 = vpop.f32.mrf.mxu1  ;;  %v1195_v37 = vpop.f32.mrf.mxu2 }
 0x127   : > { %446 = vst.msk [vmem:[#allocation2 + $0x8] sm:$0xff] %vm444_vm2, %v438_v36  ;;  %2722 = vmatmul.msk.f32.gmra.mxu3 %vm366_vm1, %v1195_v37 }
 0x128   : > { %v1126_v38 = vpop.f32.mrf.mxu0 }
 0x129   : > { %2712 = vmatmul.msk.f32.gmra.mxu1 %vm366_vm1, %v1126_v38 }
 0x12a   : > { %v507_v42 = vpop.f32.mrf.mxu3 }
 0x12b   : > { %517 = vst.msk [vmem:[#allocation2 + $0x18] sm:$0xff] %vm444_vm2, %v507_v42 }
 0x12e   : > { %v441_v43 = vpop.f32.mrf.mxu1  ;;  %v1198_v44 = vpop.f32.mrf.mxu2 }
 0x12f   : > { %447 = vst.msk [vmem:[#allocation2 + $0x10] sm:$0xff] %vm444_vm2, %v441_v43  ;;  %2723 = vmatmul.msk.f32.gmra.mxu3 %vm366_vm1, %v1198_v44 }
 0x130   : > { %v1264_v45 = vpop.f32.mrf.mxu0 }
 0x131   : > { %2732 = vmatmul.msk.f32.vlgmr.msra.gmra.mxu1 %vm366_vm1, %v1264_v45 }
 0x132   : > { %v510_v46 = vpop.f32.mrf.mxu3  ;;  %2775 = vmatpush.msk.msra.mxu1 %vm376_vm0, %v3343_v39 }
 0x133   : > { %518 = vst.msk [vmem:[#allocation2 + $0x20] sm:$0xff] %vm444_vm2, %v510_v46 }
 0x134   : > { %1584 = vmatpush.msra.mxu1 %v3348_v40 }
 0x136   : > { %v579_v47 = vpop.f32.mrf.mxu1  ;;  %v1336_v48 = vpop.f32.mrf.mxu2  ;;  %1585 = vmatpush.msra.mxu1 %v3359_v41 }
 0x137   : > { %589 = vst.msk [vmem:[#allocation2 + $0x30] sm:$0xff] %vm444_vm2, %v579_v47  ;;  %2743 = vmatmul.msk.f32.vlgmr.msra.gmra.mxu3 %vm366_vm1, %v1336_v48 }
 0x138   : > { %v1267_v49 = vpop.f32.mrf.mxu0  ;;  %2786 = vmatpush.msk.msra.mxu3 %vm376_vm0, %v3343_v39 }
 0x139   : > { %2733 = vmatmul.msk.f32.gmra.mxu1 %vm366_vm1, %v1267_v49  ;;  %v3653_v49 = vld [vmem:[%s3650_s30] sm:$0xff] }
 0x13a   : > { %v513_v50 = vpop.f32.mrf.mxu3  ;;  %1656 = vmatpush.msra.mxu3 %v3348_v40  ;;  %vm1989_vm3 = vcmp.eq.s32.totalorder %v3653_v49, 1  ;;  %vm1968_vm4 = vcmp.eq.s32.totalorder %v3653_v49, 0  ;;  %vm2010_vm8 = vcmp.eq.s32.totalorder %v3653_v49, 2  ;;  %vm2031_vm12 = vcmp.eq.s32.totalorder %v3653_v49, 3 }
 0x13b   : > { %519 = vst.msk [vmem:[#allocation2 + $0x28] sm:$0xff] %vm444_vm2, %v513_v50  ;;  %v3657_v50 = vld [vmem:[%s3650_s30 + $0x8] sm:$0xff]  ;;  %vm2052_vm14 = vcmp.eq.s32.totalorder %v3653_v49, 4 }
 0x13c   : > { %1657 = vmatpush.msra.mxu3 %v3359_v41  ;;  %vm1990_vm5 = vcmp.eq.s32.totalorder %v3657_v50, 1  ;;  %vm1969_vm6 = vcmp.eq.s32.totalorder %v3657_v50, 0  ;;  %vm2011_vm10 = vcmp.eq.s32.totalorder %v3657_v50, 2  ;;  %vm2032_vm13 = vcmp.eq.s32.totalorder %v3657_v50, 3 }
 0x13e   : > { %v582_v51 = vpop.f32.mrf.mxu1  ;;  %v1339_v52 = vpop.f32.mrf.mxu2 }
 0x13f   : > { %590 = vst.msk [vmem:[#allocation2 + $0x38] sm:$0xff] %vm444_vm2, %v582_v51  ;;  %2744 = vmatmul.msk.f32.gmra.mxu3 %vm366_vm1, %v1339_v52  ;;  %v3659_v51 = vld [vmem:[#allocation2 + $0x18] sm:$0xff]  ;;  %v3663_v52 = vld [vmem:[%s3650_s30 + $0x10] sm:$0xff] }
 0x140   : > { %v1270_v53 = vpop.f32.mrf.mxu0  ;;  %4348 = vst [vmem:[#allocation6_spill] sm:$0xff] %v3663_v52  ;;  %vm1991_vm7 = vcmp.eq.s32.totalorder %v3663_v52, 1  ;;  %vm1970_vm9 = vcmp.eq.s32.totalorder %v3663_v52, 0  ;;  %vm2012_vm11 = vcmp.eq.s32.totalorder %v3663_v52, 2  ;;  %vm2033_vm15 = vcmp.eq.s32.totalorder %v3663_v52, 3 }
 0x141   : > { %2734 = vmatmul.msk.f32.gmra.mxu1 %vm366_vm1, %v1270_v53 }
 0x142   : > { %v651_v54 = vpop.f32.mrf.mxu3 }
 0x143   : > { %661 = vst.msk [vmem:[#allocation2 + $0x48] sm:$0xff] %vm444_vm2, %v651_v54  ;;  %v3665_v54 = vld [vmem:[#allocation2] sm:$0xff] }
 0x146   : > { %v585_v55 = vpop.f32.mrf.mxu1  ;;  %v1342_v56 = vpop.f32.mrf.mxu2 }
 0x147   : > { %591 = vst.msk [vmem:[#allocation2 + $0x40] sm:$0xff] %vm444_vm2, %v585_v55  ;;  %2745 = vmatmul.msk.f32.gmra.mxu3 %vm366_vm1, %v1342_v56  ;;  %v3667_v55 = vld [vmem:[#allocation2 + $0x20] sm:$0xff]  ;;  %v3672_v56 = vld [vmem:[#allocation2 + $0x8] sm:$0xff] }
 0x148   : > { %v1408_v57 = vpop.f32.mrf.mxu0 }
 0x149   : > { %2754 = vmatmul.msk.f32.vlgmr.msrb.gmra.mxu1 %vm366_vm1, %v1408_v57  ;;  %v3675_v57 = vld [vmem:[#allocation2 + $0x28] sm:$0xff] }
 0x14a   : > { %v654_v58 = vpop.f32.mrf.mxu3  ;;  %2797 = vmatpush.msk.msrb.mxu1 %vm376_vm0, %v3343_v39 }
 0x14b   : > { %662 = vst.msk [vmem:[#allocation2 + $0x50] sm:$0xff] %vm444_vm2, %v654_v58  ;;  %v3677_v58 = vld [vmem:[#allocation2 + $0x30] sm:$0xff] }
 0x14c   : > { %1728 = vmatpush.msrb.mxu1 %v3348_v40 }
 0x14e   : > { %v723_v59 = vpop.f32.mrf.mxu1  ;;  %v1480_v60 = vpop.f32.mrf.mxu2  ;;  %1729 = vmatpush.msrb.mxu1 %v3359_v41 }
 0x14f   : > { %733 = vst.msk [vmem:[#allocation2 + $0x60] sm:$0xff] %vm444_vm2, %v723_v59  ;;  %2765 = vmatmul.msk.f32.vlgmr.msrb.gmra.mxu3 %vm366_vm1, %v1480_v60  ;;  %v1992_v59 = vsel %vm1989_vm3, %v3659_v51, 0.0  ;;  %v3682_v60 = vld [vmem:[#allocation2 + $0x10] sm:$0xff]  ;;  %vm2073_vm3 = vcmp.eq.s32.totalorder %v3653_v49, 5 }
 0x150   : > { %v1411_v61 = vpop.f32.mrf.mxu0  ;;  %2808 = vmatpush.msk.msrb.mxu3 %vm376_vm0, %v3343_v39  ;;  %vm2053_vm0 = vcmp.eq.s32.totalorder %v3657_v50, 4 }
 0x151   : > { %2755 = vmatmul.msk.f32.gmra.mxu1 %vm366_vm1, %v1411_v61  ;;  %v1971_v61 = vsel %vm1968_vm4, %v3665_v54, 0.0 }
 0x152   : > { %v657_v62 = vpop.f32.mrf.mxu3  ;;  %1800 = vmatpush.msrb.mxu3 %v3348_v40 }
 0x153   : > { %663 = vst.msk [vmem:[#allocation2 + $0x58] sm:$0xff] %vm444_vm2, %v657_v62  ;;  %v1993_v62 = vsel %vm1990_vm5, %v3667_v55, 0.0  ;;  %vm2074_vm5 = vcmp.eq.s32.totalorder %v3657_v50, 5 }
 0x154   : > { %1801 = vmatpush.msrb.mxu3 %v3359_v41 }
 0x156   : > { %v726_v63 = vpop.f32.mrf.mxu1  ;;  %v1483_v0 = vpop.f32.mrf.mxu2 }
 0x157   : > { %734 = vst.msk [vmem:[#allocation2 + $0x68] sm:$0xff] %vm444_vm2, %v726_v63  ;;  %2766 = vmatmul.msk.f32.gmra.mxu3 %vm366_vm1, %v1483_v0  ;;  %v1845_v0 = vmax.f32 %v3665_v54, %v3659_v51 }
 0x158   : > { %v1414_v1 = vpop.f32.mrf.mxu0 }
 0x159   : > { %2756 = vmatmul.msk.f32.gmra.mxu1 %vm366_vm1, %v1414_v1  ;;  %v3692_v1 = vld [vmem:[#allocation2 + $0x38] sm:$0xff] }
 0x15a   : > { %v795_v2 = vpop.f32.mrf.mxu3 }
 0x15b   : > { %805 = vst.msk [vmem:[#allocation2 + $0x78] sm:$0xff] %vm444_vm2, %v795_v2  ;;  %v3694_v2 = vld [vmem:[#allocation2 + $0x48] sm:$0xff] }
 0x15e   : > { %v729_v39 = vpop.f32.mrf.mxu1  ;;  %v1486_v3 = vpop.f32.mrf.mxu2 }
 0x15f   : > { %735 = vst.msk [vmem:[#allocation2 + $0x70] sm:$0xff] %vm444_vm2, %v729_v39  ;;  %2767 = vmatmul.msk.f32.gmra.mxu3 %vm366_vm1, %v1486_v3  ;;  %v1972_v39 = vsel %vm1969_vm6, %v3672_v56, 0.0  ;;  %v1994_v3 = vsel %vm1991_vm7, %v3675_v57, 0.0  ;;  %vm2094_vm7 = vcmp.eq.s32.totalorder %v3653_v49, 6 }
 0x160   : > { %v1552_v40 = vpop.f32.mrf.mxu0 }
 0x161   : > { %2776 = vmatmul.msk.f32.vlgmr.msra.gmra.mxu1 %vm366_vm1, %v1552_v40  ;;  %v1995_v40 = vadd.f32 %v1992_v59, %v1971_v61 }
 0x162   : > { %v798_v41 = vpop.f32.mrf.mxu3 }
 0x163   : > { %806 = vst.msk [vmem:[#allocation2 + $0x80] sm:$0xff] %vm444_vm2, %v798_v41  ;;  %v2013_v41 = vsel %vm2010_vm8, %v3677_v58, 0.0  ;;  %vm2075_vm8 = vcmp.eq.s32.totalorder %v3663_v52, 5 }
 0x166   : > { %v867_v4 = vpop.f32.mrf.mxu1  ;;  %v1624_v5 = vpop.f32.mrf.mxu2 }
 0x167   : > { %877 = vst.msk [vmem:[#allocation2 + $0x90] sm:$0xff] %vm444_vm2, %v867_v4  ;;  %2787 = vmatmul.msk.f32.vlgmr.msra.gmra.mxu3 %vm366_vm1, %v1624_v5  ;;  %v1846_v4 = vmax.f32 %v3672_v56, %v3667_v55  ;;  %v3711_v5 = vld [vmem:[#allocation2 + $0x40] sm:$0xff] }
 0x168   : > { %v1555_v6 = vpop.f32.mrf.mxu0 }
 0x169   : > { %2777 = vmatmul.msk.f32.gmra.mxu1 %vm366_vm1, %v1555_v6  ;;  %v3713_v6 = vld [vmem:[#allocation2 + $0x50] sm:$0xff] }
 0x16a   : > { %v801_v7 = vpop.f32.mrf.mxu3 }
 0x16b   : > { %807 = vst.msk [vmem:[#allocation2 + $0x88] sm:$0xff] %vm444_vm2, %v801_v7  ;;  %v1973_v7 = vsel %vm1970_vm9, %v3682_v60, 0.0 }
 0x16e   : > { %v870_v8 = vpop.f32.mrf.mxu1  ;;  %v1627_v9 = vpop.f32.mrf.mxu2 }
 0x16f   : > { %878 = vst.msk [vmem:[#allocation2 + $0x98] sm:$0xff] %vm444_vm2, %v870_v8  ;;  %2788 = vmatmul.msk.f32.gmra.mxu3 %vm366_vm1, %v1627_v9  ;;  %v1996_v8 = vadd.f32 %v1993_v62, %v1972_v39  ;;  %v1851_v9 = vmax.f32 %v1845_v0, %v3677_v58 }
 0x170   : > { %v1558_v11 = vpop.f32.mrf.mxu0 }
 0x171   : > { %2778 = vmatmul.msk.f32.gmra.mxu1 %vm366_vm1, %v1558_v11  ;;  %v2014_v11 = vsel %vm2011_vm10, %v3692_v1, 0.0  ;;  %vm2095_vm10 = vcmp.eq.s32.totalorder %v3657_v50, 6 }
 0x172   : > { %v939_v12 = vpop.f32.mrf.mxu3 }
 0x173   : > { %949 = vst.msk [vmem:[#allocation2 + $0xa8] sm:$0xff] %vm444_vm2, %v939_v12  ;;  %v2034_v12 = vsel %vm2031_vm12, %v3694_v2, 0.0  ;;  %vm2096_vm12 = vcmp.eq.s32.totalorder %v3663_v52, 6 }
 0x176   : > { %v873_v13 = vpop.f32.mrf.mxu1  ;;  %v1630_v14 = vpop.f32.mrf.mxu2 }
 0x177   : > { %879 = vst.msk [vmem:[#allocation2 + $0xa0] sm:$0xff] %vm444_vm2, %v873_v13  ;;  %2789 = vmatmul.msk.f32.gmra.mxu3 %vm366_vm1, %v1630_v14  ;;  %v1847_v14 = vmax.f32 %v3682_v60, %v3675_v57 }
 0x178   : > { %v1696_v15 = vpop.f32.mrf.mxu0 }
 0x179   : > { %2798 = vmatmul.msk.f32.vlgmr.msrb.gmra.mxu1 %vm366_vm1, %v1696_v15  ;;  %v3727_v15 = vld [vmem:[#allocation2 + $0x58] sm:$0xff] }
 0x17a   : > { %v942_v17 = vpop.f32.mrf.mxu3 }
 0x17b   : > { %950 = vst.msk [vmem:[#allocation2 + $0xb0] sm:$0xff] %vm444_vm2, %v942_v17  ;;  %v3729_v17 = vld [vmem:[#allocation2 + $0x60] sm:$0xff] }
 0x17e   : > { %v1011_v18 = vpop.f32.mrf.mxu1  ;;  %v1768_v19 = vpop.f32.mrf.mxu2 }
 0x17f   : > { %1021 = vst.msk [vmem:[#allocation2 + $0xc0] sm:$0xff] %vm444_vm2, %v1011_v18  ;;  %2809 = vmatmul.msk.f32.vlgmr.msrb.gmra.mxu3 %vm366_vm1, %v1768_v19  ;;  %v1997_v18 = vadd.f32 %v1994_v3, %v1973_v7  ;;  %v2016_v19 = vadd.f32 %v2013_v41, %v1995_v40 }
 0x180   : > { %v1699_v21 = vpop.f32.mrf.mxu0 }
 0x181   : > { %2799 = vmatmul.msk.f32.gmra.mxu1 %vm366_vm1, %v1699_v21  ;;  %v1852_v21 = vmax.f32 %v1846_v4, %v3692_v1 }
 0x182   : > { %v945_v22 = vpop.f32.mrf.mxu3 }
 0x183   : > { %951 = vst.msk [vmem:[#allocation2 + $0xb8] sm:$0xff] %vm444_vm2, %v945_v22  ;;  %v1857_v22 = vmax.f32 %v1851_v9, %v3694_v2  ;;  %v3798_v9 = vld [vmem:[#allocation2 + $0xa0] sm:$0xff] }
 0x186   : > { %v1014_v23 = vpop.f32.mrf.mxu1  ;;  %v1771_v24 = vpop.f32.mrf.mxu2  ;;  %v3786_v0 = vld [vmem:[#allocation2 + $0xc0] sm:$0xff] }
 0x187   : > { %1022 = vst.msk [vmem:[#allocation2 + $0xc8] sm:$0xff] %vm444_vm2, %v1014_v23  ;;  %2810 = vmatmul.msk.f32.gmra.mxu3 %vm366_vm1, %v1771_v24  ;;  %v2015_v23 = vsel %vm2012_vm11, %v3711_v5, 0.0  ;;  %v2035_v24 = vsel %vm2032_vm13, %v3713_v6, 0.0  ;;  %vm2115_vm11 = vcmp.eq.s32.totalorder %v3653_v49, 7  ;;  %vm2116_vm13 = vcmp.eq.s32.totalorder %v3657_v50, 7 }
 0x188   : > { %v1702_v25 = vpop.f32.mrf.mxu0 }
 0x189   : > { %2800 = vmatmul.msk.f32.gmra.mxu1 %vm366_vm1, %v1702_v25  ;;  %v3741_v25 = vld [vmem:[#allocation2 + $0x68] sm:$0xff] }
 0x18a   : > { %v1083_v26 = vpop.f32.mrf.mxu3 }
 0x18b   : > { %1093 = vst.msk [vmem:[#allocation2 + $0xd8] sm:$0xff] %vm444_vm2, %v1083_v26  ;;  %v3743_v26 = vld [vmem:[#allocation2 + $0x78] sm:$0xff] }
 0x18e   : > { %v1017_v27 = vpop.f32.mrf.mxu1  ;;  %v1774_v28 = vpop.f32.mrf.mxu2 }
 0x18f   : > { %1023 = vst.msk [vmem:[#allocation2 + $0xd0] sm:$0xff] %vm444_vm2, %v1017_v27  ;;  %2811 = vmatmul.msk.f32.gmra.mxu3 %vm366_vm1, %v1774_v28  ;;  %v2017_v27 = vadd.f32 %v2014_v11, %v1996_v8  ;;  %v2037_v28 = vadd.f32 %v2034_v12, %v2016_v19  ;;  %vm2054_vm1 = vcmp.eq.s32.totalorder %v3663_v52, 4 }
 0x192   : > { %v1086_v29 = vpop.f32.mrf.mxu3  ;;  %v3800_v11 = vld [vmem:[#allocation2 + $0xd8] sm:$0xff] }
 0x193   : > { %1094 = vst.msk [vmem:[#allocation2 + $0xe0] sm:$0xff] %vm444_vm2, %v1086_v29  ;;  %v1853_v29 = vmax.f32 %v1847_v14, %v3711_v5  ;;  %v3803_v14 = vld [vmem:[#allocation2 + $0xb0] sm:$0xff] }
 0x196   : > { %v1155_v30 = vpop.f32.mrf.mxu1 }
 0x197   : > { %1165 = vst.msk [vmem:[#allocation2 + $0xf0] sm:$0xff] %vm444_vm2, %v1155_v30  ;;  %v1863_v30 = vmax.f32 %v1857_v22, %v3729_v17 }
 0x19a   : > { %v1089_v10 = vpop.f32.mrf.mxu3 }
 0x19b   : > { %1095 = vst.msk [vmem:[#allocation2 + $0xe8] sm:$0xff] %vm444_vm2, %v1089_v10  ;;  %v2036_v10 = vsel %vm2033_vm15, %v3727_v15, 0.0  ;;  %vm2117_vm15 = vcmp.eq.s32.totalorder %v3663_v52, 7 }
 0x19e   : > { %v1158_v16 = vpop.f32.mrf.mxu1 }
 0x19f   : > { %1166 = vst.msk [vmem:[#allocation2 + $0xf8] sm:$0xff] %vm444_vm2, %v1158_v16  ;;  %v2055_v16 = vsel %vm2052_vm14, %v3729_v17, 0.0  ;;  %vm2136_vm14 = vcmp.eq.s32.totalorder %v3653_v49, 8 }
 0x1a2   : > { %v1227_v31 = vpop.f32.mrf.mxu3 }
 0x1a3   : > { %1237 = vst.msk [vmem:[#allocation2 + $0x108] sm:$0xff] %vm444_vm2, %v1227_v31 }
 0x1a6   : > { %v1161_v32 = vpop.f32.mrf.mxu1 }
 0x1a7   : > { %1167 = vst.msk [vmem:[#allocation2 + $0x100] sm:$0xff] %vm444_vm2, %v1161_v32  ;;  %v1858_v32 = vmax.f32 %v1852_v21, %v3713_v6 }
 0x1aa   : > { %v1230_v33 = vpop.f32.mrf.mxu3 }
 0x1ab   : > { %1238 = vst.msk [vmem:[#allocation2 + $0x110] sm:$0xff] %vm444_vm2, %v1230_v33  ;;  %v3756_v33 = vld [vmem:[#allocation2 + $0x70] sm:$0xff] }
 0x1ac   : > { %v2057_v59 = vsel %vm2054_vm1, %v3756_v33, 0.0  ;;  %vm2157_vm1 = vcmp.eq.s32.totalorder %v3653_v49, 9 }
 0x1ae   : > { %v1299_v20 = vpop.f32.mrf.mxu1 }
 0x1af   : > { %1309 = vst.msk [vmem:[#allocation2 + $0x120] sm:$0xff] %vm444_vm2, %v1299_v20  ;;  %v3758_v20 = vld [vmem:[#allocation2 + $0x80] sm:$0xff] }
 0x1b0   : > { %v2077_v61 = vsel %vm2074_vm5, %v3758_v20, 0.0  ;;  %vm2158_vm5 = vcmp.eq.s32.totalorder %v3657_v50, 9 }
 0x1b2   : > { %v1233_v34 = vpop.f32.mrf.mxu3 }
 0x1b3   : > { %1239 = vst.msk [vmem:[#allocation2 + $0x118] sm:$0xff] %vm444_vm2, %v1233_v34  ;;  %v3760_v34 = vld [vmem:[#allocation2 + $0x90] sm:$0xff] }
 0x1b4   : > { %v2097_v40 = vsel %vm2094_vm7, %v3760_v34, 0.0  ;;  %vm2178_vm7 = vcmp.eq.s32.totalorder %v3653_v49, 10 }
 0x1b6   : > { %v1302_v35 = vpop.f32.mrf.mxu1 }
 0x1b7   : > { %1310 = vst.msk [vmem:[#allocation2 + $0x128] sm:$0xff] %vm444_vm2, %v1302_v35  ;;  %v2018_v35 = vadd.f32 %v2015_v23, %v1997_v18 }
 0x1ba   : > { %v1371_v36 = vpop.f32.mrf.mxu3 }
 0x1bb   : > { %1381 = vst.msk [vmem:[#allocation2 + $0x138] sm:$0xff] %vm444_vm2, %v1371_v36  ;;  %v2038_v36 = vadd.f32 %v2035_v24, %v2017_v27  ;;  %v3809_v24 = vld [vmem:[#allocation2 + $0xf0] sm:$0xff] }
 0x1be   : > { %v1305_v37 = vpop.f32.mrf.mxu1 }
 0x1bf   : > { %1311 = vst.msk [vmem:[#allocation2 + $0x130] sm:$0xff] %vm444_vm2, %v1305_v37  ;;  %v1869_v37 = vmax.f32 %v1863_v30, %v3743_v26  ;;  %v3817_v30 = vld [vmem:[#allocation2 + $0xb8] sm:$0xff] }
 0x1c2   : > { %v1374_v38 = vpop.f32.mrf.mxu3 }
 0x1c3   : > { %1382 = vst.msk [vmem:[#allocation2 + $0x140] sm:$0xff] %vm444_vm2, %v1374_v38  ;;  %v2056_v38 = vsel %vm2053_vm0, %v3741_v25, 0.0  ;;  %vm2137_vm0 = vcmp.eq.s32.totalorder %v3657_v50, 8 }
 0x1c4   : > { %v2059_v39 = vadd.f32 %v2056_v38, %v2038_v36  ;;  %v2119_v36 = vsel %vm2116_vm13, %v3803_v14, 0.0  ;;  %vm2200_vm13 = vcmp.eq.s32.totalorder %v3657_v50, 11 }
 0x1c6   : > { %v1443_v42 = vpop.f32.mrf.mxu1 }
 0x1c7   : > { %1453 = vst.msk [vmem:[#allocation2 + $0x150] sm:$0xff] %vm444_vm2, %v1443_v42  ;;  %v2076_v42 = vsel %vm2073_vm3, %v3743_v26, 0.0  ;;  %vm2138_vm3 = vcmp.eq.s32.totalorder %v3663_v52, 8 }
 0x1ca   : > { %v1377_v43 = vpop.f32.mrf.mxu3 }
 0x1cb   : > { %1383 = vst.msk [vmem:[#allocation2 + $0x148] sm:$0xff] %vm444_vm2, %v1377_v43  ;;  %v1859_v43 = vmax.f32 %v1853_v29, %v3727_v15 }
 0x1cd   : > { %v1865_v41 = vmax.f32 %v1859_v43, %v3756_v33  ;;  %v2139_v43 = vsel %vm2136_vm14, %v3786_v0, 0.0  ;;  %vm2201_vm14 = vcmp.eq.s32.totalorder %v3663_v52, 11 }
 0x1ce   : > { %v1446_v44 = vpop.f32.mrf.mxu1 }
 0x1cf   : > { %1454 = vst.msk [vmem:[#allocation2 + $0x158] sm:$0xff] %vm444_vm2, %v1446_v44  ;;  %v3773_v44 = vld [vmem:[#allocation2 + $0x88] sm:$0xff] }
 0x1d0   : > { %v2078_v7 = vsel %vm2075_vm8, %v3773_v44, 0.0  ;;  %v1871_v23 = vmax.f32 %v1865_v41, %v3773_v44  ;;  %vm2159_vm8 = vcmp.eq.s32.totalorder %v3663_v52, 9 }
 0x1d2   : > { %v1515_v45 = vpop.f32.mrf.mxu3 }
 0x1d3   : > { %1525 = vst.msk [vmem:[#allocation2 + $0x168] sm:$0xff] %vm444_vm2, %v1515_v45  ;;  %v3775_v45 = vld [vmem:[#allocation2 + $0xa8] sm:$0xff] }
 0x1d6   : > { %v1449_v46 = vpop.f32.mrf.mxu1 }
 0x1d7   : > { %1455 = vst.msk [vmem:[#allocation2 + $0x160] sm:$0xff] %vm444_vm2, %v1449_v46  ;;  %v2039_v46 = vadd.f32 %v2036_v10, %v2018_v35 }
 0x1d9   : > { %v2060_v12 = vadd.f32 %v2057_v59, %v2039_v46 }
 0x1da   : > { %v1518_v47 = vpop.f32.mrf.mxu3 }
 0x1db   : > { %1526 = vst.msk [vmem:[#allocation2 + $0x170] sm:$0xff] %vm444_vm2, %v1518_v47  ;;  %v2058_v47 = vadd.f32 %v2055_v16, %v2037_v28  ;;  %v2081_v27 = vadd.f32 %v2078_v7, %v2060_v12  ;;  %v2118_v28 = vsel %vm2115_vm11, %v3775_v45, 0.0  ;;  %v2099_v16 = vsel %vm2096_vm12, %v3798_v9, 0.0  ;;  %v3858_v7 = vld [vmem:[#allocation2 + $0x138] sm:$0xff] }
 0x1dc   : > { %4349 = vst [vmem:[#allocation7_spill] sm:$0xff] %v3858_v7  ;;  %vm2180_vm11 = vcmp.eq.s32.totalorder %v3663_v52, 10  ;;  %vm2199_vm12 = vcmp.eq.s32.totalorder %v3653_v49, 11 }
 0x1dd   : > { %v2079_v3 = vadd.f32 %v2076_v42, %v2058_v47  ;;  %v2102_v59 = vadd.f32 %v2099_v16, %v2081_v27  ;;  %v3869_v27 = vld [vmem:[#allocation2 + $0x150] sm:$0xff] }
 0x1de   : > { %v1587_v48 = vpop.f32.mrf.mxu1 }
 0x1df   : > { %1597 = vst.msk [vmem:[#allocation2 + $0x180] sm:$0xff] %vm444_vm2, %v1587_v48  ;;  %v1864_v48 = vmax.f32 %v1858_v32, %v3741_v25  ;;  %v2100_v21 = vadd.f32 %v2097_v40, %v2079_v3  ;;  %v3826_v32 = vld [vmem:[#allocation2 + $0x108] sm:$0xff]  ;;  %v2160_v40 = vsel %vm2157_vm1, %v3800_v11, 0.0  ;;  %vm2241_vm1 = vcmp.eq.s32.totalorder %v3653_v49, 13 }
 0x1e1   : > { %v1870_v8 = vmax.f32 %v1864_v48, %v3758_v20  ;;  %v2121_v42 = vadd.f32 %v2118_v28, %v2100_v21  ;;  %v3839_v48 = vld [vmem:[#allocation2 + $0xd0] sm:$0xff] }
 0x1e2   : > { %v1521_v53 = vpop.f32.mrf.mxu3 }
 0x1e3   : > { %1527 = vst.msk [vmem:[#allocation2 + $0x178] sm:$0xff] %vm444_vm2, %v1521_v53  ;;  %v1875_v53 = vmax.f32 %v1869_v37, %v3760_v34  ;;  %v1877_v37 = vmax.f32 %v1871_v23, %v3798_v9  ;;  %v3867_v23 = vld [vmem:[#allocation2 + $0xf8] sm:$0xff] }
 0x1e4   : > { %4350 = vst [vmem:[#allocation8_spill] sm:$0xff] %v3867_v23 }
 0x1e5   : > { %v1881_v4 = vmax.f32 %v1875_v53, %v3775_v45  ;;  %v3841_v53 = vld [vmem:[#allocation2 + $0x120] sm:$0xff]  ;;  %v1883_v41 = vmax.f32 %v1877_v37, %v3817_v30 }
 0x1e6   : > { %v1590_v63 = vpop.f32.mrf.mxu1 }
 0x1e7   : > { %1598 = vst.msk [vmem:[#allocation2 + $0x188] sm:$0xff] %vm444_vm2, %v1590_v63  ;;  %v3784_v63 = vld [vmem:[#allocation2 + $0x98] sm:$0xff]  ;;  %v1887_v18 = vmax.f32 %v1881_v4, %v3786_v0  ;;  %v3856_v4 = vld [vmem:[#allocation2 + $0xe0] sm:$0xff]  ;;  %v1889_v37 = vmax.f32 %v1883_v41, %v3839_v48 }
 0x1e8   : > { %v2098_v19 = vsel %vm2095_vm10, %v3784_v63, 0.0  ;;  %v1876_v29 = vmax.f32 %v1870_v8, %v3784_v63  ;;  %v2142_v8 = vadd.f32 %v2139_v43, %v2121_v42  ;;  %vm2179_vm10 = vcmp.eq.s32.totalorder %v3657_v50, 10  ;;  %v3885_v42 = vld [vmem:[#allocation2 + $0x110] sm:$0xff]  ;;  %v3887_v43 = vld [vmem:[#allocation2 + $0x168] sm:$0xff]  ;;  %v3902_v41 = vld [vmem:[#allocation2 + $0x180] sm:$0xff] }
 0x1e9   : > { %v1893_v10 = vmax.f32 %v1887_v18, %v3800_v11  ;;  %4352 = vst [vmem:[#allocation10_spill] sm:$0xff] %v3885_v42 }
 0x1ea   : > { %v1659_v13 = vpop.f32.mrf.mxu3  ;;  %v1882_v47 = vmax.f32 %v1876_v29, %v3803_v14  ;;  %v2163_v29 = vadd.f32 %v2160_v40, %v2142_v8  ;;  %4353 = vst [vmem:[#allocation11_spill] sm:$0xff] %v3887_v43  ;;  %v3900_v40 = vld [vmem:[#allocation2 + $0x128] sm:$0xff] }
 0x1eb   : > { %1669 = vst.msk [vmem:[#allocation2 + $0x198] sm:$0xff] %vm444_vm2, %v1659_v13  ;;  %v2080_v13 = vadd.f32 %v2077_v61, %v2059_v39  ;;  %v1899_v38 = vmax.f32 %v1893_v10, %v3809_v24  ;;  %v2120_v61 = vsel %vm2117_vm15, %v3817_v30, 0.0  ;;  %vm2220_vm15 = vcmp.eq.s32.totalorder %v3653_v49, 12 }
 0x1ec   : > { %v2123_v18 = vadd.f32 %v2120_v61, %v2102_v59  ;;  %4354 = vst [vmem:[#allocation12_spill] sm:$0xff] %v3900_v40 }
 0x1ed   : > { %v2101_v35 = vadd.f32 %v2098_v19, %v2080_v13  ;;  %v2141_v19 = vsel %vm2138_vm3, %v3839_v48, 0.0  ;;  %4355 = vst [vmem:[#allocation13_spill] sm:$0xff] %v3902_v41  ;;  %vm2222_vm3 = vcmp.eq.s32.totalorder %v3663_v52, 12 }
 0x1ee   : > { %v1593_v31 = vpop.f32.mrf.mxu1 }
 0x1ef   : > { %1599 = vst.msk [vmem:[#allocation2 + $0x190] sm:$0xff] %vm444_vm2, %v1593_v31  ;;  %v3824_v31 = vld [vmem:[#allocation2 + $0xc8] sm:$0xff]  ;;  %v2122_v39 = vadd.f32 %v2119_v36, %v2101_v35  ;;  %v2161_v35 = vsel %vm2158_vm5, %v3856_v4, 0.0  ;;  %v2181_v36 = vsel %vm2178_vm7, %v3809_v24, 0.0  ;;  %vm2242_vm5 = vcmp.eq.s32.totalorder %v3657_v50, 13 }
 0x1f0   : > { %v2140_v3 = vsel %vm2137_vm0, %v3824_v31, 0.0  ;;  %v1888_v12 = vmax.f32 %v1882_v47, %v3824_v31  ;;  %vm2221_vm0 = vcmp.eq.s32.totalorder %v3657_v50, 12  ;;  %vm2262_vm7 = vcmp.eq.s32.totalorder %v3653_v49, 14 }
 0x1f1   : > { %v2143_v28 = vadd.f32 %v2140_v3, %v2122_v39 }
 0x1f2   : > { %v1662_v62 = vpop.f32.mrf.mxu3  ;;  %v1894_v10 = vmax.f32 %v1888_v12, %v3856_v4  ;;  %v2184_v12 = vadd.f32 %v2181_v36, %v2163_v29  ;;  %v3918_v29 = vld [vmem:[#allocation2 + $0x198] sm:$0xff] }
 0x1f3   : > { %1670 = vst.msk [vmem:[#allocation2 + $0x1a0] sm:$0xff] %vm444_vm2, %v1662_v62  ;;  %v1905_v62 = vmax.f32 %v1899_v38, %v3826_v32  ;;  %v3883_v38 = vld [vmem:[#allocation2 + $0x100] sm:$0xff]  ;;  %v2164_v8 = vadd.f32 %v2161_v35, %v2143_v28 }
 0x1f4   : > { %4351 = vst [vmem:[#allocation9_spill] sm:$0xff] %v3883_v38  ;;  %v1900_v47 = vmax.f32 %v1894_v10, %v3867_v23  ;;  %v3914_v10 = vld [vmem:[#allocation2 + $0x118] sm:$0xff]  ;;  %v3916_v28 = vld [vmem:[#allocation2 + $0x140] sm:$0xff] }
 0x1f5   : > { %v1911_v13 = vmax.f32 %v1905_v62, %v3841_v53  ;;  %v2182_v62 = vsel %vm2179_vm10, %v3867_v23, 0.0  ;;  %4356 = vst [vmem:[#allocation14_spill] sm:$0xff] %v3914_v10  ;;  %vm2263_vm10 = vcmp.eq.s32.totalorder %v3657_v50, 14 }
 0x1f6   : > { %v1731_v22 = vpop.f32.mrf.mxu1  ;;  %4357 = vst [vmem:[#allocation15_spill] sm:$0xff] %v3918_v29  ;;  %v2185_v35 = vadd.f32 %v2182_v62, %v2164_v8  ;;  %v3933_v62 = vld [vmem:[#allocation2 + $0x130] sm:$0xff] }
 0x1f7   : > { %1741 = vst.msk [vmem:[#allocation2 + $0x1b0] sm:$0xff] %vm444_vm2, %v1731_v22  ;;  %v3865_v22 = vld [vmem:[#allocation2 + $0xe8] sm:$0xff]  ;;  %v1917_v16 = vmax.f32 %v1911_v13, %v3858_v7  ;;  %v1906_v13 = vmax.f32 %v1900_v47, %v3885_v42  ;;  %v2203_v47 = vsel %vm2200_vm13, %v3885_v42, 0.0  ;;  %vm1834_vm13 = vcmp.ne.s32.totalorder %v3657_v50, 255 }
 0x1f8   : > { %v2162_v61 = vsel %vm2159_vm8, %v3865_v22, 0.0  ;;  %v1895_v3 = vmax.f32 %v1889_v37, %v3865_v22  ;;  %vm2243_vm8 = vcmp.eq.s32.totalorder %v3663_v52, 13 }
 0x1f9   : > { %v1923_v59 = vmax.f32 %v1917_v16, %v3869_v27  ;;  %v1912_v36 = vmax.f32 %v1906_v13, %v3900_v40 }
 0x1fa   : > { %v1665_v46 = vpop.f32.mrf.mxu3 }
 0x1fb   : > { %1671 = vst.msk [vmem:[#allocation2 + $0x1a8] sm:$0xff] %vm444_vm2, %v1665_v46  ;;  %v2144_v46 = vadd.f32 %v2141_v19, %v2123_v18  ;;  %v1929_v18 = vmax.f32 %v1923_v59, %v3887_v43  ;;  %v2183_v19 = vsel %vm2180_vm11, %v3883_v38, 0.0  ;;  %v3927_v43 = vld [vmem:[#allocation2 + $0x158] sm:$0xff]  ;;  %v1918_v8 = vmax.f32 %v1912_v36, %v3916_v28  ;;  %v3950_v36 = vld [vmem:[#allocation2 + $0x148] sm:$0xff] }
 0x1fc   : > { %vm1833_vm11 = vcmp.ne.s32.totalorder %v3653_v49, 255 }
 0x1fd   : > { %v2165_v16 = vadd.f32 %v2162_v61, %v2144_v46  ;;  %v1935_v37 = vmax.f32 %v1929_v18, %v3902_v41  ;;  %v2223_v18 = vsel %vm2220_vm15, %v3841_v53, 0.0 }
 0x1fe   : > { %v1734_v21 = vpop.f32.mrf.mxu1  ;;  %v3929_v23 = vld [vmem:[#allocation2 + $0x1b0] sm:$0xff] }
 0x1ff   : > { %1742 = vst.msk [vmem:[#allocation2 + $0x1b8] sm:$0xff] %vm444_vm2, %v1734_v21  ;;  %v2202_v21 = vsel %vm2199_vm12, %v3826_v32, 0.0  ;;  %v2186_v46 = vadd.f32 %v2183_v19, %v2165_v16  ;;  %v1941_v13 = vmax.f32 %v1935_v37, %v3918_v29  ;;  %v3944_v19 = vld [vmem:[#allocation2 + $0x170] sm:$0xff]  ;;  %v2224_v16 = vsel %vm2221_vm0, %v3900_v40, 0.0 }
 0x200   : > { %4358 = vst [vmem:[#allocation16_spill] sm:$0xff] %v3929_v23  ;;  %v2205_v61 = vadd.f32 %v2202_v21, %v2184_v12  ;;  %v2206_v21 = vadd.f32 %v2203_v47, %v2185_v35  ;;  %v1924_v37 = vmax.f32 %v1918_v8, %v3927_v43  ;;  %v3959_v47 = vld [vmem:[#allocation2 + $0x188] sm:$0xff]  ;;  %v3964_v8 = vld [vmem:[#allocation2 + $0x160] sm:$0xff]  ;;  %vm2283_vm12 = vcmp.eq.s32.totalorder %v3653_v49, 15 }
 0x202   : > { %v1803_v39 = vpop.f32.mrf.mxu3 }
 0x203   : > { %1813 = vst.msk [vmem:[#allocation2 + $0x1c8] sm:$0xff] %vm444_vm2, %v1803_v39  ;;  %v1901_v39 = vmax.f32 %v1895_v3, %v3883_v38  ;;  %v2204_v3 = vsel %vm2201_vm14, %v3914_v10, 0.0  ;;  %v3974_v38 = vld [vmem:[#allocation2 + $0x1a0] sm:$0xff] }
 0x204   : > { %v2207_v40 = vadd.f32 %v2204_v3, %v2186_v46 }
 0x205   : > { %v1907_v12 = vmax.f32 %v1901_v39, %v3914_v10  ;;  %v2244_v39 = vsel %vm2241_vm1, %v3858_v7, 0.0  ;;  %v2226_v10 = vadd.f32 %v2223_v18, %v2205_v61  ;;  %v2225_v7 = vsel %vm2222_vm3, %v3933_v62, 0.0 }
 0x206   : > { %v1737_v59 = vpop.f32.mrf.mxu1 }
 0x207   : > { %1743 = vst.msk [vmem:[#allocation2 + $0x1c0] sm:$0xff] %vm444_vm2, %v1737_v59  ;;  %v1947_v59 = vmax.f32 %v1941_v13, %v3929_v23  ;;  %v1913_v35 = vmax.f32 %v1907_v12, %v3933_v62  ;;  %v1930_v13 = vmax.f32 %v1924_v37, %v3944_v19  ;;  %v2227_v12 = vadd.f32 %v2224_v16, %v2206_v21 }
 0x208   : > { %v3979_v46 = vadd.f32 %v2244_v39, %v2226_v10  ;;  %v1821_v16 = vlaneseq  ;;  %v3992_v10 = vld [vmem:[#allocation2 + $0x1b8] sm:$0xff] }
 0x209   : > { %v1919_v42 = vmax.f32 %v1913_v35, %v3950_v36  ;;  %v1936_v61 = vmax.f32 %v1930_v13, %v3959_v47  ;;  %4360 = vst [vmem:[#allocation18_spill] sm:$0xff] %v3992_v10  ;;  %v3996_v35 = vadd.f32 %v2225_v7, %v2207_v40  ;;  %v4011_v40 = vld [vmem:[#allocation2 + $0x190] sm:$0xff] }
 0x20a   : > { %v1806_v29 = vpop.f32.mrf.mxu3  ;;  %v3961_v41 = vld [vmem:[#allocation2 + $0x1c8] sm:$0xff] }
 0x20b   : > { %4359 = vst [vmem:[#allocation17_spill] sm:$0xff] %v3961_v41  ;;  %v3968_v23 = vmax.f32 %v1947_v59, %v3961_v41  ;;  %v1925_v37 = vmax.f32 %v1919_v42, %v3964_v8  ;;  %v3990_v59 = vld [vmem:[#allocation2 + $0x178] sm:$0xff] }
 0x20c   : > { %1814 = vst.msk [vmem:[#allocation2 + $0x1d0] sm:$0xff] %vm444_vm2, %v1806_v29  ;;  %v2245_v29 = vsel %vm2242_vm5, %v3916_v28, 0.0 }
 0x20d   : > { %v1956_v3 = vsub.f32 %v3665_v54, %v3968_v23  ;;  %v1977_v18 = vsub.f32 %v3659_v51, %v3968_v23  ;;  %v1998_v21 = vsub.f32 %v3677_v58, %v3968_v23  ;;  %v2019_v39 = vsub.f32 %v3694_v2, %v3968_v23  ;;  %4361 = vst [vmem:[#allocation19_spill] sm:$0xff] %v3996_v35 }
 0x20e   : > { %v1942_v54 = vmax.f32 %v1936_v61, %v3974_v38  ;;  %v2040_v51 = vsub.f32 %v3729_v17, %v3968_v23  ;;  %v2061_v58 = vsub.f32 %v3743_v26, %v3968_v23  ;;  %v4005_v42 = vadd.f32 %v2245_v29, %v2227_v12  ;;  %v4041_v52 = vld [vmem:[#allocation2 + $0x1c0] sm:$0xff] }
 0x20f   : > { %v1959_v13 = vmul.f32 1.442695, %v1956_v3  ;;  %v1980_v41 = vmul.f32 1.442695, %v1977_v18  ;;  %v2265_v2 = vsel %vm2262_vm7, %v3869_v27, 0.0  ;;  %v1931_v7 = vmax.f32 %v1925_v37, %v3990_v59 }
 0x210   : > { %4362 = vst [vmem:[#allocation20_spill] sm:$0xff] %v4005_v42  ;;  %v1948_v61 = vmax.f32 %v1942_v54, %v3992_v10  ;;  %v2001_v17 = vmul.f32 1.442695, %v1998_v21  ;;  %v4014_v18 = vshrl.u32 %v1821_v16, 7  ;;  %v2022_v12 = vmul.f32 1.442695, %v2019_v39 }
 0x211   : > { %2901 = vpow2.f32 %v1959_v13  ;;  %v2082_v29 = vsub.f32 %v3760_v34, %v3968_v23  ;;  %v4021_v42 = vld [vmem:[#allocation2 + $0x1a8] sm:$0xff]  ;;  %v2043_v54 = vmul.f32 1.442695, %v2040_v51  ;;  %v4029_v21 = vsel %vm2243_vm8, %v3950_v36, 0.0 }
 0x212   : > { %v1809_v3 = vpop.f32.mrf.mxu3  ;;  %2903 = vpow2.f32 %v1980_v41  ;;  %4364 = vst [vmem:[#allocation22_spill] sm:$0xff] %v4029_v21  ;;  %v1823_v41 = vadd.s32 8, %v4014_v18  ;;  %v1825_v16 = vstv %s1820_s27  ;;  %v1937_v34 = vmax.f32 %v1931_v7, %v4011_v40  ;;  %s2464_s27 = scalar_lea.sflag [#allocation4], %s305_s6 }
 0x213   : > { %v4016_v26 = vld [vmem:[#allocation2 + $0x1d0] sm:$0xff]  ;;  %1815 = vst.msk [vmem:[#allocation2 + $0x1d8] sm:$0xff] %vm444_vm2, %v1809_v3  ;;  %v2064_v39 = vmul.f32 1.442695, %v2061_v58  ;;  %2905 = vpow2.f32 %v2001_v17  ;;  %v2085_v7 = vmul.f32 1.442695, %v2082_v29  ;;  %v4055_v29 = vadd.s32 %v1825_v16, %v4014_v18 }
 0x214   : > { %4363 = vst [vmem:[#allocation21_spill] sm:$0xff] %v4016_v26  ;;  %v4024_v37 = vmax.f32 %v1948_v61, %v4016_v26  ;;  %v1943_v3 = vmax.f32 %v1937_v34, %v4021_v42  ;;  %2907 = vpow2.f32 %v2022_v12  ;;  %v4052_v12 = vadd.f32 %v2265_v2, %v3979_v46 }
 0x215   : > { %2909 = vpow2.f32 %v2043_v54  ;;  %vm1829_vm15 = vcmp.lt.s32.totalorder %v4055_v29, 40 }
 0x216   : > { %v1957_v13 = vsub.f32 %v3672_v56, %v4024_v37  ;;  %v1978_v61 = vsub.f32 %v3667_v55, %v4024_v37  ;;  %v1999_v51 = vsub.f32 %v3692_v1, %v4024_v37  ;;  %v2020_v21 = vsub.f32 %v3713_v6, %v4024_v37  ;;  %vm4179_vm3 = vmand %vm1833_vm11, %vm1829_vm15 }
 0x217   : > { %v2902_v58 = vpop.eup %2901  ;;  %v2041_v56 = vsub.f32 %v3741_v25, %v4024_v37  ;;  %v1824_v1 = vadd.s32 16, %v4014_v18  ;;  %v2062_v34 = vsub.f32 %v3758_v20, %v4024_v37  ;;  %2911 = vpow2.f32 %v2064_v39 }
 0x218   : > { %v1961_v35 = vmul.f32 1.442695, %v1957_v13  ;;  %v1982_v26 = vmul.f32 1.442695, %v1978_v61  ;;  %v2904_v55 = vpop.eup %2903  ;;  %v2003_v17 = vmul.f32 1.442695, %v1999_v51  ;;  %v1949_v10 = vmax.f32 %v1943_v3, %v4041_v52 }
 0x219   : > { %v1986_v6 = vadd.f32 %v2904_v55, %v2902_v58  ;;  %v2024_v54 = vmul.f32 1.442695, %v2020_v21  ;;  %v4062_v13 = vsel %vm2263_vm10, %v3927_v43, 0.0  ;;  %v2906_v20 = vpop.eup %2905  ;;  %v4064_v39 = vadd.s32 %v1825_v16, %v1823_v41 }
 0x21a   : > { %2913 = vpow2.f32 %v1961_v35  ;;  %v4057_v25 = vld [vmem:[#allocation2 + $0x1d8] sm:$0xff]  ;;  %v2045_v46 = vmul.f32 1.442695, %v2041_v56  ;;  %v2908_v2 = vpop.eup %2907  ;;  %v4069_v61 = vadd.s32 %v1825_v16, %v1824_v1 }
 0x21b   : > { %2915 = vpow2.f32 %v1982_v26  ;;  %v4067_v35 = vmax.f32 %v1949_v10, %v4057_v25  ;;  %v2007_v51 = vadd.f32 %v2906_v20, %v1986_v6  ;;  %v2066_v26 = vmul.f32 1.442695, %v2062_v34  ;;  %v2910_v21 = vpop.eup %2909 }
 0x21c   : > { %2917 = vpow2.f32 %v2085_v7  ;;  %vm1830_vm0 = vcmp.lt.s32.totalorder %v4064_v39, 40  ;;  %vm1831_vm1 = vcmp.lt.s32.totalorder %v4069_v61, 40 }
 0x21d   : > { %2919 = vpow2.f32 %v2003_v17  ;;  %v1958_v3 = vsub.f32 %v3682_v60, %v4067_v35  ;;  %v1979_v58 = vsub.f32 %v3675_v57, %v4067_v35  ;;  %v2000_v41 = vsub.f32 %v3711_v5, %v4067_v35  ;;  %v2912_v7 = vpop.eup %2911  ;;  %vm4191_vm7 = vmand %vm1834_vm13, %vm1830_vm0 }
 0x21e   : > { %v2021_v10 = vsub.f32 %v3727_v15, %v4067_v35  ;;  %2921 = vpow2.f32 %v2024_v54  ;;  %v2042_v16 = vsub.f32 %v3756_v33, %v4067_v35  ;;  %v2063_v56 = vsub.f32 %v3773_v44, %v4067_v35 }
 0x21f   : > { %v2083_v60 = vsub.f32 %v3784_v63, %v4024_v37  ;;  %v1963_v1 = vmul.f32 1.442695, %v1958_v3  ;;  %v1984_v57 = vmul.f32 1.442695, %v1979_v58  ;;  %v2005_v17 = vmul.f32 1.442695, %v2000_v41 }
 0x220   : > { %v2914_v55 = vpop.eup %2913  ;;  %2923 = vpow2.f32 %v2045_v46  ;;  %v2026_v34 = vmul.f32 1.442695, %v2021_v10  ;;  %v2028_v6 = vadd.f32 %v2908_v2, %v2007_v51  ;;  %v2103_v15 = vsub.f32 %v3775_v45, %v3968_v23 }
 0x221   : > { %v2916_v5 = vpop.eup %2915  ;;  %2925 = vpow2.f32 %v2066_v26  ;;  %v2047_v20 = vmul.f32 1.442695, %v2042_v16  ;;  %v2084_v44 = vsub.f32 %v3798_v9, %v4067_v35  ;;  %v2068_v3 = vmul.f32 1.442695, %v2063_v56 }
 0x222   : > { %v2918_v54 = vpop.eup %2917  ;;  %2927 = vpow2.f32 %v1963_v1  ;;  %v1987_v33 = vadd.f32 %v2916_v5, %v2914_v55  ;;  %v2104_v46 = vsub.f32 %v3803_v14, %v4024_v37  ;;  %v2124_v2 = vsub.f32 %v3786_v0, %v3968_v23 }
 0x223   : > { %v2920_v63 = vpop.eup %2919  ;;  %2929 = vpow2.f32 %v1984_v57  ;;  %v2087_v26 = vmul.f32 1.442695, %v2083_v60  ;;  %v2105_v45 = vsub.f32 %v3817_v30, %v4067_v35  ;;  %v2049_v41 = vadd.f32 %v2910_v21, %v2028_v6 }
 0x224   : > { %2931 = vpow2.f32 %v2005_v17  ;;  %v2008_v51 = vadd.f32 %v2920_v63, %v1987_v33  ;;  %v2922_v58 = vpop.eup %2921  ;;  %v2089_v10 = vmul.f32 1.442695, %v2084_v44  ;;  %v2106_v9 = vmul.f32 1.442695, %v2103_v15 }
 0x225   : > { %2933 = vpow2.f32 %v2026_v34  ;;  %v2125_v14 = vsub.f32 %v3824_v31, %v4024_v37  ;;  %v2145_v0 = vsub.f32 %v3800_v11, %v3968_v23  ;;  %v2108_v60 = vmul.f32 1.442695, %v2104_v46 }
 0x226   : > { %v2924_v16 = vpop.eup %2923  ;;  %v2029_v55 = vadd.f32 %v2922_v58, %v2008_v51  ;;  %2935 = vpow2.f32 %v2047_v20  ;;  %v2126_v30 = vsub.f32 %v3839_v48, %v4067_v35  ;;  %v2127_v1 = vmul.f32 1.442695, %v2124_v2 }
 0x227   : > { %v2926_v56 = vpop.eup %2925  ;;  %2937 = vpow2.f32 %v2068_v3  ;;  %v2110_v17 = vmul.f32 1.442695, %v2105_v45  ;;  %v2166_v5 = vsub.f32 %v3809_v24, %v3968_v23  ;;  %v2070_v6 = vadd.f32 %v2912_v7, %v2049_v41 }
 0x228   : > { %v2928_v57 = vpop.eup %2927  ;;  %v2050_v21 = vadd.f32 %v2924_v16, %v2029_v55  ;;  %2939 = vpow2.f32 %v2087_v26  ;;  %v2146_v11 = vsub.f32 %v3856_v4, %v4024_v37  ;;  %v2187_v31 = vsub.f32 %v3826_v32, %v3968_v23  ;;  %v4365_v4 = vld [vmem:[#allocation8_spill] sm:$0xff] }
 0x229   : > { %v2930_v34 = vpop.eup %2929  ;;  %2941 = vpow2.f32 %v2089_v10  ;;  %v2129_v48 = vmul.f32 1.442695, %v2125_v14  ;;  %v2147_v20 = vsub.f32 %v3865_v22, %v4067_v35  ;;  %v2131_v24 = vmul.f32 1.442695, %v2126_v30  ;;  %v4366_v22 = vld [vmem:[#allocation9_spill] sm:$0xff] }
 0x22a   : > { %v2932_v15 = vpop.eup %2931  ;;  %v1988_v33 = vadd.f32 %v2930_v34, %v2928_v57  ;;  %2943 = vpow2.f32 %v2106_v9  ;;  %v2071_v63 = vadd.f32 %v2926_v56, %v2050_v21  ;;  %v2148_v3 = vmul.f32 1.442695, %v2145_v0  ;;  %v4367_v0 = vld [vmem:[#allocation10_spill] sm:$0xff] }
 0x22b   : > { %v2934_v44 = vpop.eup %2933  ;;  %2945 = vpow2.f32 %v2108_v60  ;;  %v2167_v2 = vsub.f32 %v4365_v4, %v4024_v37  ;;  %v2208_v32 = vsub.f32 %v3841_v53, %v3968_v23  ;;  %v2091_v26 = vadd.f32 %v2918_v54, %v2070_v6  ;;  %v4368_v53 = vld [vmem:[#allocation14_spill] sm:$0xff] }
 0x22c   : > { %v2936_v7 = vpop.eup %2935  ;;  %v2009_v46 = vadd.f32 %v2932_v15, %v1988_v33  ;;  %2947 = vpow2.f32 %v2110_v17  ;;  %v2150_v45 = vmul.f32 1.442695, %v2146_v11  ;;  %v2168_v58 = vsub.f32 %v4366_v22, %v4067_v35 }
 0x22d   : > { %v2938_v51 = vpop.eup %2937  ;;  %2949 = vpow2.f32 %v2127_v1  ;;  %v2152_v9 = vmul.f32 1.442695, %v2147_v20  ;;  %v2169_v16 = vmul.f32 1.442695, %v2166_v5  ;;  %v2188_v56 = vsub.f32 %v4367_v0, %v4024_v37  ;;  %v4369_v5 = vld [vmem:[#allocation12_spill] sm:$0xff] }
 0x22e   : > { %v2940_v41 = vpop.eup %2939  ;;  %v2030_v10 = vadd.f32 %v2934_v44, %v2009_v46  ;;  %2951 = vpow2.f32 %v2129_v48  ;;  %v2189_v60 = vsub.f32 %v4368_v53, %v4067_v35  ;;  %v2171_v1 = vmul.f32 1.442695, %v2167_v2 }
 0x22f   : > { %v2942_v55 = vpop.eup %2941  ;;  %v2092_v14 = vadd.f32 %v2940_v41, %v2071_v63  ;;  %2953 = vpow2.f32 %v2131_v24  ;;  %v2190_v57 = vmul.f32 1.442695, %v2187_v31  ;;  %v2173_v34 = vmul.f32 1.442695, %v2168_v58  ;;  %v4370_v31 = vld [vmem:[#allocation7_spill] sm:$0xff] }
 0x230   : > { %v2944_v54 = vpop.eup %2943  ;;  %v2051_v30 = vadd.f32 %v2936_v7, %v2030_v10  ;;  %2955 = vpow2.f32 %v2148_v3  ;;  %v2209_v6 = vsub.f32 %v4369_v5, %v4024_v37  ;;  %v2210_v48 = vsub.f32 %v3933_v62, %v4067_v35 }
 0x231   : > { %v2946_v21 = vpop.eup %2945  ;;  %v2112_v17 = vadd.f32 %v2944_v54, %v2091_v26  ;;  %2957 = vpow2.f32 %v2150_v45  ;;  %v2192_v44 = vmul.f32 1.442695, %v2188_v56  ;;  %v2194_v63 = vmul.f32 1.442695, %v2189_v60 }
 0x232   : > { %v2948_v11 = vpop.eup %2947  ;;  %v2072_v15 = vadd.f32 %v2938_v51, %v2051_v30  ;;  %v2113_v33 = vadd.f32 %v2946_v21, %v2092_v14  ;;  %2959 = vpow2.f32 %v2152_v9  ;;  %v2229_v24 = vsub.f32 %v4370_v31, %v3968_v23 }
 0x233   : > { %v2950_v20 = vpop.eup %2949  ;;  %2961 = vpow2.f32 %v2169_v16  ;;  %v2211_v4 = vmul.f32 1.442695, %v2208_v32  ;;  %v2230_v51 = vsub.f32 %v3916_v28, %v4024_v37  ;;  %v2231_v62 = vsub.f32 %v3950_v36, %v4067_v35 }
 0x234   : > { %v2952_v3 = vpop.eup %2951  ;;  %v2093_v7 = vadd.f32 %v2942_v55, %v2072_v15  ;;  %v2133_v46 = vadd.f32 %v2950_v20, %v2112_v17  ;;  %2963 = vpow2.f32 %v2171_v1  ;;  %v2213_v58 = vmul.f32 1.442695, %v2209_v6 }
 0x235   : > { %v2954_v2 = vpop.eup %2953  ;;  %v2134_v26 = vadd.f32 %v2952_v3, %v2113_v33  ;;  %2965 = vpow2.f32 %v2173_v34  ;;  %v2215_v41 = vmul.f32 1.442695, %v2210_v48  ;;  %v2232_v16 = vmul.f32 1.442695, %v2229_v24 }
 0x236   : > { %v2956_v45 = vpop.eup %2955  ;;  %v2114_v22 = vadd.f32 %v2948_v11, %v2093_v7  ;;  %2967 = vpow2.f32 %v2190_v57  ;;  %v2250_v32 = vsub.f32 %v3869_v27, %v3968_v23  ;;  %v2251_v28 = vsub.f32 %v3927_v43, %v4024_v37  ;;  %v4371_v27 = vld [vmem:[#allocation11_spill] sm:$0xff] }
 0x237   : > { %v2958_v10 = vpop.eup %2957  ;;  %v2154_v9 = vadd.f32 %v2956_v45, %v2133_v46  ;;  %2969 = vpow2.f32 %v2192_v44  ;;  %v2234_v56 = vmul.f32 1.442695, %v2230_v51  ;;  %v2236_v53 = vmul.f32 1.442695, %v2231_v62  ;;  %v4372_v44 = vld [vmem:[#allocation13_spill] sm:$0xff] }
 0x238   : > { %v2960_v55 = vpop.eup %2959  ;;  %v2135_v14 = vadd.f32 %v2954_v2, %v2114_v22  ;;  %v2155_v0 = vadd.f32 %v2958_v10, %v2134_v26  ;;  %2971 = vpow2.f32 %v2194_v63  ;;  %v2252_v60 = vsub.f32 %v3964_v8, %v4067_v35  ;;  %v4373_v22 = vld [vmem:[#allocation15_spill] sm:$0xff] }
 0x239   : > { %v2962_v36 = vpop.eup %2961  ;;  %2973 = vpow2.f32 %v2211_v4  ;;  %v2271_v57 = vsub.f32 %v4371_v27, %v3968_v23  ;;  %v2253_v34 = vmul.f32 1.442695, %v2250_v32  ;;  %v2272_v43 = vsub.f32 %v3944_v19, %v4024_v37 }
 0x23a   : > { %v2964_v54 = vpop.eup %2963  ;;  %v2156_v30 = vadd.f32 %v2960_v55, %v2135_v14  ;;  %v2175_v1 = vadd.f32 %v2962_v36, %v2154_v9  ;;  %2975 = vpow2.f32 %v2213_v58  ;;  %v2255_v11 = vmul.f32 1.442695, %v2251_v28 }
 0x23b   : > { %v2966_v21 = vpop.eup %2965  ;;  %v2176_v17 = vadd.f32 %v2964_v54, %v2155_v0  ;;  %2977 = vpow2.f32 %v2215_v41  ;;  %v2273_v15 = vsub.f32 %v3990_v59, %v4067_v35  ;;  %v2257_v20 = vmul.f32 1.442695, %v2252_v60 }
 0x23c   : > { %v2968_v5 = vpop.eup %2967  ;;  %v2177_v6 = vadd.f32 %v2966_v21, %v2156_v30  ;;  %2979 = vpow2.f32 %v2232_v16  ;;  %v2292_v63 = vsub.f32 %v4372_v44, %v3968_v23  ;;  %v2274_v3 = vmul.f32 1.442695, %v2271_v57  ;;  %v4375_v57 = vld [vmem:[#allocation18_spill] sm:$0xff] }
 0x23d   : > { %v2970_v33 = vpop.eup %2969  ;;  %v2196_v48 = vadd.f32 %v2968_v5, %v2175_v1  ;;  %2981 = vpow2.f32 %v2234_v56  ;;  %v2293_v7 = vsub.f32 %v3959_v47, %v4024_v37  ;;  %v2276_v2 = vmul.f32 1.442695, %v2272_v43 }
 0x23e   : > { %v2972_v31 = vpop.eup %2971  ;;  %v2197_v24 = vadd.f32 %v2970_v33, %v2176_v17  ;;  %2983 = vpow2.f32 %v2236_v53  ;;  %v2294_v26 = vsub.f32 %v4011_v40, %v4067_v35  ;;  %v2278_v45 = vmul.f32 1.442695, %v2273_v15  ;;  %v4374_v53 = vld [vmem:[#allocation16_spill] sm:$0xff]  ;;  %v4376_v33 = vld [vmem:[#allocation17_spill] sm:$0xff] }
 0x23f   : > { %v2974_v46 = vpop.eup %2973  ;;  %v2198_v4 = vadd.f32 %v2972_v31, %v2177_v6  ;;  %2985 = vpow2.f32 %v2253_v34  ;;  %v2313_v58 = vsub.f32 %v4373_v22, %v3968_v23  ;;  %v2295_v9 = vmul.f32 1.442695, %v2292_v63 }
 0x240   : > { %v2976_v51 = vpop.eup %2975  ;;  %v2217_v62 = vadd.f32 %v2974_v46, %v2196_v48  ;;  %2987 = vpow2.f32 %v2255_v11  ;;  %v2314_v16 = vsub.f32 %v3974_v38, %v4024_v37  ;;  %v2297_v14 = vmul.f32 1.442695, %v2293_v7 }
 0x241   : > { %v2978_v41 = vpop.eup %2977  ;;  %v2218_v10 = vadd.f32 %v2976_v51, %v2197_v24  ;;  %2989 = vpow2.f32 %v2257_v20  ;;  %v2315_v0 = vsub.f32 %v4021_v42, %v4067_v35  ;;  %v2299_v56 = vmul.f32 1.442695, %v2294_v26  ;;  %v4377_v24 = vld [vmem:[#allocation21_spill] sm:$0xff]  ;;  %v4169_v51 = vld [vmem:[%s3650_s30 + $0x10] sm:$0xff] }
 0x242   : > { %v2980_v32 = vpop.eup %2979  ;;  %v2219_v55 = vadd.f32 %v2978_v41, %v2198_v4  ;;  %2991 = vpow2.f32 %v2274_v3  ;;  %v2334_v60 = vsub.f32 %v4374_v53, %v3968_v23  ;;  %v2316_v1 = vmul.f32 1.442695, %v2313_v58 }
 0x243   : > { %v2982_v28 = vpop.eup %2981  ;;  %v2238_v36 = vadd.f32 %v2980_v32, %v2217_v62  ;;  %2993 = vpow2.f32 %v2276_v2  ;;  %v2335_v21 = vsub.f32 %v4375_v57, %v4024_v37  ;;  %v2318_v43 = vmul.f32 1.442695, %v2314_v16 }
 0x244   : > { %v2984_v54 = vpop.eup %2983  ;;  %v2239_v30 = vadd.f32 %v2982_v28, %v2218_v10  ;;  %2995 = vpow2.f32 %v2278_v45  ;;  %v2336_v5 = vsub.f32 %v4041_v52, %v4067_v35  ;;  %v2320_v15 = vmul.f32 1.442695, %v2315_v0 }
 0x245   : > { %v2986_v17 = vpop.eup %2985  ;;  %v2240_v34 = vadd.f32 %v2984_v54, %v2219_v55  ;;  %2997 = vpow2.f32 %v2295_v9  ;;  %v2355_v48 = vsub.f32 %v4376_v33, %v3968_v23  ;;  %v2337_v31 = vmul.f32 1.442695, %v2334_v60 }
 0x246   : > { %v2988_v6 = vpop.eup %2987  ;;  %v2259_v11 = vadd.f32 %v2986_v17, %v2238_v36  ;;  %2999 = vpow2.f32 %v2297_v14  ;;  %v2356_v3 = vsub.f32 %v4377_v24, %v4024_v37  ;;  %v2339_v4 = vmul.f32 1.442695, %v2335_v21 }
 0x247   : > { %v2990_v20 = vpop.eup %2989  ;;  %v2260_v63 = vadd.f32 %v2988_v6, %v2239_v30  ;;  %3001 = vpow2.f32 %v2299_v56  ;;  %v2357_v2 = vsub.f32 %v4057_v25, %v4067_v35  ;;  %vm1835_vm14 = vcmp.ne.s32.totalorder %v4169_v51, 255  ;;  %v4196_v30 = vld [vmem:[%s3650_s30 + $0x8] sm:$0xff] }
 0x248   : > { %v2992_v7 = vpop.eup %2991  ;;  %v2261_v46 = vadd.f32 %v2990_v20, %v2240_v34  ;;  %3003 = vpow2.f32 %v2316_v1  ;;  %v2341_v45 = vmul.f32 1.442695, %v2336_v5  ;;  %v2358_v10 = vmul.f32 1.442695, %v2355_v48  ;;  %vm4203_vm10 = vmand %vm1835_vm14, %vm1831_vm1 }
 0x249   : > { %v2994_v26 = vpop.eup %2993  ;;  %v2280_v62 = vadd.f32 %v2992_v7, %v2259_v11  ;;  %3005 = vpow2.f32 %v2318_v43  ;;  %v2360_v32 = vmul.f32 1.442695, %v2356_v3  ;;  %v2362_v0 = vmul.f32 1.442695, %v2357_v2 }
 0x24a   : > { %v2996_v58 = vpop.eup %2995  ;;  %v2281_v41 = vadd.f32 %v2994_v26, %v2260_v63  ;;  %3007 = vpow2.f32 %v2320_v15  ;;  %vm2264_vm5 = vcmp.eq.s32.totalorder %v4169_v51, 14  ;;  %v2286_v56 = vsel %vm2283_vm12, %v4371_v27, 0.0  ;;  %v4384_v26 = vld [vmem:[#allocation19_spill] sm:$0xff] }
 0x24b   : > { %v2998_v9 = vpop.eup %2997  ;;  %v2282_v16 = vadd.f32 %v2996_v58, %v2261_v46  ;;  %3009 = vpow2.f32 %v2337_v31  ;;  %vm2284_vm8 = vcmp.eq.s32.totalorder %v4196_v30, 15  ;;  %v3126_v17 = vmov 0.0   ;;  %v4386_v58 = vld [vmem:[#allocation20_spill] sm:$0xff] }
 0x24c   : > { %v3000_v55 = vpop.eup %2999  ;;  %v2301_v14 = vadd.f32 %v2998_v9, %v2280_v62  ;;  %3011 = vpow2.f32 %v2339_v4  ;;  %v2812_v34 = vsel %vm4179_vm3, 1.0, %v3126_v17  ;;  %v2813_v43 = vsel %vm4191_vm7, 1.0, %v3126_v17  ;;  %v4385_v62 = vld [vmem:[#allocation22_spill] sm:$0xff] }
 0x24d   : > { %v3002_v28 = vpop.eup %3001  ;;  %v2302_v60 = vadd.f32 %v3000_v55, %v2281_v41  ;;  %3013 = vpow2.f32 %v2341_v45  ;;  %v2814_v61 = vsel %vm4203_vm10, 1.0, %v3126_v17  ;;  %v2431_v11 = vsel %vm444_vm2, %v2812_v34, 0.0 }
 0x24e   : > { %v3004_v54 = vpop.eup %3003  ;;  %v2303_v1 = vadd.f32 %v3002_v28, %v2282_v16  ;;  %3015 = vpow2.f32 %v2358_v10  ;;  %vm2285_vm11 = vcmp.eq.s32.totalorder %v4169_v51, 15  ;;  %v2432_v20 = vsel %vm444_vm2, %v2813_v43, 0.0  ;;  %v3029_v10 = vld [vmem:[%s3650_s30] sm:$0xff]  ;;  %s2480_s30 = sshll.u32 %s2476_s24, 4  ;;  %s2481_s30 = int_to_ptr.hbm [resolvable:$true] %s2480_s30 }
 0x24f   : > { %v3006_v21 = vpop.eup %3005  ;;  %v2322_v39 = vadd.f32 %v3004_v54, %v2301_v14  ;;  %3017 = vpow2.f32 %v2360_v32  ;;  %v2434_v63 = vsel %vm444_vm2, %v2814_v61, 0.0  ;;  %v2267_v3 = vsel %vm2264_vm5, %v3964_v8, 0.0  ;;  %s3044_s5 = sshra.s32 %s2481_s30, 4  ;;  %s3045_s5 = int_to_ptr.hbm [resolvable:$true] %s3044_s5 }
 0x250   : > { %v3008_v5 = vpop.eup %3007  ;;  %v2323_v6 = vadd.f32 %v3006_v21, %v2302_v60  ;;  %3019 = vpow2.f32 %v2362_v0  ;;  %v2287_v7 = vsel %vm2284_vm8, %v3944_v19, 0.0  ;;  %v2433_v4 = vadd.f32 %v2432_v20, %v2431_v11  ;;  %s3046_s8 = scalar_lea.hbm %s3045_s5, 8  ;;  %p3051_p5 = scmp.lt.s32.totalorder %s3045_s5, %s4324_s4 }
 0x251   : > { %v3010_v15 = vpop.eup %3009  ;;  %v2324_v48 = vadd.f32 %v3008_v5, %v2303_v1  ;;  %v2249_v45 = vadd.f32 %v4385_v62, %v4384_v26  ;;  %v2269_v41 = vadd.f32 %v4062_v13, %v4386_v58  ;;  %vm2304_vm12 = vcmp.eq.s32.totalorder %v3029_v10, 16  ;;  %p3047_p1 = scmp.ne.s32.totalorder %s3045_s5, %s3046_s8 }
 0x252   : > { %v3012_v31 = vpop.eup %3011  ;;  %v2343_v46 = vadd.f32 %v3010_v15, %v2322_v39  ;;  %v2288_v8 = vsel %vm2285_vm11, %v3990_v59, 0.0  ;;  %v2289_v32 = vadd.f32 %v2286_v56, %v4052_v12  ;;  %v2435_v55 = vadd.f32 %v2434_v63, %v2433_v4 }
 0x253   : > { %v3014_v2 = vpop.eup %3013  ;;  %v2344_v9 = vadd.f32 %v3012_v31, %v2323_v6  ;;  %v2270_v0 = vadd.f32 %v2267_v3, %v2249_v45  ;;  %v2290_v28 = vadd.f32 %v2287_v7, %v2269_v41  ;;  %vm2305_vm13 = vcmp.eq.s32.totalorder %v4196_v30, 16  ;;  %p3048_p2 = pnand %p3047_p1, %p3204_p3 }
 0x254   : > { %v3016_v16 = vpop.eup %3015  ;;  %v2345_v19 = vadd.f32 %v3014_v2, %v2324_v48  ;;  %vm2306_vm14 = vcmp.eq.s32.totalorder %v4169_v51, 16  ;;  %v2307_v13 = vsel %vm2304_vm12, %v4372_v44, 0.0  ;;  %vm2325_vm15 = vcmp.eq.s32.totalorder %v3029_v10, 17  ;;  %2436 = vadd.xlane.f32.xlu1 %v2435_v55 }
 0x255   : > { %v3018_v14 = vpop.eup %3017  ;;  %v2364_v60 = vadd.f32 %v3016_v16, %v2343_v46  ;;  %v2291_v21 = vadd.f32 %v2288_v8, %v2270_v0  ;;  %vm2326_vm0 = vcmp.eq.s32.totalorder %v4196_v30, 17  ;;  %v2308_v12 = vsel %vm2305_vm13, %v3959_v47, 0.0  ;;  %p3049_p4 = pneg %p3048_p2 }
 0x256   : > { %v3020_v54 = vpop.eup %3019  ;;  %v2365_v1 = vadd.f32 %v3018_v14, %v2344_v9  ;;  %vm2327_vm1 = vcmp.eq.s32.totalorder %v4169_v51, 17  ;;  %vm2346_vm5 = vcmp.eq.s32.totalorder %v3029_v10, 18  ;;  %v2309_v56 = vsel %vm2306_vm14, %v4011_v40, 0.0 }
 0x257   : > { %v2366_v59 = vadd.f32 %v3020_v54, %v2345_v19  ;;  %3021 = vlog2.f32 %v2364_v60  ;;  %v2328_v39 = vsel %vm2325_vm15, %v4373_v22, 0.0  ;;  %vm2347_vm8 = vcmp.eq.s32.totalorder %v4196_v30, 18 }
 0x258   : > { %3023 = vlog2.f32 %v2365_v1  ;;  %v2310_v44 = vadd.f32 %v2307_v13, %v2289_v32  ;;  %v2329_v17 = vsel %vm2326_vm0, %v3974_v38, 0.0  ;;  %vm2348_vm11 = vcmp.eq.s32.totalorder %v4169_v51, 18 }
 0x259   : > { %3025 = vlog2.f32 %v2366_v59  ;;  %vm2367_vm12 = vcmp.eq.s32.totalorder %v3029_v10, 19  ;;  %v2311_v34 = vadd.f32 %v2308_v12, %v2290_v28  ;;  %v2330_v47 = vsel %vm2327_vm1, %v4021_v42, 0.0 }
 0x25a   : > { %v2349_v43 = vsel %vm2346_vm5, %v4374_v53, 0.0  ;;  %vm2368_vm13 = vcmp.eq.s32.totalorder %v4196_v30, 19  ;;  %v2312_v5 = vadd.f32 %v2309_v56, %v2291_v21  ;;  %v2331_v40 = vadd.f32 %v2328_v39, %v2310_v44 }
 0x25b   : > { %v2350_v22 = vsel %vm2347_vm8, %v4375_v57, 0.0  ;;  %vm2369_vm14 = vcmp.eq.s32.totalorder %v4169_v51, 19  ;;  %v2332_v61 = vadd.f32 %v2329_v17, %v2311_v34  ;;  %v2351_v38 = vsel %vm2348_vm11, %v4041_v52, 0.0 }
 0x25c   : > { %v2370_v11 = vsel %vm2367_vm12, %v4376_v33, 0.0  ;;  %v2333_v48 = vadd.f32 %v2330_v47, %v2312_v5  ;;  %v2352_v20 = vadd.f32 %v2349_v43, %v2331_v40  ;;  %v2371_v42 = vsel %vm2368_vm13, %v4377_v24, 0.0 }
 0x25d   : > { %v3022_v6 = vpop.eup %3021  ;;  %v2353_v30 = vadd.f32 %v2350_v22, %v2332_v61  ;;  %v2372_v31 = vsel %vm2369_vm14, %v4057_v25, 0.0  ;;  %v3127_v58 = vmov 51.0  }
 0x25e   : > { %v3024_v15 = vpop.eup %3023  ;;  %v2377_v53 = vmul.f32 0.6931472, %v3022_v6  ;;  %v2354_v57 = vadd.f32 %v2351_v38, %v2333_v48  ;;  %v2373_v7 = vadd.f32 %v2370_v11, %v2352_v20  ;;  %v2392_v41 = vsel %vm1969_vm6, 1.0, %v3127_v58 }
 0x25f   : > { %v3026_v63 = vpop.eup %3025  ;;  %v2379_v3 = vmul.f32 0.6931472, %v3024_v15  ;;  %v2374_v4 = vadd.f32 %v2371_v42, %v2353_v30  ;;  %v2391_v10 = vsel %vm1968_vm4, 1.0, %v3127_v58  ;;  %v2393_v36 = vsel %vm1970_vm9, 1.0, %v3127_v58 }
 0x260   : > { %v2381_v51 = vmul.f32 0.6931472, %v3026_v63  ;;  %v2382_v46 = vadd.f32 %v2377_v53, %v3968_v23  ;;  %v2375_v33 = vadd.f32 %v2372_v31, %v2354_v57  ;;  %vm2453_vm4 = vcmp.eq.s32.totalorder %v4014_v18, 1 }
 0x261   : > { %v2383_v52 = vadd.f32 %v2379_v3, %v4024_v37  ;;  %vm2457_vm6 = vcmp.eq.s32.totalorder %v4014_v18, 2 }
 0x262   : > { %v2384_v2 = vadd.f32 %v2381_v51, %v4067_v35  ;;  %v2385_v26 = vsub.f32 %v2382_v46, %v2373_v7 }
 0x263   : > { %v2386_v62 = vsub.f32 %v2383_v52, %v2374_v4 }
 0x264   : > { %v2387_v24 = vsub.f32 %v2384_v2, %v2375_v33  ;;  %v2388_v45 = vsel %vm4179_vm3, %v2385_v26, 0.0 }
 0x265   : > { %v2389_v25 = vsel %vm4191_vm7, %v2386_v62, 0.0  ;;  %v2394_v37 = vsel %vm444_vm2, %v2388_v45, 0.0  ;;  %v2408_v50 = vmul.f32 %v2391_v10, %v2388_v45 }
 0x266   : > { %v2390_v23 = vsel %vm4203_vm10, %v2387_v24, 0.0  ;;  %v2395_v35 = vsel %vm444_vm2, %v2389_v25, 0.0  ;;  %v2409_v8 = vmul.f32 %v2392_v41, %v2389_v25 }
 0x267   : > { %v2396_v16 = vadd.f32 %v2395_v35, %v2394_v37  ;;  %v2397_v29 = vsel %vm444_vm2, %v2390_v23, 0.0  ;;  %v2410_v19 = vmul.f32 %v2393_v36, %v2390_v23  ;;  %v2411_v55 = vsel %vm444_vm2, %v2408_v50, 0.0 }
 0x268   : > { %v2412_v27 = vsel %vm444_vm2, %v2409_v8, 0.0 }
 0x269   : > { %v2398_v32 = vadd.f32 %v2397_v29, %v2396_v16  ;;  %v2414_v14 = vsel %vm444_vm2, %v2410_v19, 0.0  ;;  %v2413_v0 = vadd.f32 %v2412_v27, %v2411_v55  ;;  %vm2450_vm2 = vcmp.eq.s32.totalorder %v4014_v18, 0 }
 0x26b   : > { %2399 = vadd.xlane.f32.xlu0 %v2398_v32  ;;  %v2415_v49 = vadd.f32 %v2414_v14, %v2413_v0 }
 0x273   : > { %2416 = vadd.xlane.f32.xlu0 %v2415_v49 }
 0x2c7   : > { %v2437_v28 = vpop.xlane.xlu1 %2436 }
 0x2c8   : > { %v2438_v54 = vrot.slane %v2437_v28, 4 }
 0x2ca   : > { %v2439_v21 = vadd.f32 %v2438_v54, %v2437_v28 }
 0x2cc   : > { %v2440_v56 = vrot.slane %v2439_v21, 2 }
 0x2ce   : > { %v2441_v43 = vadd.f32 %v2440_v56, %v2439_v21 }
 0x2d0   : > { %v2442_v22 = vrot.slane %v2441_v43, 1 }
 0x2d2   : > { %v2443_v38 = vadd.f32 %v2442_v22, %v2441_v43 }
 0x2de   : > { %v2400_v60 = vpop.xlane.xlu0 %2399 }
 0x2df   : > { %v2401_v13 = vrot.slane %v2400_v60, 4 }
 0x2e1   : > { %v2402_v1 = vadd.f32 %v2401_v13, %v2400_v60 }
 0x2e3   : > { %v2403_v59 = vrot.slane %v2402_v1, 2 }
 0x2e5   : > { %v2404_v12 = vadd.f32 %v2403_v59, %v2402_v1 }
 0x2e6   : > { %v2417_v39 = vpop.xlane.xlu0 %2416 }
 0x2e7   : > { %v2418_v44 = vrot.slane %v2417_v39, 4  ;;  %v2405_v17 = vrot.slane %v2404_v12, 1 }
 0x2e9   : > { %v2419_v34 = vadd.f32 %v2418_v44, %v2417_v39  ;;  %v2406_v47 = vadd.f32 %v2405_v17, %v2404_v12 }
 0x2eb   : > { %v2420_v5 = vrot.slane %v2419_v34, 2  ;;  %2822 = vpush %v2406_v47 }
 0x2ed   : > { %v2421_v40 = vadd.f32 %v2420_v5, %v2419_v34 }
 0x2ef   : > { %v2422_v6 = vrot.slane %v2421_v40, 1 }
 0x2f1   : > { %v2423_v61 = vadd.f32 %v2422_v6, %v2421_v40 }
 0x2f3   : > { %2824 = vpush %v2423_v61 }
 0x2f4   : > { %2826 = vpush %v2443_v38 }
 0x31c   : > { %s2823_s9 = spop %2822 }
 0x31d   : > { %v2451_v11 = vstv %s2823_s9 }
 0x31e   : > { %v2452_v48 = vsel %vm2450_vm2, %v2451_v11, 0.0 }
 0x324   : > { %s2825_s12 = spop %2824 }
 0x325   : > { %v2454_v15 = vstv %s2825_s12  ;;  %s2827_s13 = spop %2826  ;;  %s3050_s12 = scalar_lea.hbm %s4324_s4, 32 }
 0x326   : > { %v2455_v20 = vsel %vm2453_vm4, %v2454_v15, 0.0  ;;  %v2458_v42 = vstv %s2827_s13  ;;  %p3052_p6 = scmp.lt.s32.totalorder %s3050_s12, %s3046_s8 }
 0x327   : > { %v2456_v53 = vadd.f32 %v2455_v20, %v2452_v48  ;;  %v2459_v63 = vsel %vm2457_vm6, %v2458_v42, 0.0 }
 0x328   : > { %p3053_p7 = por %p3052_p6, %p3051_p5 }
 0x329   : > { %v2460_v30 = vadd.f32 %v2459_v63, %v2456_v53 }
 0x32a   : > { %p3054_p9 = pnand %p3053_p7, %p3049_p4 }
 0x32b   : > { %2462 = vst [vmem:[%s307_s18] sm:$0xff] %v2460_v30 }
 0x32c   : > { %3057 = shalt.err (!%p3054_p9)
}
 0x32d   : > { %2828 = dma.vmem_to_hbm [thread:$0]  (%p3204_p3), %s2479_s19, 128, %s2481_s30, %s2464_s27  }
 0x32e PF: > { %p2834_p10 = scmp.ge.s32.totalorder %s3124_s22, 2  ;;  %s2492_s6 = sand.u32 1, %s3096_s15  }
 0x32f   : > { %s2493_s14 = scalar_lea.sflag [#allocation4], %s2492_s6 }
 0x330   : > { %p2831_p11 = pnand %p2834_p10, %p3213_p8 }
 0x332   : > { %p2832_p12 = pneg %p2831_p11 }
 0x334   : > { %3091 = dma.done.wait (%p2832_p12), %s2493_s14, 128  }
 0x335   : > { %3093 = vsyncadd (%p2832_p12), %s2493_s14, 4294967168  ;;  %s17_s22 = sadd.s32 1, %s3124_s22   ;;  %s4388_s15 = smov %s3100_s16 }
 0x336   : > { %p14_p13 = scmp.ge.s32.totalorder %s17_s22, 6   ;;  %s4389_s16 = smov %s3104_s17 }
 0x337   : > { %s4390_s17 = smov %s3222_s7  ;;  %s4391_s18 = smov %s3116_s20 }
 0x338   : > { %s4392_s19 = smov %s3120_s21  ;;  %s4393_s20 = smov %s4396_s25 }
 0x339   : > { %s4394_s21 = smov %s4400_s26  ;;  %16 = sbr.rel (!%p14_p13) target bundleno = 5 (0x5), region = 119 }
 0x33e   :  { %2499 = vsyncpa [#allocation4], 1 }
 0x33f   :  { %2501 = vsyncpa [#allocation4 + $0x1], 1 }

</bundles_post_ra>
